<compile_context>
chip_gen: v5e
topology: v5e:2x2
jax: 0.10.0
libtpu: 0.0.40
codegen_flags: <defaults>
</compile_context>

<pallas_src>
import functools
import math

import jax
import jax.numpy as jnp
from jax.experimental import pallas as pl
from jax.experimental.pallas import tpu as pltpu

# ---- small synthetic config consistent with the module structure ----
HIDDEN = 128          # module hard-codes 1024; scaled down for the synthetic run
DIMEN = HIDDEN // 2   # hidden_dim // 2
N_PATCH = 8           # args.num_patches
SEQ_LEN = 2           # args.sequence_length
IMG = 16              # mask H = W
BATCH = 2
HW = IMG * IMG
LN_EPS = 1e-5

_VMEM = pl.BlockSpec(memory_space=pltpu.MemorySpace.VMEM)


# --------------------------- in-kernel helpers -------------------------------

def _dot(x, w):
    """MXU matmul: bf16 operands, f32 accumulation."""
    return jnp.dot(x.astype(jnp.bfloat16), w.astype(jnp.bfloat16),
                   preferred_element_type=jnp.float32)


def _ln_relu(y, g, be):
    """LayerNorm (single-pass E[x^2]-E[x]^2 variance) + ReLU, in f32."""
    mean = jnp.mean(y, axis=-1, keepdims=True)
    var = jnp.mean(y * y, axis=-1, keepdims=True) - mean * mean
    y = (y - mean) * jax.lax.rsqrt(var + LN_EPS)
    return jnp.maximum(y * g + be, 0.0)


# ----------------------------- Pallas kernels --------------------------------

def _backbone_kernel(x_ref, w_ref, b_ref, o_ref):
    # resnet50 stub: one Linear for target rows and all object rows at once.
    o_ref[...] = _dot(x_ref[...], w_ref[...]) + b_ref[...]


def _edge_rel_kernel(obj_ref, tgt_ref, box_ref,
                     w1a, w1b, b1, g1, e1,
                     w2, b2, g2, e2,
                     w3, b3, g3, e3,
                     w4, b4,
                     rel_ref, objsum_ref):
    obj = obj_ref[...]                               # (B, N, H*W)
    tgt = tgt_ref[...]                               # (B, 1, H*W)
    box = box_ref[...]                               # (B, N, H*W)

    overlap = jnp.sum(obj * tgt, axis=-1)            # target_overlap   (B, N)
    inter = jnp.sum(box * tgt, axis=-1)
    union = jnp.sum(box, axis=-1) + jnp.sum(tgt, axis=-1) - inter
    iou = inter / (union + 1e-8)                     # calculate_iou    (B, N)
    objsum_ref[...] = jnp.sum(obj, axis=-1)          # for the padding mask

    # object_rel_fc on the interleaved (overlap, iou) vector; the first-layer
    # weight is pre-split (even/odd rows) so the interleave is never materialised.
    h = _dot(overlap, w1a[...]) + _dot(iou, w1b[...]) + b1[...]
    h = _ln_relu(h, g1[...], e1[...])
    h = _ln_relu(_dot(h, w2[...]) + b2[...], g2[...], e2[...])
    h = _ln_relu(_dot(h, w3[...]) + b3[...], g3[...], e3[...])
    rel_ref[...] = _dot(h, w4[...]) + b4[...]        # (B, N*DIMEN)


def _proj_kernel(t_ref, of_ref,
                 tw1, tb1, tg1, te1, tw2, tb2, tg2, te2, tw3, tb3,
                 ow1, ob1, og1, oe1, ow2, ob2, og2, oe2, ow3, ob3,
                 q_ref, k_ref):
    # W_t MLP -> query projection (activations stay in VMEM between layers)
    t = _ln_relu(_dot(t_ref[...], tw1[...]) + tb1[...], tg1[...], te1[...])
    t = _ln_relu(_dot(t, tw2[...]) + tb2[...], tg2[...], te2[...])
    q_ref[...] = _dot(t, tw3[...]) + tb3[...]
    # W_o MLP -> key projection
    o = _ln_relu(_dot(of_ref[...], ow1[...]) + ob1[...], og1[...], oe1[...])
    o = _ln_relu(_dot(o, ow2[...]) + ob2[...], og2[...], oe2[...])
    k_ref[...] = _dot(o, ow3[...]) + ob3[...]


def _sdpa_attn_kernel(q_ref, k_ref, v_ref, rel_ref, objsum_ref,
                      wa, wb, b1, g1, e1,
                      w2, b2, g2, e2,
                      w3, b3, g3, e3,
                      w4, b4, g4, e4,
                      w5, b5,
                      scores_ref, *, scale, n_patch):
    # scaled dot-product attention (bf16 MXU inputs, f32 softmax)
    q = q_ref[...].astype(jnp.bfloat16)
    k = k_ref[...].astype(jnp.bfloat16)
    s = jnp.einsum("bnd,bmd->bnm", q, k,
                   preferred_element_type=jnp.float32) * scale
    s = s - jnp.max(s, axis=-1, keepdims=True)
    e = jnp.exp(s)
    w = e * pl.reciprocal(jnp.sum(e, axis=-1, keepdims=True), approx=True)
    ao = jnp.einsum("bnm,bmd->bnd", w.astype(jnp.bfloat16),
                    v_ref[...].astype(jnp.bfloat16),
                    preferred_element_type=jnp.float32)          # (B, N, D)

    # attn MLP layer 1 on cat([attn_output, object_rel_feats], -1).reshape(B, -1),
    # expressed with the pre-split weight so no in-kernel flatten is needed.
    y = _dot(rel_ref[...], wb[...]) + b1[...]
    for n in range(n_patch):                                     # static unroll
        y = y + _dot(ao[:, n, :], wa[n])
    y = _ln_relu(y, g1[...], e1[...])
    y = _ln_relu(_dot(y, w2[...]) + b2[...], g2[...], e2[...])
    y = _ln_relu(_dot(y, w3[...]) + b3[...], g3[...], e3[...])
    y = _ln_relu(_dot(y, w4[...]) + b4[...], g4[...], e4[...])
    scores = _dot(y, w5[...]) + b5[...]                          # (B, N)

    # masked_fill_ of padded (all-zero-mask) objects; the reference really
    # uses float(-1e-06) (near-zero, not -inf) -- reproduced faithfully.
    scores_ref[...] = jnp.where(objsum_ref[...] == 0.0,
                                jnp.float32(-1e-06), scores)


def _context_kernel(w_ref, obj_ref, raw_ref, ctx_ref, rctx_ref):
    w = w_ref[...][:, :, None]                       # (B, N, 1) one-hot weights
    ctx_ref[...] = jnp.sum(obj_ref[...] * w, axis=1)
    rctx_ref[...] = jnp.sum(raw_ref[...] * w, axis=1)


# ----------------------------- kernel wrappers --------------------------------

def pallas_backbone(x, p):
    args = (x, p["w"], p["b"])
    return pl.pallas_call(
        _backbone_kernel,
        in_specs=[_VMEM] * len(args),
        out_specs=_VMEM,
        out_shape=jax.ShapeDtypeStruct((x.shape[0], HIDDEN), jnp.float32),
    )(*args)


def pallas_edge_rel(obj_flat, tgt_flat, box_flat, p):
    B, N, _ = obj_flat.shape
    args = (obj_flat, tgt_flat, box_flat,
            p["w1a"], p["w1b"], p["b1"], p["g1"], p["e1"],
            p["w2"], p["b2"], p["g2"], p["e2"],
            p["w3"], p["b3"], p["g3"], p["e3"],
            p["w4"], p["b4"])
    return pl.pallas_call(
        _edge_rel_kernel,
        in_specs=[_VMEM] * len(args),
        out_specs=(_VMEM, _VMEM),
        out_shape=(jax.ShapeDtypeStruct((B, N * DIMEN), jnp.float32),
                   jax.ShapeDtypeStruct((B, N), jnp.float32)),
    )(*args)


def pallas_proj(target_feats, object_feats_flat, pt, po):
    B = target_feats.shape[0]
    args = (target_feats, object_feats_flat,
            pt["w1"], pt["b1"], pt["g1"], pt["e1"],
            pt["w2"], pt["b2"], pt["g2"], pt["e2"],
            pt["w3"], pt["b3"],
            po["w1"], po["b1"], po["g1"], po["e1"],
            po["w2"], po["b2"], po["g2"], po["e2"],
            po["w3"], po["b3"])
    return pl.pallas_call(
        _proj_kernel,
        in_specs=[_VMEM] * len(args),
        out_specs=(_VMEM, _VMEM),
        out_shape=(jax.ShapeDtypeStruct((B, N_PATCH * DIMEN), jnp.float32),
                   jax.ShapeDtypeStruct((B, N_PATCH * DIMEN), jnp.float32)),
    )(*args)


def pallas_sdpa_attn(q, k, v, rel_flat, obj_sums, p):
    B, N, D = q.shape
    kernel = functools.partial(_sdpa_attn_kernel,
                               scale=1.0 / math.sqrt(D), n_patch=N)
    args = (q, k, v, rel_flat, obj_sums,
            p["wa"], p["wb"], p["b1"], p["g1"], p["e1"],
            p["w2"], p["b2"], p["g2"], p["e2"],
            p["w3"], p["b3"], p["g3"], p["e3"],
            p["w4"], p["b4"], p["g4"], p["e4"],
            p["w5"], p["b5"])
    return pl.pallas_call(
        kernel,
        in_specs=[_VMEM] * len(args),
        out_specs=_VMEM,
        out_shape=jax.ShapeDtypeStruct((B, N), jnp.float32),
    )(*args)


def pallas_context(sampled, obj_flat, raw_flat):
    B, N, L = obj_flat.shape
    args = (sampled, obj_flat, raw_flat)
    return pl.pallas_call(
        _context_kernel,
        in_specs=[_VMEM] * len(args),
        out_specs=(_VMEM, _VMEM),
        out_shape=(jax.ShapeDtypeStruct((B, L), jnp.float32),
                   jax.ShapeDtypeStruct((B, L), jnp.float32)),
    )(*args)


# ----------------------------- parameters ------------------------------------

def _init_mlp(key, layer_dims):
    layers = []
    for (din, dout, has_ln) in layer_dims:
        key, kw = jax.random.split(key)
        lyr = {"w": jax.random.normal(kw, (din, dout), jnp.float32) / math.sqrt(din),
               "b": jnp.zeros((dout,), jnp.float32)}
        if has_ln:
            lyr["g"] = jnp.ones((dout,), jnp.float32)
            lyr["be"] = jnp.zeros((dout,), jnp.float32)
        layers.append(lyr)
    return key, layers


def init_params(key):
    params = {}
    # TODO(synk): torchvision resnet50 backbone has no clean Pallas equivalent;
    # replaced with a deterministic linear stub producing hidden_dim features.
    key, kb = jax.random.split(key)
    params["backbone"] = {
        "w": jax.random.normal(kb, (3 * HW, HIDDEN), jnp.float32) / math.sqrt(3 * HW),
        "b": jnp.zeros((HIDDEN,), jnp.float32),
    }
    key, params["attn"] = _init_mlp(key, [
        (N_PATCH * HIDDEN, HIDDEN, True),
        (HIDDEN, 2 * HIDDEN, True),
        (2 * HIDDEN, HIDDEN, True),
        (HIDDEN, HIDDEN // 2, True),
        (HIDDEN // 2, N_PATCH, False),
    ])
    key, params["object_rel_fc"] = _init_mlp(key, [
        (N_PATCH * 2, DIMEN, True),
        (DIMEN, HIDDEN, True),
        (HIDDEN, DIMEN, True),
        (DIMEN, N_PATCH * DIMEN, False),
    ])
    key, params["W_t"] = _init_mlp(key, [
        (HIDDEN, 2 * HIDDEN, True),
        (2 * HIDDEN, HIDDEN, True),
        (HIDDEN, N_PATCH * DIMEN, False),
    ])
    key, params["W_o"] = _init_mlp(key, [
        (N_PATCH * HIDDEN, 2 * HIDDEN, True),
        (2 * HIDDEN, HIDDEN, True),
        (HIDDEN, N_PATCH * DIMEN, False),
    ])
    return params


def _bf16(x):
    return x.astype(jnp.bfloat16)


def _row(v):
    return v.reshape(1, -1).astype(jnp.float32)


def _prep_proj(mlp):
    """Linear+LN+ReLU, Linear+LN+ReLU, Linear (W_t / W_o)."""
    return {
        "w1": _bf16(mlp[0]["w"]), "b1": _row(mlp[0]["b"]),
        "g1": _row(mlp[0]["g"]), "e1": _row(mlp[0]["be"]),
        "w2": _bf16(mlp[1]["w"]), "b2": _row(mlp[1]["b"]),
        "g2": _row(mlp[1]["g"]), "e2": _row(mlp[1]["be"]),
        "w3": _bf16(mlp[2]["w"]), "b3": _row(mlp[2]["b"]),
    }


def prepare_params(params):
    """Kernel-ready parameters: fold the x3 channel repeat into the backbone weight,
    pre-split the interleaving first layers, and cast matmul weights to bf16."""
    kp = {}

    w = params["backbone"]["w"]                                    # (3*HW, HIDDEN)
    kp["backbone"] = {
        # repeat(3 channels) @ w  ==  x @ (w[0:HW] + w[HW:2HW] + w[2HW:3HW])
        "w": _bf16(w[:HW] + w[HW:2 * HW] + w[2 * HW:]),
        "b": _row(params["backbone"]["b"]),
    }

    rel = params["object_rel_fc"]
    kp["object_rel_fc"] = {
        # objects_rel.view(B,-1) interleaves (overlap_n, iou_n) -> split even/odd rows
        "w1a": _bf16(rel[0]["w"][0::2]), "w1b": _bf16(rel[0]["w"][1::2]),
        "b1": _row(rel[0]["b"]), "g1": _row(rel[0]["g"]), "e1": _row(rel[0]["be"]),
        "w2": _bf16(rel[1]["w"]), "b2": _row(rel[1]["b"]),
        "g2": _row(rel[1]["g"]), "e2": _row(rel[1]["be"]),
        "w3": _bf16(rel[2]["w"]), "b3": _row(rel[2]["b"]),
        "g3": _row(rel[2]["g"]), "e3": _row(rel[2]["be"]),
        "w4": _bf16(rel[3]["w"]), "b4": _row(rel[3]["b"]),
    }

    attn = params["attn"]
    w1r = attn[0]["w"].reshape(N_PATCH, HIDDEN, HIDDEN)
    kp["attn"] = {
        # cat([attn_output, rel], -1).reshape(B,-1) @ W1 split into per-object
        # attn-output blocks (wa, indexed in-kernel) and a contiguous rel block (wb).
        "wa": _bf16(w1r[:, :DIMEN, :]),                            # (N, D, HIDDEN)
        "wb": _bf16(w1r[:, DIMEN:, :].reshape(N_PATCH * DIMEN, HIDDEN)),
        "b1": _row(attn[0]["b"]), "g1": _row(attn[0]["g"]), "e1": _row(attn[0]["be"]),
        "w2": _bf16(attn[1]["w"]), "b2": _row(attn[1]["b"]),
        "g2": _row(attn[1]["g"]), "e2": _row(attn[1]["be"]),
        "w3": _bf16(attn[2]["w"]), "b3": _row(attn[2]["b"]),
        "g3": _row(attn[2]["g"]), "e3": _row(attn[2]["be"]),
        "w4": _bf16(attn[3]["w"]), "b4": _row(attn[3]["b"]),
        "g4": _row(attn[3]["g"]), "e4": _row(attn[3]["be"]),
        "w5": _bf16(attn[4]["w"]), "b5": _row(attn[4]["b"]),
    }

    kp["W_t"] = _prep_proj(params["W_t"])
    kp["W_o"] = _prep_proj(params["W_o"])
    return kp


# ----------------------------- forward ----------------------------------------

def make_box_masks(bboxes, Hm, Wm):
    # Reproduces calculate_iou's quirky indexing: box_mask has shape (1, H, W) and
    # box_mask[y1:y2, x1:x2] = 1 slices dims (0, 1) -> dim0 (size 1) and the H dim.
    x1 = bboxes[..., 0].astype(jnp.int32)
    y1 = bboxes[..., 1].astype(jnp.int32)
    x2 = bboxes[..., 2].astype(jnp.int32)
    y2 = bboxes[..., 3].astype(jnp.int32)
    dim0_in = (y1 <= 0) & (y2 >= 1)                                        # (B, N)
    h = jnp.arange(Hm)
    row_in = (h[None, None, :] >= x1[..., None]) & (h[None, None, :] < x2[..., None])
    mask = (dim0_in[..., None] & row_in).astype(jnp.float32)               # (B, N, H)
    return jnp.broadcast_to(mask[..., None], mask.shape + (Wm,))           # (B, N, H, W)


def obstacle_head_forward(kp, scene_mask, target_mask, object_masks,
                          raw_scene_mask, raw_target_mask, raw_object_masks,
                          bboxes, gumbel_key):
    # scene_mask / raw_scene_mask / raw_target_mask are only used by show_images().
    B, N, C, Hm, Wm = object_masks.shape
    L = Hm * Wm

    # ---- preprocess_inputs: resnet50 stub, one batched matmul (target + objects) ----
    x_rows = jnp.concatenate([target_mask.reshape(B, L),
                              object_masks.reshape(B * N, L)], axis=0)
    feats = pallas_backbone(x_rows, kp["backbone"])            # (B + B*N, HIDDEN)
    target_feats = feats[:B]                                   # (B, HIDDEN)
    object_feats_flat = feats[B:].reshape(B, N * HIDDEN)       # (B, N*HIDDEN)

    # ---- compute_edge_features + object_rel_fc (one fused kernel) ----
    obj_flat = object_masks.reshape(B, N, L)
    tgt_flat = target_mask.reshape(B, 1, L)
    box_flat = make_box_masks(bboxes, Hm, Wm).reshape(B, N, L)
    rel_flat, obj_sums = pallas_edge_rel(obj_flat, tgt_flat, box_flat,
                                         kp["object_rel_fc"])
    object_rel_feats = rel_flat.reshape(B, N, DIMEN)

    # ---- W_t / W_o projections (one fused kernel) ----
    q_flat, k_flat = pallas_proj(target_feats, object_feats_flat,
                                 kp["W_t"], kp["W_o"])

    # ---- SDPA + attn MLP + padding masked_fill (one fused kernel) ----
    attn_scores = pallas_sdpa_attn(q_flat.reshape(B, N, DIMEN),
                                   k_flat.reshape(B, N, DIMEN),
                                   object_rel_feats, rel_flat, obj_sums,
                                   kp["attn"])                  # (B, N)

    _, top_indices = jax.lax.top_k(attn_scores, SEQ_LEN)

    # ---- hard gumbel-softmax sampling (straight-through forward == one-hot) ----
    # TODO(synk): torch F.gumbel_softmax RNG stream cannot be reproduced; uses
    # jax.random.gumbel noise with the same hard-argmax forward semantics.
    g = jax.random.gumbel(gumbel_key, attn_scores.shape, jnp.float32)
    sampled = jax.nn.one_hot(jnp.argmax(attn_scores + g, axis=-1), N,
                             dtype=jnp.float32)                 # (B, N)

    # ---- context / raw_context (one fused weighted-sum kernel) ----
    ctx, raw_ctx = pallas_context(sampled, obj_flat,
                                  raw_object_masks.reshape(B, N, L))
    context = ctx.reshape(B, 1, 1, Hm, Wm)
    raw_context = raw_ctx.reshape(B, Hm, Wm)

    # TODO(synk): show_images() is matplotlib visualization; not translatable.
    return context, attn_scores, top_indices, raw_context


if __name__ == "__main__":
    root = jax.random.PRNGKey(0)
    k_params, k_tgt, k_obj, k_raw, k_box, k_gumbel, k_scene = jax.random.split(root, 7)
    params = init_params(k_params)
    kparams = prepare_params(params)

    target_mask = (jax.random.uniform(k_tgt, (BATCH, 1, IMG, IMG)) > 0.5).astype(jnp.float32)
    object_masks = (jax.random.uniform(k_obj, (BATCH, N_PATCH, 1, IMG, IMG)) > 0.5).astype(jnp.float32)
    raw_object_masks = jax.random.uniform(k_raw, (BATCH, N_PATCH, IMG, IMG), dtype=jnp.float32)
    scene_mask = (jax.random.uniform(k_scene, (BATCH, 1, IMG, IMG)) > 0.5).astype(jnp.float32)
    raw_scene_mask = scene_mask
    raw_target_mask = target_mask

    xy1 = jax.random.uniform(k_box, (BATCH, N_PATCH, 2), minval=0.0, maxval=IMG / 2)
    wh = jax.random.uniform(jax.random.fold_in(k_box, 1), (BATCH, N_PATCH, 2),
                            minval=1.0, maxval=IMG / 2)
    bboxes = jnp.concatenate([xy1, xy1 + wh], axis=-1)                     # (x1, y1, x2, y2)

    fwd = jax.jit(obstacle_head_forward)
    selected_object, attn_scores, top_indices, raw_context = fwd(
        kparams, scene_mask, target_mask, object_masks,
        raw_scene_mask, raw_target_mask, raw_object_masks, bboxes, k_gumbel)

    jax.block_until_ready((selected_object, attn_scores, top_indices, raw_context))
    assert selected_object.shape == (BATCH, 1, 1, IMG, IMG)
    assert attn_scores.shape == (BATCH, N_PATCH)
    assert top_indices.shape == (BATCH, SEQ_LEN)
    assert raw_context.shape == (BATCH, IMG, IMG)
    print("KERNEL_OK")
</pallas_src>

<mosaic_0001>
module attributes {stable_mosaic.version = 11 : i64} {
  func.func @_backbone_kernel(%arg0: memref<18x256xf32, #tpu.memory_space<vmem>>, %arg1: memref<256x128xbf16, #tpu.memory_space<vmem>>, %arg2: memref<1x128xf32, #tpu.memory_space<vmem>>, %arg3: memref<18x128xf32, #tpu.memory_space<vmem>>) attributes {dimension_semantics = [], scalar_prefetch = 0 : i64, scratch_operands = 0 : i64, tpu.core_type = #tpu.core_type<tc>} {
    %c0 = arith.constant 0 : index
    %c0_0 = arith.constant 0 : index
    %0 = vector.load %arg0[%c0, %c0_0] : memref<18x256xf32, #tpu.memory_space<vmem>>, vector<18x256xf32>
    %c0_1 = arith.constant 0 : index
    %c0_2 = arith.constant 0 : index
    %1 = vector.load %arg1[%c0_1, %c0_2] : memref<256x128xbf16, #tpu.memory_space<vmem>>, vector<256x128xbf16>
    %2 = arith.truncf %0 : vector<18x256xf32> to vector<18x256xbf16>
    %cst = arith.constant dense<0.000000e+00> : vector<18x128xf32>
    %3 = tpu.matmul %2, %1, %cst {dimension_numbers = #tpu.dot_dimension_numbers<[1], [0], [0], [1], [0, 0, 1, 1], [], []>} : vector<18x256xbf16>, vector<256x128xbf16>, vector<18x128xf32> -> vector<18x128xf32>
    %c0_3 = arith.constant 0 : index
    %c0_4 = arith.constant 0 : index
    %4 = vector.load %arg2[%c0_3, %c0_4] : memref<1x128xf32, #tpu.memory_space<vmem>>, vector<1x128xf32>
    %5 = vector.broadcast %4 : vector<1x128xf32> to vector<18x128xf32>
    %6 = arith.addf %3, %5 : vector<18x128xf32>
    %c0_5 = arith.constant 0 : index
    %c0_6 = arith.constant 0 : index
    %7 = vector.load %arg3[%c0_5, %c0_6] : memref<18x128xf32, #tpu.memory_space<vmem>>, vector<18x128xf32>
    tpu.vector_store %arg3[%c0_5, %c0_6], %6 {strides = array<i32>} : memref<18x128xf32, #tpu.memory_space<vmem>>, vector<18x128xf32>,
    return
  }
}

module attributes {stable_mosaic.version = 11 : i64} {
  func.func @_edge_rel_kernel(%arg0: memref<2x8x256xf32, #tpu.memory_space<vmem>>, %arg1: memref<2x1x256xf32, #tpu.memory_space<vmem>>, %arg2: memref<2x8x256xf32, #tpu.memory_space<vmem>>, %arg3: memref<8x64xbf16, #tpu.memory_space<vmem>>, %arg4: memref<8x64xbf16, #tpu.memory_space<vmem>>, %arg5: memref<1x64xf32, #tpu.memory_space<vmem>>, %arg6: memref<1x64xf32, #tpu.memory_space<vmem>>, %arg7: memref<1x64xf32, #tpu.memory_space<vmem>>, %arg8: memref<64x128xbf16, #tpu.memory_space<vmem>>, %arg9: memref<1x128xf32, #tpu.memory_space<vmem>>, %arg10: memref<1x128xf32, #tpu.memory_space<vmem>>, %arg11: memref<1x128xf32, #tpu.memory_space<vmem>>, %arg12: memref<128x64xbf16, #tpu.memory_space<vmem>>, %arg13: memref<1x64xf32, #tpu.memory_space<vmem>>, %arg14: memref<1x64xf32, #tpu.memory_space<vmem>>, %arg15: memref<1x64xf32, #tpu.memory_space<vmem>>, %arg16: memref<64x512xbf16, #tpu.memory_space<vmem>>, %arg17: memref<1x512xf32, #tpu.memory_space<vmem>>, %arg18: memref<2x512xf32, #tpu.memory_space<vmem>>, %arg19: memref<2x8xf32, #tpu.memory_space<vmem>>) attributes {dimension_semantics = [], scalar_prefetch = 0 : i64, scratch_operands = 0 : i64, tpu.core_type = #tpu.core_type<tc>} {
    %c0 = arith.constant 0 : index
    %c0_0 = arith.constant 0 : index
    %c0_1 = arith.constant 0 : index
    %0 = vector.load %arg0[%c0, %c0_0, %c0_1] : memref<2x8x256xf32, #tpu.memory_space<vmem>>, vector<2x8x256xf32>
    %c0_2 = arith.constant 0 : index
    %c0_3 = arith.constant 0 : index
    %c0_4 = arith.constant 0 : index
    %1 = vector.load %arg1[%c0_2, %c0_3, %c0_4] : memref<2x1x256xf32, #tpu.memory_space<vmem>>, vector<2x1x256xf32>
    %c0_5 = arith.constant 0 : index
    %c0_6 = arith.constant 0 : index
    %c0_7 = arith.constant 0 : index
    %2 = vector.load %arg2[%c0_5, %c0_6, %c0_7] : memref<2x8x256xf32, #tpu.memory_space<vmem>>, vector<2x8x256xf32>
    %3 = vector.broadcast %1 : vector<2x1x256xf32> to vector<2x8x256xf32>
    %4 = arith.mulf %0, %3 : vector<2x8x256xf32>
    %cst = arith.constant dense<0.000000e+00> : vector<2x8xf32>
    %5 = vector.multi_reduction <add>, %4, %cst [2] : vector<2x8x256xf32> to vector<2x8xf32>
    %6 = vector.broadcast %1 : vector<2x1x256xf32> to vector<2x8x256xf32>
    %7 = arith.mulf %2, %6 : vector<2x8x256xf32>
    %cst_8 = arith.constant dense<0.000000e+00> : vector<2x8xf32>
    %8 = vector.multi_reduction <add>, %7, %cst_8 [2] : vector<2x8x256xf32> to vector<2x8xf32>
    %cst_9 = arith.constant dense<0.000000e+00> : vector<2x8xf32>
    %9 = vector.multi_reduction <add>, %2, %cst_9 [2] : vector<2x8x256xf32> to vector<2x8xf32>
    %cst_10 = arith.constant dense<0.000000e+00> : vector<2x1xf32>
    %10 = vector.multi_reduction <add>, %1, %cst_10 [2] : vector<2x1x256xf32> to vector<2x1xf32>
    %11 = vector.broadcast %10 : vector<2x1xf32> to vector<2x8xf32>
    %12 = arith.addf %9, %11 : vector<2x8xf32>
    %13 = arith.subf %12, %8 : vector<2x8xf32>
    %cst_11 = arith.constant 9.99999993E-9 : f32
    %14 = vector.broadcast %cst_11 : f32 to vector<2x8xf32>
    %15 = arith.addf %13, %14 : vector<2x8xf32>
    %16 = arith.divf %8, %15 : vector<2x8xf32>
    %cst_12 = arith.constant dense<0.000000e+00> : vector<2x8xf32>
    %17 = vector.multi_reduction <add>, %0, %cst_12 [2] : vector<2x8x256xf32> to vector<2x8xf32>
    %c0_13 = arith.constant 0 : index
    %c0_14 = arith.constant 0 : index
    %18 = vector.load %arg19[%c0_13, %c0_14] : memref<2x8xf32, #tpu.memory_space<vmem>>, vector<2x8xf32>
    tpu.vector_store %arg19[%c0_13, %c0_14], %17 {strides = array<i32>} : memref<2x8xf32, #tpu.memory_space<vmem>>, vector<2x8xf32>,
    %c0_15 = arith.constant 0 : index
    %c0_16 = arith.constant 0 : index
    %19 = vector.load %arg3[%c0_15, %c0_16] : memref<8x64xbf16, #tpu.memory_space<vmem>>, vector<8x64xbf16>
    %20 = arith.truncf %5 : vector<2x8xf32> to vector<2x8xbf16>
    %cst_17 = arith.constant dense<0.000000e+00> : vector<2x64xf32>
    %21 = tpu.matmul %20, %19, %cst_17 {dimension_numbers = #tpu.dot_dimension_numbers<[1], [0], [0], [1], [0, 0, 1, 1], [], []>} : vector<2x8xbf16>, vector<8x64xbf16>, vector<2x64xf32> -> vector<2x64xf32>
    %c0_18 = arith.constant 0 : index
    %c0_19 = arith.constant 0 : index
    %22 = vector.load %arg4[%c0_18, %c0_19] : memref<8x64xbf16, #tpu.memory_space<vmem>>, vector<8x64xbf16>
    %23 = arith.truncf %16 : vector<2x8xf32> to vector<2x8xbf16>
    %cst_20 = arith.constant dense<0.000000e+00> : vector<2x64xf32>
    %24 = tpu.matmul %23, %22, %cst_20 {dimension_numbers = #tpu.dot_dimension_numbers<[1], [0], [0], [1], [0, 0, 1, 1], [], []>} : vector<2x8xbf16>, vector<8x64xbf16>, vector<2x64xf32> -> vector<2x64xf32>
    %25 = arith.addf %21, %24 : vector<2x64xf32>
    %c0_21 = arith.constant 0 : index
    %c0_22 = arith.constant 0 : index
    %26 = vector.load %arg5[%c0_21, %c0_22] : memref<1x64xf32, #tpu.memory_space<vmem>>, vector<1x64xf32>
    %27 = vector.broadcast %26 : vector<1x64xf32> to vector<2x64xf32>
    %28 = arith.addf %25, %27 : vector<2x64xf32>
    %c0_23 = arith.constant 0 : index
    %c0_24 = arith.constant 0 : index
    %29 = vector.load %arg6[%c0_23, %c0_24] : memref<1x64xf32, #tpu.memory_space<vmem>>, vector<1x64xf32>
    %c0_25 = arith.constant 0 : index
    %c0_26 = arith.constant 0 : index
    %30 = vector.load %arg7[%c0_25, %c0_26] : memref<1x64xf32, #tpu.memory_space<vmem>>, vector<1x64xf32>
    %cst_27 = arith.constant dense<0.000000e+00> : vector<2xf32>
    %31 = vector.multi_reduction <add>, %28, %cst_27 [1] : vector<2x64xf32> to vector<2xf32>
    %32 = vector.shape_cast %31 : vector<2xf32> to vector<2x1xf32>
    %cst_28 = arith.constant 6.400000e+01 : f32
    %33 = vector.broadcast %cst_28 : f32 to vector<2x1xf32>
    %34 = arith.divf %32, %33 : vector<2x1xf32>
    %35 = arith.mulf %28, %28 : vector<2x64xf32>
    %cst_29 = arith.constant dense<0.000000e+00> : vector<2xf32>
    %36 = vector.multi_reduction <add>, %35, %cst_29 [1] : vector<2x64xf32> to vector<2xf32>
    %37 = vector.shape_cast %36 : vector<2xf32> to vector<2x1xf32>
    %cst_30 = arith.constant 6.400000e+01 : f32
    %38 = vector.broadcast %cst_30 : f32 to vector<2x1xf32>
    %39 = arith.divf %37, %38 : vector<2x1xf32>
    %40 = arith.mulf %34, %34 : vector<2x1xf32>
    %41 = arith.subf %39, %40 : vector<2x1xf32>
    %42 = vector.broadcast %34 : vector<2x1xf32> to vector<2x64xf32>
    %43 = arith.subf %28, %42 : vector<2x64xf32>
    %cst_31 = arith.constant 9.99999974E-6 : f32
    %44 = vector.broadcast %cst_31 : f32 to vector<2x1xf32>
    %45 = arith.addf %41, %44 : vector<2x1xf32>
    %46 = math.rsqrt %45 : vector<2x1xf32>
    %47 = vector.broadcast %46 : vector<2x1xf32> to vector<2x64xf32>
    %48 = arith.mulf %43, %47 : vector<2x64xf32>
    %49 = vector.broadcast %29 : vector<1x64xf32> to vector<2x64xf32>
    %50 = arith.mulf %48, %49 : vector<2x64xf32>
    %51 = vector.broadcast %30 : vector<1x64xf32> to vector<2x64xf32>
    %52 = arith.addf %50, %51 : vector<2x64xf32>
    %cst_32 = arith.constant 0.000000e+00 : f32
    %53 = vector.broadcast %cst_32 : f32 to vector<2x64xf32>
    %54 = arith.maximumf %52, %53 : vector<2x64xf32>
    %c0_33 = arith.constant 0 : index
    %c0_34 = arith.constant 0 : index
    %55 = vector.load %arg8[%c0_33, %c0_34] : memref<64x128xbf16, #tpu.memory_space<vmem>>, vector<64x128xbf16>
    %56 = arith.truncf %54 : vector<2x64xf32> to vector<2x64xbf16>
    %cst_35 = arith.constant dense<0.000000e+00> : vector<2x128xf32>
    %57 = tpu.matmul %56, %55, %cst_35 {dimension_numbers = #tpu.dot_dimension_numbers<[1], [0], [0], [1], [0, 0, 1, 1], [], []>} : vector<2x64xbf16>, vector<64x128xbf16>, vector<2x128xf32> -> vector<2x128xf32>
    %c0_36 = arith.constant 0 : index
    %c0_37 = arith.constant 0 : index
    %58 = vector.load %arg9[%c0_36, %c0_37] : memref<1x128xf32, #tpu.memory_space<vmem>>, vector<1x128xf32>
    %59 = vector.broadcast %58 : vector<1x128xf32> to vector<2x128xf32>
    %60 = arith.addf %57, %59 : vector<2x128xf32>
    %c0_38 = arith.constant 0 : index
    %c0_39 = arith.constant 0 : index
    %61 = vector.load %arg10[%c0_38, %c0_39] : memref<1x128xf32, #tpu.memory_space<vmem>>, vector<1x128xf32>
    %c0_40 = arith.constant 0 : index
    %c0_41 = arith.constant 0 : index
    %62 = vector.load %arg11[%c0_40, %c0_41] : memref<1x128xf32, #tpu.memory_space<vmem>>, vector<1x128xf32>
    %cst_42 = arith.constant dense<0.000000e+00> : vector<2xf32>
    %63 = vector.multi_reduction <add>, %60, %cst_42 [1] : vector<2x128xf32> to vector<2xf32>
    %64 = vector.shape_cast %63 : vector<2xf32> to vector<2x1xf32>
    %cst_43 = arith.constant 1.280000e+02 : f32
    %65 = vector.broadcast %cst_43 : f32 to vector<2x1xf32>
    %66 = arith.divf %64, %65 : vector<2x1xf32>
    %67 = arith.mulf %60, %60 : vector<2x128xf32>
    %cst_44 = arith.constant dense<0.000000e+00> : vector<2xf32>
    %68 = vector.multi_reduction <add>, %67, %cst_44 [1] : vector<2x128xf32> to vector<2xf32>
    %69 = vector.shape_cast %68 : vector<2xf32> to vector<2x1xf32>
    %cst_45 = arith.constant 1.280000e+02 : f32
    %70 = vector.broadcast %cst_45 : f32 to vector<2x1xf32>
    %71 = arith.divf %69, %70 : vector<2x1xf32>
    %72 = arith.mulf %66, %66 : vector<2x1xf32>
    %73 = arith.subf %71, %72 : vector<2x1xf32>
    %74 = vector.broadcast %66 : vector<2x1xf32> to vector<2x128xf32>
    %75 = arith.subf %60, %74 : vector<2x128xf32>
    %cst_46 = arith.constant 9.99999974E-6 : f32
    %76 = vector.broadcast %cst_46 : f32 to vector<2x1xf32>
    %77 = arith.addf %73, %76 : vector<2x1xf32>
    %78 = math.rsqrt %77 : vector<2x1xf32>
    %79 = vector.broadcast %78 : vector<2x1xf32> to vector<2x128xf32>
    %80 = arith.mulf %75, %79 : vector<2x128xf32>
    %81 = vector.broadcast %61 : vector<1x128xf32> to vector<2x128xf32>
    %82 = arith.mulf %80, %81 : vector<2x128xf32>
    %83 = vector.broadcast %62 : vector<1x128xf32> to vector<2x128xf32>
    %84 = arith.addf %82, %83 : vector<2x128xf32>
    %cst_47 = arith.constant 0.000000e+00 : f32
    %85 = vector.broadcast %cst_47 : f32 to vector<2x128xf32>
    %86 = arith.maximumf %84, %85 : vector<2x128xf32>
    %c0_48 = arith.constant 0 : index
    %c0_49 = arith.constant 0 : index
    %87 = vector.load %arg12[%c0_48, %c0_49] : memref<128x64xbf16, #tpu.memory_space<vmem>>, vector<128x64xbf16>
    %88 = arith.truncf %86 : vector<2x128xf32> to vector<2x128xbf16>
    %cst_50 = arith.constant dense<0.000000e+00> : vector<2x64xf32>
    %89 = tpu.matmul %88, %87, %cst_50 {dimension_numbers = #tpu.dot_dimension_numbers<[1], [0], [0], [1], [0, 0, 1, 1], [], []>} : vector<2x128xbf16>, vector<128x64xbf16>, vector<2x64xf32> -> vector<2x64xf32>
    %c0_51 = arith.constant 0 : index
    %c0_52 = arith.constant 0 : index
    %90 = vector.load %arg13[%c0_51, %c0_52] : memref<1x64xf32, #tpu.memory_space<vmem>>, vector<1x64xf32>
    %91 = vector.broadcast %90 : vector<1x64xf32> to vector<2x64xf32>
    %92 = arith.addf %89, %91 : vector<2x64xf32>
    %c0_53 = arith.constant 0 : index
    %c0_54 = arith.constant 0 : index
    %93 = vector.load %arg14[%c0_53, %c0_54] : memref<1x64xf32, #tpu.memory_space<vmem>>, vector<1x64xf32>
    %c0_55 = arith.constant 0 : index
    %c0_56 = arith.constant 0 : index
    %94 = vector.load %arg15[%c0_55, %c0_56] : memref<1x64xf32, #tpu.memory_space<vmem>>, vector<1x64xf32>
    %cst_57 = arith.constant dense<0.000000e+00> : vector<2xf32>
    %95 = vector.multi_reduction <add>, %92, %cst_57 [1] : vector<2x64xf32> to vector<2xf32>
    %96 = vector.shape_cast %95 : vector<2xf32> to vector<2x1xf32>
    %cst_58 = arith.constant 6.400000e+01 : f32
    %97 = vector.broadcast %cst_58 : f32 to vector<2x1xf32>
    %98 = arith.divf %96, %97 : vector<2x1xf32>
    %99 = arith.mulf %92, %92 : vector<2x64xf32>
    %cst_59 = arith.constant dense<0.000000e+00> : vector<2xf32>
    %100 = vector.multi_reduction <add>, %99, %cst_59 [1] : vector<2x64xf32> to vector<2xf32>
    %101 = vector.shape_cast %100 : vector<2xf32> to vector<2x1xf32>
    %cst_60 = arith.constant 6.400000e+01 : f32
    %102 = vector.broadcast %cst_60 : f32 to vector<2x1xf32>
    %103 = arith.divf %101, %102 : vector<2x1xf32>
    %104 = arith.mulf %98, %98 : vector<2x1xf32>
    %105 = arith.subf %103, %104 : vector<2x1xf32>
    %106 = vector.broadcast %98 : vector<2x1xf32> to vector<2x64xf32>
    %107 = arith.subf %92, %106 : vector<2x64xf32>
    %cst_61 = arith.constant 9.99999974E-6 : f32
    %108 = vector.broadcast %cst_61 : f32 to vector<2x1xf32>
    %109 = arith.addf %105, %108 : vector<2x1xf32>
    %110 = math.rsqrt %109 : vector<2x1xf32>
    %111 = vector.broadcast %110 : vector<2x1xf32> to vector<2x64xf32>
    %112 = arith.mulf %107, %111 : vector<2x64xf32>
    %113 = vector.broadcast %93 : vector<1x64xf32> to vector<2x64xf32>
    %114 = arith.mulf %112, %113 : vector<2x64xf32>
    %115 = vector.broadcast %94 : vector<1x64xf32> to vector<2x64xf32>
    %116 = arith.addf %114, %115 : vector<2x64xf32>
    %cst_62 = arith.constant 0.000000e+00 : f32
    %117 = vector.broadcast %cst_62 : f32 to vector<2x64xf32>
    %118 = arith.maximumf %116, %117 : vector<2x64xf32>
    %c0_63 = arith.constant 0 : index
    %c0_64 = arith.constant 0 : index
    %119 = vector.load %arg16[%c0_63, %c0_64] : memref<64x512xbf16, #tpu.memory_space<vmem>>, vector<64x512xbf16>
    %120 = arith.truncf %118 : vector<2x64xf32> to vector<2x64xbf16>
    %cst_65 = arith.constant dense<0.000000e+00> : vector<2x512xf32>
    %121 = tpu.matmul %120, %119, %cst_65 {dimension_numbers = #tpu.dot_dimension_numbers<[1], [0], [0], [1], [0, 0, 1, 1], [], []>} : vector<2x64xbf16>, vector<64x512xbf16>, vector<2x512xf32> -> vector<2x512xf32>
    %c0_66 = arith.constant 0 : index
    %c0_67 = arith.constant 0 : index
    %122 = vector.load %arg17[%c0_66, %c0_67] : memref<1x512xf32, #tpu.memory_space<vmem>>, vector<1x512xf32>
    %123 = vector.broadcast %122 : vector<1x512xf32> to vector<2x512xf32>
    %124 = arith.addf %121, %123 : vector<2x512xf32>
    %c0_68 = arith.constant 0 : index
    %c0_69 = arith.constant 0 : index
    %125 = vector.load %arg18[%c0_68, %c0_69] : memref<2x512xf32, #tpu.memory_space<vmem>>, vector<2x512xf32>
    tpu.vector_store %arg18[%c0_68, %c0_69], %124 {strides = array<i32>} : memref<2x512xf32, #tpu.memory_space<vmem>>, vector<2x512xf32>,
    return
  }
}

module attributes {stable_mosaic.version = 11 : i64} {
  func.func @_proj_kernel(%arg0: memref<2x128xf32, #tpu.memory_space<vmem>>, %arg1: memref<2x1024xf32, #tpu.memory_space<vmem>>, %arg2: memref<128x256xbf16, #tpu.memory_space<vmem>>, %arg3: memref<1x256xf32, #tpu.memory_space<vmem>>, %arg4: memref<1x256xf32, #tpu.memory_space<vmem>>, %arg5: memref<1x256xf32, #tpu.memory_space<vmem>>, %arg6: memref<256x128xbf16, #tpu.memory_space<vmem>>, %arg7: memref<1x128xf32, #tpu.memory_space<vmem>>, %arg8: memref<1x128xf32, #tpu.memory_space<vmem>>, %arg9: memref<1x128xf32, #tpu.memory_space<vmem>>, %arg10: memref<128x512xbf16, #tpu.memory_space<vmem>>, %arg11: memref<1x512xf32, #tpu.memory_space<vmem>>, %arg12: memref<1024x256xbf16, #tpu.memory_space<vmem>>, %arg13: memref<1x256xf32, #tpu.memory_space<vmem>>, %arg14: memref<1x256xf32, #tpu.memory_space<vmem>>, %arg15: memref<1x256xf32, #tpu.memory_space<vmem>>, %arg16: memref<256x128xbf16, #tpu.memory_space<vmem>>, %arg17: memref<1x128xf32, #tpu.memory_space<vmem>>, %arg18: memref<1x128xf32, #tpu.memory_space<vmem>>, %arg19: memref<1x128xf32, #tpu.memory_space<vmem>>, %arg20: memref<128x512xbf16, #tpu.memory_space<vmem>>, %arg21: memref<1x512xf32, #tpu.memory_space<vmem>>, %arg22: memref<2x512xf32, #tpu.memory_space<vmem>>, %arg23: memref<2x512xf32, #tpu.memory_space<vmem>>) attributes {dimension_semantics = [], scalar_prefetch = 0 : i64, scratch_operands = 0 : i64, tpu.core_type = #tpu.core_type<tc>} {
    %c0 = arith.constant 0 : index
    %c0_0 = arith.constant 0 : index
    %0 = vector.load %arg0[%c0, %c0_0] : memref<2x128xf32, #tpu.memory_space<vmem>>, vector<2x128xf32>
    %c0_1 = arith.constant 0 : index
    %c0_2 = arith.constant 0 : index
    %1 = vector.load %arg2[%c0_1, %c0_2] : memref<128x256xbf16, #tpu.memory_space<vmem>>, vector<128x256xbf16>
    %2 = arith.truncf %0 : vector<2x128xf32> to vector<2x128xbf16>
    %cst = arith.constant dense<0.000000e+00> : vector<2x256xf32>
    %3 = tpu.matmul %2, %1, %cst {dimension_numbers = #tpu.dot_dimension_numbers<[1], [0], [0], [1], [0, 0, 1, 1], [], []>} : vector<2x128xbf16>, vector<128x256xbf16>, vector<2x256xf32> -> vector<2x256xf32>
    %c0_3 = arith.constant 0 : index
    %c0_4 = arith.constant 0 : index
    %4 = vector.load %arg3[%c0_3, %c0_4] : memref<1x256xf32, #tpu.memory_space<vmem>>, vector<1x256xf32>
    %5 = vector.broadcast %4 : vector<1x256xf32> to vector<2x256xf32>
    %6 = arith.addf %3, %5 : vector<2x256xf32>
    %c0_5 = arith.constant 0 : index
    %c0_6 = arith.constant 0 : index
    %7 = vector.load %arg4[%c0_5, %c0_6] : memref<1x256xf32, #tpu.memory_space<vmem>>, vector<1x256xf32>
    %c0_7 = arith.constant 0 : index
    %c0_8 = arith.constant 0 : index
    %8 = vector.load %arg5[%c0_7, %c0_8] : memref<1x256xf32, #tpu.memory_space<vmem>>, vector<1x256xf32>
    %cst_9 = arith.constant dense<0.000000e+00> : vector<2xf32>
    %9 = vector.multi_reduction <add>, %6, %cst_9 [1] : vector<2x256xf32> to vector<2xf32>
    %10 = vector.shape_cast %9 : vector<2xf32> to vector<2x1xf32>
    %cst_10 = arith.constant 2.560000e+02 : f32
    %11 = vector.broadcast %cst_10 : f32 to vector<2x1xf32>
    %12 = arith.divf %10, %11 : vector<2x1xf32>
    %13 = arith.mulf %6, %6 : vector<2x256xf32>
    %cst_11 = arith.constant dense<0.000000e+00> : vector<2xf32>
    %14 = vector.multi_reduction <add>, %13, %cst_11 [1] : vector<2x256xf32> to vector<2xf32>
    %15 = vector.shape_cast %14 : vector<2xf32> to vector<2x1xf32>
    %cst_12 = arith.constant 2.560000e+02 : f32
    %16 = vector.broadcast %cst_12 : f32 to vector<2x1xf32>
    %17 = arith.divf %15, %16 : vector<2x1xf32>
    %18 = arith.mulf %12, %12 : vector<2x1xf32>
    %19 = arith.subf %17, %18 : vector<2x1xf32>
    %20 = vector.broadcast %12 : vector<2x1xf32> to vector<2x256xf32>
    %21 = arith.subf %6, %20 : vector<2x256xf32>
    %cst_13 = arith.constant 9.99999974E-6 : f32
    %22 = vector.broadcast %cst_13 : f32 to vector<2x1xf32>
    %23 = arith.addf %19, %22 : vector<2x1xf32>
    %24 = math.rsqrt %23 : vector<2x1xf32>
    %25 = vector.broadcast %24 : vector<2x1xf32> to vector<2x256xf32>
    %26 = arith.mulf %21, %25 : vector<2x256xf32>
    %27 = vector.broadcast %7 : vector<1x256xf32> to vector<2x256xf32>
    %28 = arith.mulf %26, %27 : vector<2x256xf32>
    %29 = vector.broadcast %8 : vector<1x256xf32> to vector<2x256xf32>
    %30 = arith.addf %28, %29 : vector<2x256xf32>
    %cst_14 = arith.constant 0.000000e+00 : f32
    %31 = vector.broadcast %cst_14 : f32 to vector<2x256xf32>
    %32 = arith.maximumf %30, %31 : vector<2x256xf32>
    %c0_15 = arith.constant 0 : index
    %c0_16 = arith.constant 0 : index
    %33 = vector.load %arg6[%c0_15, %c0_16] : memref<256x128xbf16, #tpu.memory_space<vmem>>, vector<256x128xbf16>
    %34 = arith.truncf %32 : vector<2x256xf32> to vector<2x256xbf16>
    %cst_17 = arith.constant dense<0.000000e+00> : vector<2x128xf32>
    %35 = tpu.matmul %34, %33, %cst_17 {dimension_numbers = #tpu.dot_dimension_numbers<[1], [0], [0], [1], [0, 0, 1, 1], [], []>} : vector<2x256xbf16>, vector<256x128xbf16>, vector<2x128xf32> -> vector<2x128xf32>
    %c0_18 = arith.constant 0 : index
    %c0_19 = arith.constant 0 : index
    %36 = vector.load %arg7[%c0_18, %c0_19] : memref<1x128xf32, #tpu.memory_space<vmem>>, vector<1x128xf32>
    %37 = vector.broadcast %36 : vector<1x128xf32> to vector<2x128xf32>
    %38 = arith.addf %35, %37 : vector<2x128xf32>
    %c0_20 = arith.constant 0 : index
    %c0_21 = arith.constant 0 : index
    %39 = vector.load %arg8[%c0_20, %c0_21] : memref<1x128xf32, #tpu.memory_space<vmem>>, vector<1x128xf32>
    %c0_22 = arith.constant 0 : index
    %c0_23 = arith.constant 0 : index
    %40 = vector.load %arg9[%c0_22, %c0_23] : memref<1x128xf32, #tpu.memory_space<vmem>>, vector<1x128xf32>
    %cst_24 = arith.constant dense<0.000000e+00> : vector<2xf32>
    %41 = vector.multi_reduction <add>, %38, %cst_24 [1] : vector<2x128xf32> to vector<2xf32>
    %42 = vector.shape_cast %41 : vector<2xf32> to vector<2x1xf32>
    %cst_25 = arith.constant 1.280000e+02 : f32
    %43 = vector.broadcast %cst_25 : f32 to vector<2x1xf32>
    %44 = arith.divf %42, %43 : vector<2x1xf32>
    %45 = arith.mulf %38, %38 : vector<2x128xf32>
    %cst_26 = arith.constant dense<0.000000e+00> : vector<2xf32>
    %46 = vector.multi_reduction <add>, %45, %cst_26 [1] : vector<2x128xf32> to vector<2xf32>
    %47 = vector.shape_cast %46 : vector<2xf32> to vector<2x1xf32>
    %cst_27 = arith.constant 1.280000e+02 : f32
    %48 = vector.broadcast %cst_27 : f32 to vector<2x1xf32>
    %49 = arith.divf %47, %48 : vector<2x1xf32>
    %50 = arith.mulf %44, %44 : vector<2x1xf32>
    %51 = arith.subf %49, %50 : vector<2x1xf32>
    %52 = vector.broadcast %44 : vector<2x1xf32> to vector<2x128xf32>
    %53 = arith.subf %38, %52 : vector<2x128xf32>
    %cst_28 = arith.constant 9.99999974E-6 : f32
    %54 = vector.broadcast %cst_28 : f32 to vector<2x1xf32>
    %55 = arith.addf %51, %54 : vector<2x1xf32>
    %56 = math.rsqrt %55 : vector<2x1xf32>
    %57 = vector.broadcast %56 : vector<2x1xf32> to vector<2x128xf32>
    %58 = arith.mulf %53, %57 : vector<2x128xf32>
    %59 = vector.broadcast %39 : vector<1x128xf32> to vector<2x128xf32>
    %60 = arith.mulf %58, %59 : vector<2x128xf32>
    %61 = vector.broadcast %40 : vector<1x128xf32> to vector<2x128xf32>
    %62 = arith.addf %60, %61 : vector<2x128xf32>
    %cst_29 = arith.constant 0.000000e+00 : f32
    %63 = vector.broadcast %cst_29 : f32 to vector<2x128xf32>
    %64 = arith.maximumf %62, %63 : vector<2x128xf32>
    %c0_30 = arith.constant 0 : index
    %c0_31 = arith.constant 0 : index
    %65 = vector.load %arg10[%c0_30, %c0_31] : memref<128x512xbf16, #tpu.memory_space<vmem>>, vector<128x512xbf16>
    %66 = arith.truncf %64 : vector<2x128xf32> to vector<2x128xbf16>
    %cst_32 = arith.constant dense<0.000000e+00> : vector<2x512xf32>
    %67 = tpu.matmul %66, %65, %cst_32 {dimension_numbers = #tpu.dot_dimension_numbers<[1], [0], [0], [1], [0, 0, 1, 1], [], []>} : vector<2x128xbf16>, vector<128x512xbf16>, vector<2x512xf32> -> vector<2x512xf32>
    %c0_33 = arith.constant 0 : index
    %c0_34 = arith.constant 0 : index
    %68 = vector.load %arg11[%c0_33, %c0_34] : memref<1x512xf32, #tpu.memory_space<vmem>>, vector<1x512xf32>
    %69 = vector.broadcast %68 : vector<1x512xf32> to vector<2x512xf32>
    %70 = arith.addf %67, %69 : vector<2x512xf32>
    %c0_35 = arith.constant 0 : index
    %c0_36 = arith.constant 0 : index
    %71 = vector.load %arg22[%c0_35, %c0_36] : memref<2x512xf32, #tpu.memory_space<vmem>>, vector<2x512xf32>
    tpu.vector_store %arg22[%c0_35, %c0_36], %70 {strides = array<i32>} : memref<2x512xf32, #tpu.memory_space<vmem>>, vector<2x512xf32>,
    %c0_37 = arith.constant 0 : index
    %c0_38 = arith.constant 0 : index
    %72 = vector.load %arg1[%c0_37, %c0_38] : memref<2x1024xf32, #tpu.memory_space<vmem>>, vector<2x1024xf32>
    %c0_39 = arith.constant 0 : index
    %c0_40 = arith.constant 0 : index
    %73 = vector.load %arg12[%c0_39, %c0_40] : memref<1024x256xbf16, #tpu.memory_space<vmem>>, vector<1024x256xbf16>
    %74 = arith.truncf %72 : vector<2x1024xf32> to vector<2x1024xbf16>
    %cst_41 = arith.constant dense<0.000000e+00> : vector<2x256xf32>
    %75 = tpu.matmul %74, %73, %cst_41 {dimension_numbers = #tpu.dot_dimension_numbers<[1], [0], [0], [1], [0, 0, 1, 1], [], []>} : vector<2x1024xbf16>, vector<1024x256xbf16>, vector<2x256xf32> -> vector<2x256xf32>
    %c0_42 = arith.constant 0 : index
    %c0_43 = arith.constant 0 : index
    %76 = vector.load %arg13[%c0_42, %c0_43] : memref<1x256xf32, #tpu.memory_space<vmem>>, vector<1x256xf32>
    %77 = vector.broadcast %76 : vector<1x256xf32> to vector<2x256xf32>
    %78 = arith.addf %75, %77 : vector<2x256xf32>
    %c0_44 = arith.constant 0 : index
    %c0_45 = arith.constant 0 : index
    %79 = vector.load %arg14[%c0_44, %c0_45] : memref<1x256xf32, #tpu.memory_space<vmem>>, vector<1x256xf32>
    %c0_46 = arith.constant 0 : index
    %c0_47 = arith.constant 0 : index
    %80 = vector.load %arg15[%c0_46, %c0_47] : memref<1x256xf32, #tpu.memory_space<vmem>>, vector<1x256xf32>
    %cst_48 = arith.constant dense<0.000000e+00> : vector<2xf32>
    %81 = vector.multi_reduction <add>, %78, %cst_48 [1] : vector<2x256xf32> to vector<2xf32>
    %82 = vector.shape_cast %81 : vector<2xf32> to vector<2x1xf32>
    %cst_49 = arith.constant 2.560000e+02 : f32
    %83 = vector.broadcast %cst_49 : f32 to vector<2x1xf32>
    %84 = arith.divf %82, %83 : vector<2x1xf32>
    %85 = arith.mulf %78, %78 : vector<2x256xf32>
    %cst_50 = arith.constant dense<0.000000e+00> : vector<2xf32>
    %86 = vector.multi_reduction <add>, %85, %cst_50 [1] : vector<2x256xf32> to vector<2xf32>
    %87 = vector.shape_cast %86 : vector<2xf32> to vector<2x1xf32>
    %cst_51 = arith.constant 2.560000e+02 : f32
    %88 = vector.broadcast %cst_51 : f32 to vector<2x1xf32>
    %89 = arith.divf %87, %88 : vector<2x1xf32>
    %90 = arith.mulf %84, %84 : vector<2x1xf32>
    %91 = arith.subf %89, %90 : vector<2x1xf32>
    %92 = vector.broadcast %84 : vector<2x1xf32> to vector<2x256xf32>
    %93 = arith.subf %78, %92 : vector<2x256xf32>
    %cst_52 = arith.constant 9.99999974E-6 : f32
    %94 = vector.broadcast %cst_52 : f32 to vector<2x1xf32>
    %95 = arith.addf %91, %94 : vector<2x1xf32>
    %96 = math.rsqrt %95 : vector<2x1xf32>
    %97 = vector.broadcast %96 : vector<2x1xf32> to vector<2x256xf32>
    %98 = arith.mulf %93, %97 : vector<2x256xf32>
    %99 = vector.broadcast %79 : vector<1x256xf32> to vector<2x256xf32>
    %100 = arith.mulf %98, %99 : vector<2x256xf32>
    %101 = vector.broadcast %80 : vector<1x256xf32> to vector<2x256xf32>
    %102 = arith.addf %100, %101 : vector<2x256xf32>
    %cst_53 = arith.constant 0.000000e+00 : f32
    %103 = vector.broadcast %cst_53 : f32 to vector<2x256xf32>
    %104 = arith.maximumf %102, %103 : vector<2x256xf32>
    %c0_54 = arith.constant 0 : index
    %c0_55 = arith.constant 0 : index
    %105 = vector.load %arg16[%c0_54, %c0_55] : memref<256x128xbf16, #tpu.memory_space<vmem>>, vector<256x128xbf16>
    %106 = arith.truncf %104 : vector<2x256xf32> to vector<2x256xbf16>
    %cst_56 = arith.constant dense<0.000000e+00> : vector<2x128xf32>
    %107 = tpu.matmul %106, %105, %cst_56 {dimension_numbers = #tpu.dot_dimension_numbers<[1], [0], [0], [1], [0, 0, 1, 1], [], []>} : vector<2x256xbf16>, vector<256x128xbf16>, vector<2x128xf32> -> vector<2x128xf32>
    %c0_57 = arith.constant 0 : index
    %c0_58 = arith.constant 0 : index
    %108 = vector.load %arg17[%c0_57, %c0_58] : memref<1x128xf32, #tpu.memory_space<vmem>>, vector<1x128xf32>
    %109 = vector.broadcast %108 : vector<1x128xf32> to vector<2x128xf32>
    %110 = arith.addf %107, %109 : vector<2x128xf32>
    %c0_59 = arith.constant 0 : index
    %c0_60 = arith.constant 0 : index
    %111 = vector.load %arg18[%c0_59, %c0_60] : memref<1x128xf32, #tpu.memory_space<vmem>>, vector<1x128xf32>
    %c0_61 = arith.constant 0 : index
    %c0_62 = arith.constant 0 : index
    %112 = vector.load %arg19[%c0_61, %c0_62] : memref<1x128xf32, #tpu.memory_space<vmem>>, vector<1x128xf32>
    %cst_63 = arith.constant dense<0.000000e+00> : vector<2xf32>
    %113 = vector.multi_reduction <add>, %110, %cst_63 [1] : vector<2x128xf32> to vector<2xf32>
    %114 = vector.shape_cast %113 : vector<2xf32> to vector<2x1xf32>
    %cst_64 = arith.constant 1.280000e+02 : f32
    %115 = vector.broadcast %cst_64 : f32 to vector<2x1xf32>
    %116 = arith.divf %114, %115 : vector<2x1xf32>
    %117 = arith.mulf %110, %110 : vector<2x128xf32>
    %cst_65 = arith.constant dense<0.000000e+00> : vector<2xf32>
    %118 = vector.multi_reduction <add>, %117, %cst_65 [1] : vector<2x128xf32> to vector<2xf32>
    %119 = vector.shape_cast %118 : vector<2xf32> to vector<2x1xf32>
    %cst_66 = arith.constant 1.280000e+02 : f32
    %120 = vector.broadcast %cst_66 : f32 to vector<2x1xf32>
    %121 = arith.divf %119, %120 : vector<2x1xf32>
    %122 = arith.mulf %116, %116 : vector<2x1xf32>
    %123 = arith.subf %121, %122 : vector<2x1xf32>
    %124 = vector.broadcast %116 : vector<2x1xf32> to vector<2x128xf32>
    %125 = arith.subf %110, %124 : vector<2x128xf32>
    %cst_67 = arith.constant 9.99999974E-6 : f32
    %126 = vector.broadcast %cst_67 : f32 to vector<2x1xf32>
    %127 = arith.addf %123, %126 : vector<2x1xf32>
    %128 = math.rsqrt %127 : vector<2x1xf32>
    %129 = vector.broadcast %128 : vector<2x1xf32> to vector<2x128xf32>
    %130 = arith.mulf %125, %129 : vector<2x128xf32>
    %131 = vector.broadcast %111 : vector<1x128xf32> to vector<2x128xf32>
    %132 = arith.mulf %130, %131 : vector<2x128xf32>
    %133 = vector.broadcast %112 : vector<1x128xf32> to vector<2x128xf32>
    %134 = arith.addf %132, %133 : vector<2x128xf32>
    %cst_68 = arith.constant 0.000000e+00 : f32
    %135 = vector.broadcast %cst_68 : f32 to vector<2x128xf32>
    %136 = arith.maximumf %134, %135 : vector<2x128xf32>
    %c0_69 = arith.constant 0 : index
    %c0_70 = arith.constant 0 : index
    %137 = vector.load %arg20[%c0_69, %c0_70] : memref<128x512xbf16, #tpu.memory_space<vmem>>, vector<128x512xbf16>
    %138 = arith.truncf %136 : vector<2x128xf32> to vector<2x128xbf16>
    %cst_71 = arith.constant dense<0.000000e+00> : vector<2x512xf32>
    %139 = tpu.matmul %138, %137, %cst_71 {dimension_numbers = #tpu.dot_dimension_numbers<[1], [0], [0], [1], [0, 0, 1, 1], [], []>} : vector<2x128xbf16>, vector<128x512xbf16>, vector<2x512xf32> -> vector<2x512xf32>
    %c0_72 = arith.constant 0 : index
    %c0_73 = arith.constant 0 : index
    %140 = vector.load %arg21[%c0_72, %c0_73] : memref<1x512xf32, #tpu.memory_space<vmem>>, vector<1x512xf32>
    %141 = vector.broadcast %140 : vector<1x512xf32> to vector<2x512xf32>
    %142 = arith.addf %139, %141 : vector<2x512xf32>
    %c0_74 = arith.constant 0 : index
    %c0_75 = arith.constant 0 : index
    %143 = vector.load %arg23[%c0_74, %c0_75] : memref<2x512xf32, #tpu.memory_space<vmem>>, vector<2x512xf32>
    tpu.vector_store %arg23[%c0_74, %c0_75], %142 {strides = array<i32>} : memref<2x512xf32, #tpu.memory_space<vmem>>, vector<2x512xf32>,
    return
  }
}

module attributes {stable_mosaic.version = 11 : i64} {
  func.func @_sdpa_attn_kernel(%arg0: memref<2x8x64xf32, #tpu.memory_space<vmem>>, %arg1: memref<2x8x64xf32, #tpu.memory_space<vmem>>, %arg2: memref<2x8x64xf32, #tpu.memory_space<vmem>>, %arg3: memref<2x512xf32, #tpu.memory_space<vmem>>, %arg4: memref<2x8xf32, #tpu.memory_space<vmem>>, %arg5: memref<8x64x128xbf16, #tpu.memory_space<vmem>>, %arg6: memref<512x128xbf16, #tpu.memory_space<vmem>>, %arg7: memref<1x128xf32, #tpu.memory_space<vmem>>, %arg8: memref<1x128xf32, #tpu.memory_space<vmem>>, %arg9: memref<1x128xf32, #tpu.memory_space<vmem>>, %arg10: memref<128x256xbf16, #tpu.memory_space<vmem>>, %arg11: memref<1x256xf32, #tpu.memory_space<vmem>>, %arg12: memref<1x256xf32, #tpu.memory_space<vmem>>, %arg13: memref<1x256xf32, #tpu.memory_space<vmem>>, %arg14: memref<256x128xbf16, #tpu.memory_space<vmem>>, %arg15: memref<1x128xf32, #tpu.memory_space<vmem>>, %arg16: memref<1x128xf32, #tpu.memory_space<vmem>>, %arg17: memref<1x128xf32, #tpu.memory_space<vmem>>, %arg18: memref<128x64xbf16, #tpu.memory_space<vmem>>, %arg19: memref<1x64xf32, #tpu.memory_space<vmem>>, %arg20: memref<1x64xf32, #tpu.memory_space<vmem>>, %arg21: memref<1x64xf32, #tpu.memory_space<vmem>>, %arg22: memref<64x8xbf16, #tpu.memory_space<vmem>>, %arg23: memref<1x8xf32, #tpu.memory_space<vmem>>, %arg24: memref<2x8xf32, #tpu.memory_space<vmem>>) attributes {dimension_semantics = [], scalar_prefetch = 0 : i64, scratch_operands = 0 : i64, tpu.core_type = #tpu.core_type<tc>} {
    %c0 = arith.constant 0 : index
    %c0_0 = arith.constant 0 : index
    %c0_1 = arith.constant 0 : index
    %0 = vector.load %arg0[%c0, %c0_0, %c0_1] : memref<2x8x64xf32, #tpu.memory_space<vmem>>, vector<2x8x64xf32>
    %1 = arith.truncf %0 : vector<2x8x64xf32> to vector<2x8x64xbf16>
    %c0_2 = arith.constant 0 : index
    %c0_3 = arith.constant 0 : index
    %c0_4 = arith.constant 0 : index
    %2 = vector.load %arg1[%c0_2, %c0_3, %c0_4] : memref<2x8x64xf32, #tpu.memory_space<vmem>>, vector<2x8x64xf32>
    %3 = arith.truncf %2 : vector<2x8x64xf32> to vector<2x8x64xbf16>
    "tpu.trace_start"() <{level = 10 : i32, message = "bnd,bmd->bnm"}> : () -> ()
    %cst = arith.constant dense<0.000000e+00> : vector<2x8x8xf32>
    %4 = tpu.matmul %1, %3, %cst {dimension_numbers = #tpu.dot_dimension_numbers<[2], [2], [1], [1], [0, 0, 0, 1, 1, 1], [0], [0]>} : vector<2x8x64xbf16>, vector<2x8x64xbf16>, vector<2x8x8xf32> -> vector<2x8x8xf32>
    "tpu.trace_stop"() : () -> ()
    %cst_5 = arith.constant 1.250000e-01 : f32
    %5 = vector.broadcast %cst_5 : f32 to vector<2x8x8xf32>
    %6 = arith.mulf %4, %5 : vector<2x8x8xf32>
    %cst_6 = arith.constant dense<0xFF800000> : vector<2x8xf32>
    %7 = vector.multi_reduction <maximumf>, %6, %cst_6 [2] : vector<2x8x8xf32> to vector<2x8xf32>
    %8 = vector.shape_cast %7 : vector<2x8xf32> to vector<2x8x1xf32>
    %9 = vector.broadcast %8 : vector<2x8x1xf32> to vector<2x8x8xf32>
    %10 = arith.subf %6, %9 : vector<2x8x8xf32>
    %11 = math.exp %10 : vector<2x8x8xf32>
    %cst_7 = arith.constant dense<0.000000e+00> : vector<2x8xf32>
    %12 = vector.multi_reduction <add>, %11, %cst_7 [2] : vector<2x8x8xf32> to vector<2x8xf32>
    %13 = vector.shape_cast %12 : vector<2x8xf32> to vector<2x8x1xf32>
    %14 = tpu.reciprocal %13 {approx = true} : vector<2x8x1xf32> -> vector<2x8x1xf32>
    %15 = vector.broadcast %14 : vector<2x8x1xf32> to vector<2x8x8xf32>
    %16 = arith.mulf %11, %15 : vector<2x8x8xf32>
    %17 = arith.truncf %16 : vector<2x8x8xf32> to vector<2x8x8xbf16>
    %c0_8 = arith.constant 0 : index
    %c0_9 = arith.constant 0 : index
    %c0_10 = arith.constant 0 : index
    %18 = vector.load %arg2[%c0_8, %c0_9, %c0_10] : memref<2x8x64xf32, #tpu.memory_space<vmem>>, vector<2x8x64xf32>
    %19 = arith.truncf %18 : vector<2x8x64xf32> to vector<2x8x64xbf16>
    "tpu.trace_start"() <{level = 10 : i32, message = "bnm,bmd->bnd"}> : () -> ()
    %cst_11 = arith.constant dense<0.000000e+00> : vector<2x8x64xf32>
    %20 = tpu.matmul %17, %19, %cst_11 {dimension_numbers = #tpu.dot_dimension_numbers<[2], [1], [1], [2], [0, 0, 0, 1, 1, 2], [0], [0]>} : vector<2x8x8xbf16>, vector<2x8x64xbf16>, vector<2x8x64xf32> -> vector<2x8x64xf32>
    "tpu.trace_stop"() : () -> ()
    %c0_12 = arith.constant 0 : index
    %c0_13 = arith.constant 0 : index
    %21 = vector.load %arg3[%c0_12, %c0_13] : memref<2x512xf32, #tpu.memory_space<vmem>>, vector<2x512xf32>
    %c0_14 = arith.constant 0 : index
    %c0_15 = arith.constant 0 : index
    %22 = vector.load %arg6[%c0_14, %c0_15] : memref<512x128xbf16, #tpu.memory_space<vmem>>, vector<512x128xbf16>
    %23 = arith.truncf %21 : vector<2x512xf32> to vector<2x512xbf16>
    %cst_16 = arith.constant dense<0.000000e+00> : vector<2x128xf32>
    %24 = tpu.matmul %23, %22, %cst_16 {dimension_numbers = #tpu.dot_dimension_numbers<[1], [0], [0], [1], [0, 0, 1, 1], [], []>} : vector<2x512xbf16>, vector<512x128xbf16>, vector<2x128xf32> -> vector<2x128xf32>
    %c0_17 = arith.constant 0 : index
    %c0_18 = arith.constant 0 : index
    %25 = vector.load %arg7[%c0_17, %c0_18] : memref<1x128xf32, #tpu.memory_space<vmem>>, vector<1x128xf32>
    %26 = vector.broadcast %25 : vector<1x128xf32> to vector<2x128xf32>
    %27 = arith.addf %24, %26 : vector<2x128xf32>
    %28 = vector.extract_strided_slice %20 {offsets = [0, 0, 0], sizes = [2, 1, 64], strides = [1, 1, 1]} : vector<2x8x64xf32> to vector<2x1x64xf32>
    %29 = vector.shape_cast %28 : vector<2x1x64xf32> to vector<2x64xf32>
    %c0_19 = arith.constant 0 : index
    %c0_20 = arith.constant 0 : index
    %c0_21 = arith.constant 0 : index
    %30 = vector.load %arg5[%c0_19, %c0_20, %c0_21] : memref<8x64x128xbf16, #tpu.memory_space<vmem>>, vector<1x64x128xbf16>
    %31 = vector.shape_cast %30 : vector<1x64x128xbf16> to vector<64x128xbf16>
    %32 = arith.truncf %29 : vector<2x64xf32> to vector<2x64xbf16>
    %cst_22 = arith.constant dense<0.000000e+00> : vector<2x128xf32>
    %33 = tpu.matmul %32, %31, %cst_22 {dimension_numbers = #tpu.dot_dimension_numbers<[1], [0], [0], [1], [0, 0, 1, 1], [], []>} : vector<2x64xbf16>, vector<64x128xbf16>, vector<2x128xf32> -> vector<2x128xf32>
    %34 = arith.addf %27, %33 : vector<2x128xf32>
    %35 = vector.extract_strided_slice %20 {offsets = [0, 1, 0], sizes = [2, 1, 64], strides = [1, 1, 1]} : vector<2x8x64xf32> to vector<2x1x64xf32>
    %36 = vector.shape_cast %35 : vector<2x1x64xf32> to vector<2x64xf32>
    %c1 = arith.constant 1 : index
    %c0_23 = arith.constant 0 : index
    %c0_24 = arith.constant 0 : index
    %37 = vector.load %arg5[%c1, %c0_23, %c0_24] : memref<8x64x128xbf16, #tpu.memory_space<vmem>>, vector<1x64x128xbf16>
    %38 = vector.shape_cast %37 : vector<1x64x128xbf16> to vector<64x128xbf16>
    %39 = arith.truncf %36 : vector<2x64xf32> to vector<2x64xbf16>
    %cst_25 = arith.constant dense<0.000000e+00> : vector<2x128xf32>
    %40 = tpu.matmul %39, %38, %cst_25 {dimension_numbers = #tpu.dot_dimension_numbers<[1], [0], [0], [1], [0, 0, 1, 1], [], []>} : vector<2x64xbf16>, vector<64x128xbf16>, vector<2x128xf32> -> vector<2x128xf32>
    %41 = arith.addf %34, %40 : vector<2x128xf32>
    %42 = vector.extract_strided_slice %20 {offsets = [0, 2, 0], sizes = [2, 1, 64], strides = [1, 1, 1]} : vector<2x8x64xf32> to vector<2x1x64xf32>
    %43 = vector.shape_cast %42 : vector<2x1x64xf32> to vector<2x64xf32>
    %c2 = arith.constant 2 : index
    %c0_26 = arith.constant 0 : index
    %c0_27 = arith.constant 0 : index
    %44 = vector.load %arg5[%c2, %c0_26, %c0_27] : memref<8x64x128xbf16, #tpu.memory_space<vmem>>, vector<1x64x128xbf16>
    %45 = vector.shape_cast %44 : vector<1x64x128xbf16> to vector<64x128xbf16>
    %46 = arith.truncf %43 : vector<2x64xf32> to vector<2x64xbf16>
    %cst_28 = arith.constant dense<0.000000e+00> : vector<2x128xf32>
    %47 = tpu.matmul %46, %45, %cst_28 {dimension_numbers = #tpu.dot_dimension_numbers<[1], [0], [0], [1], [0, 0, 1, 1], [], []>} : vector<2x64xbf16>, vector<64x128xbf16>, vector<2x128xf32> -> vector<2x128xf32>
    %48 = arith.addf %41, %47 : vector<2x128xf32>
    %49 = vector.extract_strided_slice %20 {offsets = [0, 3, 0], sizes = [2, 1, 64], strides = [1, 1, 1]} : vector<2x8x64xf32> to vector<2x1x64xf32>
    %50 = vector.shape_cast %49 : vector<2x1x64xf32> to vector<2x64xf32>
    %c3 = arith.constant 3 : index
    %c0_29 = arith.constant 0 : index
    %c0_30 = arith.constant 0 : index
    %51 = vector.load %arg5[%c3, %c0_29, %c0_30] : memref<8x64x128xbf16, #tpu.memory_space<vmem>>, vector<1x64x128xbf16>
    %52 = vector.shape_cast %51 : vector<1x64x128xbf16> to vector<64x128xbf16>
    %53 = arith.truncf %50 : vector<2x64xf32> to vector<2x64xbf16>
    %cst_31 = arith.constant dense<0.000000e+00> : vector<2x128xf32>
    %54 = tpu.matmul %53, %52, %cst_31 {dimension_numbers = #tpu.dot_dimension_numbers<[1], [0], [0], [1], [0, 0, 1, 1], [], []>} : vector<2x64xbf16>, vector<64x128xbf16>, vector<2x128xf32> -> vector<2x128xf32>
    %55 = arith.addf %48, %54 : vector<2x128xf32>
    %56 = vector.extract_strided_slice %20 {offsets = [0, 4, 0], sizes = [2, 1, 64], strides = [1, 1, 1]} : vector<2x8x64xf32> to vector<2x1x64xf32>
    %57 = vector.shape_cast %56 : vector<2x1x64xf32> to vector<2x64xf32>
    %c4 = arith.constant 4 : index
    %c0_32 = arith.constant 0 : index
    %c0_33 = arith.constant 0 : index
    %58 = vector.load %arg5[%c4, %c0_32, %c0_33] : memref<8x64x128xbf16, #tpu.memory_space<vmem>>, vector<1x64x128xbf16>
    %59 = vector.shape_cast %58 : vector<1x64x128xbf16> to vector<64x128xbf16>
    %60 = arith.truncf %57 : vector<2x64xf32> to vector<2x64xbf16>
    %cst_34 = arith.constant dense<0.000000e+00> : vector<2x128xf32>
    %61 = tpu.matmul %60, %59, %cst_34 {dimension_numbers = #tpu.dot_dimension_numbers<[1], [0], [0], [1], [0, 0, 1, 1], [], []>} : vector<2x64xbf16>, vector<64x128xbf16>, vector<2x128xf32> -> vector<2x128xf32>
    %62 = arith.addf %55, %61 : vector<2x128xf32>
    %63 = vector.extract_strided_slice %20 {offsets = [0, 5, 0], sizes = [2, 1, 64], strides = [1, 1, 1]} : vector<2x8x64xf32> to vector<2x1x64xf32>
    %64 = vector.shape_cast %63 : vector<2x1x64xf32> to vector<2x64xf32>
    %c5 = arith.constant 5 : index
    %c0_35 = arith.constant 0 : index
    %c0_36 = arith.constant 0 : index
    %65 = vector.load %arg5[%c5, %c0_35, %c0_36] : memref<8x64x128xbf16, #tpu.memory_space<vmem>>, vector<1x64x128xbf16>
    %66 = vector.shape_cast %65 : vector<1x64x128xbf16> to vector<64x128xbf16>
    %67 = arith.truncf %64 : vector<2x64xf32> to vector<2x64xbf16>
    %cst_37 = arith.constant dense<0.000000e+00> : vector<2x128xf32>
    %68 = tpu.matmul %67, %66, %cst_37 {dimension_numbers = #tpu.dot_dimension_numbers<[1], [0], [0], [1], [0, 0, 1, 1], [], []>} : vector<2x64xbf16>, vector<64x128xbf16>, vector<2x128xf32> -> vector<2x128xf32>
    %69 = arith.addf %62, %68 : vector<2x128xf32>
    %70 = vector.extract_strided_slice %20 {offsets = [0, 6, 0], sizes = [2, 1, 64], strides = [1, 1, 1]} : vector<2x8x64xf32> to vector<2x1x64xf32>
    %71 = vector.shape_cast %70 : vector<2x1x64xf32> to vector<2x64xf32>
    %c6 = arith.constant 6 : index
    %c0_38 = arith.constant 0 : index
    %c0_39 = arith.constant 0 : index
    %72 = vector.load %arg5[%c6, %c0_38, %c0_39] : memref<8x64x128xbf16, #tpu.memory_space<vmem>>, vector<1x64x128xbf16>
    %73 = vector.shape_cast %72 : vector<1x64x128xbf16> to vector<64x128xbf16>
    %74 = arith.truncf %71 : vector<2x64xf32> to vector<2x64xbf16>
    %cst_40 = arith.constant dense<0.000000e+00> : vector<2x128xf32>
    %75 = tpu.matmul %74, %73, %cst_40 {dimension_numbers = #tpu.dot_dimension_numbers<[1], [0], [0], [1], [0, 0, 1, 1], [], []>} : vector<2x64xbf16>, vector<64x128xbf16>, vector<2x128xf32> -> vector<2x128xf32>
    %76 = arith.addf %69, %75 : vector<2x128xf32>
    %77 = vector.extract_strided_slice %20 {offsets = [0, 7, 0], sizes = [2, 1, 64], strides = [1, 1, 1]} : vector<2x8x64xf32> to vector<2x1x64xf32>
    %78 = vector.shape_cast %77 : vector<2x1x64xf32> to vector<2x64xf32>
    %c7 = arith.constant 7 : index
    %c0_41 = arith.constant 0 : index
    %c0_42 = arith.constant 0 : index
    %79 = vector.load %arg5[%c7, %c0_41, %c0_42] : memref<8x64x128xbf16, #tpu.memory_space<vmem>>, vector<1x64x128xbf16>
    %80 = vector.shape_cast %79 : vector<1x64x128xbf16> to vector<64x128xbf16>
    %81 = arith.truncf %78 : vector<2x64xf32> to vector<2x64xbf16>
    %cst_43 = arith.constant dense<0.000000e+00> : vector<2x128xf32>
    %82 = tpu.matmul %81, %80, %cst_43 {dimension_numbers = #tpu.dot_dimension_numbers<[1], [0], [0], [1], [0, 0, 1, 1], [], []>} : vector<2x64xbf16>, vector<64x128xbf16>, vector<2x128xf32> -> vector<2x128xf32>
    %83 = arith.addf %76, %82 : vector<2x128xf32>
    %c0_44 = arith.constant 0 : index
    %c0_45 = arith.constant 0 : index
    %84 = vector.load %arg8[%c0_44, %c0_45] : memref<1x128xf32, #tpu.memory_space<vmem>>, vector<1x128xf32>
    %c0_46 = arith.constant 0 : index
    %c0_47 = arith.constant 0 : index
    %85 = vector.load %arg9[%c0_46, %c0_47] : memref<1x128xf32, #tpu.memory_space<vmem>>, vector<1x128xf32>
    %cst_48 = arith.constant dense<0.000000e+00> : vector<2xf32>
    %86 = vector.multi_reduction <add>, %83, %cst_48 [1] : vector<2x128xf32> to vector<2xf32>
    %87 = vector.shape_cast %86 : vector<2xf32> to vector<2x1xf32>
    %cst_49 = arith.constant 1.280000e+02 : f32
    %88 = vector.broadcast %cst_49 : f32 to vector<2x1xf32>
    %89 = arith.divf %87, %88 : vector<2x1xf32>
    %90 = arith.mulf %83, %83 : vector<2x128xf32>
    %cst_50 = arith.constant dense<0.000000e+00> : vector<2xf32>
    %91 = vector.multi_reduction <add>, %90, %cst_50 [1] : vector<2x128xf32> to vector<2xf32>
    %92 = vector.shape_cast %91 : vector<2xf32> to vector<2x1xf32>
    %cst_51 = arith.constant 1.280000e+02 : f32
    %93 = vector.broadcast %cst_51 : f32 to vector<2x1xf32>
    %94 = arith.divf %92, %93 : vector<2x1xf32>
    %95 = arith.mulf %89, %89 : vector<2x1xf32>
    %96 = arith.subf %94, %95 : vector<2x1xf32>
    %97 = vector.broadcast %89 : vector<2x1xf32> to vector<2x128xf32>
    %98 = arith.subf %83, %97 : vector<2x128xf32>
    %cst_52 = arith.constant 9.99999974E-6 : f32
    %99 = vector.broadcast %cst_52 : f32 to vector<2x1xf32>
    %100 = arith.addf %96, %99 : vector<2x1xf32>
    %101 = math.rsqrt %100 : vector<2x1xf32>
    %102 = vector.broadcast %101 : vector<2x1xf32> to vector<2x128xf32>
    %103 = arith.mulf %98, %102 : vector<2x128xf32>
    %104 = vector.broadcast %84 : vector<1x128xf32> to vector<2x128xf32>
    %105 = arith.mulf %103, %104 : vector<2x128xf32>
    %106 = vector.broadcast %85 : vector<1x128xf32> to vector<2x128xf32>
    %107 = arith.addf %105, %106 : vector<2x128xf32>
    %cst_53 = arith.constant 0.000000e+00 : f32
    %108 = vector.broadcast %cst_53 : f32 to vector<2x128xf32>
    %109 = arith.maximumf %107, %108 : vector<2x128xf32>
    %c0_54 = arith.constant 0 : index
    %c0_55 = arith.constant 0 : index
    %110 = vector.load %arg10[%c0_54, %c0_55] : memref<128x256xbf16, #tpu.memory_space<vmem>>, vector<128x256xbf16>
    %111 = arith.truncf %109 : vector<2x128xf32> to vector<2x128xbf16>
    %cst_56 = arith.constant dense<0.000000e+00> : vector<2x256xf32>
    %112 = tpu.matmul %111, %110, %cst_56 {dimension_numbers = #tpu.dot_dimension_numbers<[1], [0], [0], [1], [0, 0, 1, 1], [], []>} : vector<2x128xbf16>, vector<128x256xbf16>, vector<2x256xf32> -> vector<2x256xf32>
    %c0_57 = arith.constant 0 : index
    %c0_58 = arith.constant 0 : index
    %113 = vector.load %arg11[%c0_57, %c0_58] : memref<1x256xf32, #tpu.memory_space<vmem>>, vector<1x256xf32>
    %114 = vector.broadcast %113 : vector<1x256xf32> to vector<2x256xf32>
    %115 = arith.addf %112, %114 : vector<2x256xf32>
    %c0_59 = arith.constant 0 : index
    %c0_60 = arith.constant 0 : index
    %116 = vector.load %arg12[%c0_59, %c0_60] : memref<1x256xf32, #tpu.memory_space<vmem>>, vector<1x256xf32>
    %c0_61 = arith.constant 0 : index
    %c0_62 = arith.constant 0 : index
    %117 = vector.load %arg13[%c0_61, %c0_62] : memref<1x256xf32, #tpu.memory_space<vmem>>, vector<1x256xf32>
    %cst_63 = arith.constant dense<0.000000e+00> : vector<2xf32>
    %118 = vector.multi_reduction <add>, %115, %cst_63 [1] : vector<2x256xf32> to vector<2xf32>
    %119 = vector.shape_cast %118 : vector<2xf32> to vector<2x1xf32>
    %cst_64 = arith.constant 2.560000e+02 : f32
    %120 = vector.broadcast %cst_64 : f32 to vector<2x1xf32>
    %121 = arith.divf %119, %120 : vector<2x1xf32>
    %122 = arith.mulf %115, %115 : vector<2x256xf32>
    %cst_65 = arith.constant dense<0.000000e+00> : vector<2xf32>
    %123 = vector.multi_reduction <add>, %122, %cst_65 [1] : vector<2x256xf32> to vector<2xf32>
    %124 = vector.shape_cast %123 : vector<2xf32> to vector<2x1xf32>
    %cst_66 = arith.constant 2.560000e+02 : f32
    %125 = vector.broadcast %cst_66 : f32 to vector<2x1xf32>
    %126 = arith.divf %124, %125 : vector<2x1xf32>
    %127 = arith.mulf %121, %121 : vector<2x1xf32>
    %128 = arith.subf %126, %127 : vector<2x1xf32>
    %129 = vector.broadcast %121 : vector<2x1xf32> to vector<2x256xf32>
    %130 = arith.subf %115, %129 : vector<2x256xf32>
    %cst_67 = arith.constant 9.99999974E-6 : f32
    %131 = vector.broadcast %cst_67 : f32 to vector<2x1xf32>
    %132 = arith.addf %128, %131 : vector<2x1xf32>
    %133 = math.rsqrt %132 : vector<2x1xf32>
    %134 = vector.broadcast %133 : vector<2x1xf32> to vector<2x256xf32>
    %135 = arith.mulf %130, %134 : vector<2x256xf32>
    %136 = vector.broadcast %116 : vector<1x256xf32> to vector<2x256xf32>
    %137 = arith.mulf %135, %136 : vector<2x256xf32>
    %138 = vector.broadcast %117 : vector<1x256xf32> to vector<2x256xf32>
    %139 = arith.addf %137, %138 : vector<2x256xf32>
    %cst_68 = arith.constant 0.000000e+00 : f32
    %140 = vector.broadcast %cst_68 : f32 to vector<2x256xf32>
    %141 = arith.maximumf %139, %140 : vector<2x256xf32>
    %c0_69 = arith.constant 0 : index
    %c0_70 = arith.constant 0 : index
    %142 = vector.load %arg14[%c0_69, %c0_70] : memref<256x128xbf16, #tpu.memory_space<vmem>>, vector<256x128xbf16>
    %143 = arith.truncf %141 : vector<2x256xf32> to vector<2x256xbf16>
    %cst_71 = arith.constant dense<0.000000e+00> : vector<2x128xf32>
    %144 = tpu.matmul %143, %142, %cst_71 {dimension_numbers = #tpu.dot_dimension_numbers<[1], [0], [0], [1], [0, 0, 1, 1], [], []>} : vector<2x256xbf16>, vector<256x128xbf16>, vector<2x128xf32> -> vector<2x128xf32>
    %c0_72 = arith.constant 0 : index
    %c0_73 = arith.constant 0 : index
    %145 = vector.load %arg15[%c0_72, %c0_73] : memref<1x128xf32, #tpu.memory_space<vmem>>, vector<1x128xf32>
    %146 = vector.broadcast %145 : vector<1x128xf32> to vector<2x128xf32>
    %147 = arith.addf %144, %146 : vector<2x128xf32>
    %c0_74 = arith.constant 0 : index
    %c0_75 = arith.constant 0 : index
    %148 = vector.load %arg16[%c0_74, %c0_75] : memref<1x128xf32, #tpu.memory_space<vmem>>, vector<1x128xf32>
    %c0_76 = arith.constant 0 : index
    %c0_77 = arith.constant 0 : index
    %149 = vector.load %arg17[%c0_76, %c0_77] : memref<1x128xf32, #tpu.memory_space<vmem>>, vector<1x128xf32>
    %cst_78 = arith.constant dense<0.000000e+00> : vector<2xf32>
    %150 = vector.multi_reduction <add>, %147, %cst_78 [1] : vector<2x128xf32> to vector<2xf32>
    %151 = vector.shape_cast %150 : vector<2xf32> to vector<2x1xf32>
    %cst_79 = arith.constant 1.280000e+02 : f32
    %152 = vector.broadcast %cst_79 : f32 to vector<2x1xf32>
    %153 = arith.divf %151, %152 : vector<2x1xf32>
    %154 = arith.mulf %147, %147 : vector<2x128xf32>
    %cst_80 = arith.constant dense<0.000000e+00> : vector<2xf32>
    %155 = vector.multi_reduction <add>, %154, %cst_80 [1] : vector<2x128xf32> to vector<2xf32>
    %156 = vector.shape_cast %155 : vector<2xf32> to vector<2x1xf32>
    %cst_81 = arith.constant 1.280000e+02 : f32
    %157 = vector.broadcast %cst_81 : f32 to vector<2x1xf32>
    %158 = arith.divf %156, %157 : vector<2x1xf32>
    %159 = arith.mulf %153, %153 : vector<2x1xf32>
    %160 = arith.subf %158, %159 : vector<2x1xf32>
    %161 = vector.broadcast %153 : vector<2x1xf32> to vector<2x128xf32>
    %162 = arith.subf %147, %161 : vector<2x128xf32>
    %cst_82 = arith.constant 9.99999974E-6 : f32
    %163 = vector.broadcast %cst_82 : f32 to vector<2x1xf32>
    %164 = arith.addf %160, %163 : vector<2x1xf32>
    %165 = math.rsqrt %164 : vector<2x1xf32>
    %166 = vector.broadcast %165 : vector<2x1xf32> to vector<2x128xf32>
    %167 = arith.mulf %162, %166 : vector<2x128xf32>
    %168 = vector.broadcast %148 : vector<1x128xf32> to vector<2x128xf32>
    %169 = arith.mulf %167, %168 : vector<2x128xf32>
    %170 = vector.broadcast %149 : vector<1x128xf32> to vector<2x128xf32>
    %171 = arith.addf %169, %170 : vector<2x128xf32>
    %cst_83 = arith.constant 0.000000e+00 : f32
    %172 = vector.broadcast %cst_83 : f32 to vector<2x128xf32>
    %173 = arith.maximumf %171, %172 : vector<2x128xf32>
    %c0_84 = arith.constant 0 : index
    %c0_85 = arith.constant 0 : index
    %174 = vector.load %arg18[%c0_84, %c0_85] : memref<128x64xbf16, #tpu.memory_space<vmem>>, vector<128x64xbf16>
    %175 = arith.truncf %173 : vector<2x128xf32> to vector<2x128xbf16>
    %cst_86 = arith.constant dense<0.000000e+00> : vector<2x64xf32>
    %176 = tpu.matmul %175, %174, %cst_86 {dimension_numbers = #tpu.dot_dimension_numbers<[1], [0], [0], [1], [0, 0, 1, 1], [], []>} : vector<2x128xbf16>, vector<128x64xbf16>, vector<2x64xf32> -> vector<2x64xf32>
    %c0_87 = arith.constant 0 : index
    %c0_88 = arith.constant 0 : index
    %177 = vector.load %arg19[%c0_87, %c0_88] : memref<1x64xf32, #tpu.memory_space<vmem>>, vector<1x64xf32>
    %178 = vector.broadcast %177 : vector<1x64xf32> to vector<2x64xf32>
    %179 = arith.addf %176, %178 : vector<2x64xf32>
    %c0_89 = arith.constant 0 : index
    %c0_90 = arith.constant 0 : index
    %180 = vector.load %arg20[%c0_89, %c0_90] : memref<1x64xf32, #tpu.memory_space<vmem>>, vector<1x64xf32>
    %c0_91 = arith.constant 0 : index
    %c0_92 = arith.constant 0 : index
    %181 = vector.load %arg21[%c0_91, %c0_92] : memref<1x64xf32, #tpu.memory_space<vmem>>, vector<1x64xf32>
    %cst_93 = arith.constant dense<0.000000e+00> : vector<2xf32>
    %182 = vector.multi_reduction <add>, %179, %cst_93 [1] : vector<2x64xf32> to vector<2xf32>
    %183 = vector.shape_cast %182 : vector<2xf32> to vector<2x1xf32>
    %cst_94 = arith.constant 6.400000e+01 : f32
    %184 = vector.broadcast %cst_94 : f32 to vector<2x1xf32>
    %185 = arith.divf %183, %184 : vector<2x1xf32>
    %186 = arith.mulf %179, %179 : vector<2x64xf32>
    %cst_95 = arith.constant dense<0.000000e+00> : vector<2xf32>
    %187 = vector.multi_reduction <add>, %186, %cst_95 [1] : vector<2x64xf32> to vector<2xf32>
    %188 = vector.shape_cast %187 : vector<2xf32> to vector<2x1xf32>
    %cst_96 = arith.constant 6.400000e+01 : f32
    %189 = vector.broadcast %cst_96 : f32 to vector<2x1xf32>
    %190 = arith.divf %188, %189 : vector<2x1xf32>
    %191 = arith.mulf %185, %185 : vector<2x1xf32>
    %192 = arith.subf %190, %191 : vector<2x1xf32>
    %193 = vector.broadcast %185 : vector<2x1xf32> to vector<2x64xf32>
    %194 = arith.subf %179, %193 : vector<2x64xf32>
    %cst_97 = arith.constant 9.99999974E-6 : f32
    %195 = vector.broadcast %cst_97 : f32 to vector<2x1xf32>
    %196 = arith.addf %192, %195 : vector<2x1xf32>
    %197 = math.rsqrt %196 : vector<2x1xf32>
    %198 = vector.broadcast %197 : vector<2x1xf32> to vector<2x64xf32>
    %199 = arith.mulf %194, %198 : vector<2x64xf32>
    %200 = vector.broadcast %180 : vector<1x64xf32> to vector<2x64xf32>
    %201 = arith.mulf %199, %200 : vector<2x64xf32>
    %202 = vector.broadcast %181 : vector<1x64xf32> to vector<2x64xf32>
    %203 = arith.addf %201, %202 : vector<2x64xf32>
    %cst_98 = arith.constant 0.000000e+00 : f32
    %204 = vector.broadcast %cst_98 : f32 to vector<2x64xf32>
    %205 = arith.maximumf %203, %204 : vector<2x64xf32>
    %c0_99 = arith.constant 0 : index
    %c0_100 = arith.constant 0 : index
    %206 = vector.load %arg22[%c0_99, %c0_100] : memref<64x8xbf16, #tpu.memory_space<vmem>>, vector<64x8xbf16>
    %207 = arith.truncf %205 : vector<2x64xf32> to vector<2x64xbf16>
    %cst_101 = arith.constant dense<0.000000e+00> : vector<2x8xf32>
    %208 = tpu.matmul %207, %206, %cst_101 {dimension_numbers = #tpu.dot_dimension_numbers<[1], [0], [0], [1], [0, 0, 1, 1], [], []>} : vector<2x64xbf16>, vector<64x8xbf16>, vector<2x8xf32> -> vector<2x8xf32>
    %c0_102 = arith.constant 0 : index
    %c0_103 = arith.constant 0 : index
    %209 = vector.load %arg23[%c0_102, %c0_103] : memref<1x8xf32, #tpu.memory_space<vmem>>, vector<1x8xf32>
    %210 = vector.broadcast %209 : vector<1x8xf32> to vector<2x8xf32>
    %211 = arith.addf %208, %210 : vector<2x8xf32>
    %c0_104 = arith.constant 0 : index
    %c0_105 = arith.constant 0 : index
    %212 = vector.load %arg4[%c0_104, %c0_105] : memref<2x8xf32, #tpu.memory_space<vmem>>, vector<2x8xf32>
    %cst_106 = arith.constant 0.000000e+00 : f32
    %213 = vector.broadcast %cst_106 : f32 to vector<2x8xf32>
    %214 = arith.cmpf oeq, %212, %213 : vector<2x8xf32>
    %cst_107 = arith.constant -9.99999997E-7 : f32
    %215 = vector.broadcast %cst_107 : f32 to vector<2x8xf32>
    %216 = arith.select %214, %215, %211 : vector<2x8xi1>, vector<2x8xf32>
    %c0_108 = arith.constant 0 : index
    %c0_109 = arith.constant 0 : index
    %217 = vector.load %arg24[%c0_108, %c0_109] : memref<2x8xf32, #tpu.memory_space<vmem>>, vector<2x8xf32>
    tpu.vector_store %arg24[%c0_108, %c0_109], %216 {strides = array<i32>} : memref<2x8xf32, #tpu.memory_space<vmem>>, vector<2x8xf32>,
    return
  }
}

module attributes {stable_mosaic.version = 11 : i64} {
  func.func @_context_kernel(%arg0: memref<2x8xf32, #tpu.memory_space<vmem>>, %arg1: memref<2x8x256xf32, #tpu.memory_space<vmem>>, %arg2: memref<2x8x256xf32, #tpu.memory_space<vmem>>, %arg3: memref<2x256xf32, #tpu.memory_space<vmem>>, %arg4: memref<2x256xf32, #tpu.memory_space<vmem>>) attributes {dimension_semantics = [], scalar_prefetch = 0 : i64, scratch_operands = 0 : i64, tpu.core_type = #tpu.core_type<tc>} {
    %c0 = arith.constant 0 : index
    %c0_0 = arith.constant 0 : index
    %0 = vector.load %arg0[%c0, %c0_0] : memref<2x8xf32, #tpu.memory_space<vmem>>, vector<2x8xf32>
    %1 = vector.shape_cast %0 : vector<2x8xf32> to vector<2x8x1xf32>
    %c0_1 = arith.constant 0 : index
    %c0_2 = arith.constant 0 : index
    %c0_3 = arith.constant 0 : index
    %2 = vector.load %arg1[%c0_1, %c0_2, %c0_3] : memref<2x8x256xf32, #tpu.memory_space<vmem>>, vector<2x8x256xf32>
    %3 = vector.broadcast %1 : vector<2x8x1xf32> to vector<2x8x256xf32>
    %4 = arith.mulf %2, %3 : vector<2x8x256xf32>
    %cst = arith.constant dense<0.000000e+00> : vector<2x256xf32>
    %5 = vector.multi_reduction <add>, %4, %cst [1] : vector<2x8x256xf32> to vector<2x256xf32>
    %c0_4 = arith.constant 0 : index
    %c0_5 = arith.constant 0 : index
    %6 = vector.load %arg3[%c0_4, %c0_5] : memref<2x256xf32, #tpu.memory_space<vmem>>, vector<2x256xf32>
    tpu.vector_store %arg3[%c0_4, %c0_5], %5 {strides = array<i32>} : memref<2x256xf32, #tpu.memory_space<vmem>>, vector<2x256xf32>,
    %c0_6 = arith.constant 0 : index
    %c0_7 = arith.constant 0 : index
    %c0_8 = arith.constant 0 : index
    %7 = vector.load %arg2[%c0_6, %c0_7, %c0_8] : memref<2x8x256xf32, #tpu.memory_space<vmem>>, vector<2x8x256xf32>
    %8 = vector.broadcast %1 : vector<2x8x1xf32> to vector<2x8x256xf32>
    %9 = arith.mulf %7, %8 : vector<2x8x256xf32>
    %cst_9 = arith.constant dense<0.000000e+00> : vector<2x256xf32>
    %10 = vector.multi_reduction <add>, %9, %cst_9 [1] : vector<2x8x256xf32> to vector<2x256xf32>
    %c0_10 = arith.constant 0 : index
    %c0_11 = arith.constant 0 : index
    %11 = vector.load %arg4[%c0_10, %c0_11] : memref<2x256xf32, #tpu.memory_space<vmem>>, vector<2x256xf32>
    tpu.vector_store %arg4[%c0_10, %c0_11], %10 {strides = array<i32>} : memref<2x256xf32, #tpu.memory_space<vmem>>, vector<2x256xf32>,
    return
  }
}

</mosaic_0001>

<bundles_post_ra>
// kernel: obstacle_head_forward.5
= control target key start
LH: loop header
LB: loop body
LE: loop exit
PB: predicated region body
PF: predicated region fallthrough
CT: control target
= control target key end

     0   :  { %8 = vsyncpa [#allocation3], 0  ;;  %s338_s15 = smov [#allocation2]   ;;  %s437_s0 = inlined_call_operand.vmem [shape: f32[18,256], index: 0, kind: input, shape index: {}]   ;;  %s438_s1 = inlined_call_operand.vmem [shape: bf16[256,128], index: 1, kind: input, shape index: {}]   ;;  %s439_s2 = inlined_call_operand.hbm [shape: f32[1,128], index: 2, kind: input, shape index: {}]   ;;  %s440_s3 = inlined_call_operand.vmem [shape: f32[18,128], index: 3, kind: output, shape index: {}]  }
   0x1   :  { %s18_s14 = sshll.u32 %s439_s2, 4  ;;  %s20_s16 = sshll.u32 %s338_s15, 4  ;;  %s19_s14 = int_to_ptr.hbm [resolvable:$true] %s18_s14  ;;  %s21_s16 = int_to_ptr.vmem [resolvable:$true] %s20_s16 }
   0x2   :  { %23 = dma.hbm_to_vmem [thread:$0]  %s19_s14, 16, %s21_s16, [#allocation3]  }
   0x3   :  { %336 = dma.done.wait [#allocation3], 16  }
   0x4   :  { %337 = vsyncadd [#allocation3], 4294967280  ;;  %v285_v0 = vld [vmem:[%s438_s1 + $0x38] sm:$0xff]  ;;  %v284_v2 = vld [vmem:[%s438_s1 + $0x30] sm:$0xff] }
   0x5   :  { %v293_v1 = vld [vmem:[%s438_s1 + $0x78] sm:$0xff]  ;;  %170 = vmatpush.bf16.msra.mxu0 %v285_v0  ;;  %294 = vmatpush.bf16.msra.mxu2 %v285_v0  ;;  %v292_v3 = vld [vmem:[%s438_s1 + $0x70] sm:$0xff]  ;;  %v283_v4 = vld [vmem:[%s438_s1 + $0x28] sm:$0xff] }
   0x6   :  { %188 = vmatpush.bf16.msra.mxu1 %v293_v1  ;;  %302 = vmatpush.bf16.msra.mxu3 %v293_v1  ;;  %v291_v5 = vld [vmem:[%s438_s1 + $0x68] sm:$0xff]  ;;  %v282_v6 = vld [vmem:[%s438_s1 + $0x20] sm:$0xff]  ;;  %v281_v8 = vld [vmem:[%s438_s1 + $0x18] sm:$0xff] }
   0x7   :  { %v290_v7 = vld [vmem:[%s438_s1 + $0x60] sm:$0xff]  ;;  %v289_v9 = vld [vmem:[%s438_s1 + $0x58] sm:$0xff]  ;;  %v280_v10 = vld [vmem:[%s438_s1 + $0x10] sm:$0xff] }
   0x8   :  { %v288_v11 = vld [vmem:[%s438_s1 + $0x50] sm:$0xff]  ;;  %v279_v12 = vld [vmem:[%s438_s1 + $0x8] sm:$0xff]  ;;  %v278_v14 = vld [vmem:[%s438_s1] sm:$0xff] }
   0x9   :  { %171 = vmatpush.bf16.msra.mxu0 %v284_v2  ;;  %295 = vmatpush.bf16.msra.mxu2 %v284_v2  ;;  %v287_v13 = vld [vmem:[%s438_s1 + $0x48] sm:$0xff]  ;;  %v286_v15 = vld [vmem:[%s438_s1 + $0x40] sm:$0xff]  ;;  %v30_v17 = vld [vmem:[%s437_s0 + $0x10] sm:$0xff] }
   0xa   :  { %189 = vmatpush.bf16.msra.mxu1 %v292_v3  ;;  %303 = vmatpush.bf16.msra.mxu3 %v292_v3  ;;  %v28_v16 = vld [vmem:[%s437_s0] sm:$0xff]  ;;  %v29_v19 = vld [vmem:[%s437_s0 + $0x8] sm:$0xff]  ;;  %v31_v20 = vld [vmem:[%s437_s0 + $0x18] sm:$0xff] }
   0xb   :  { %v32_v18 = vld [vmem:[%s437_s0 + $0x20] sm:$0x3]  ;;  %v33_v21 = vld [vmem:[%s437_s0 + $0x28] sm:$0x3]  ;;  %v66_v22 = vpack.c.bf16 %v30_v17, %v28_v16  ;;  %v67_v24 = vpack.c.bf16 %v31_v20, %v29_v19 }
   0xc   :  { %v68_v23 = vpack.c.bf16 %v32_v18, %v32_v18  ;;  %v69_v25 = vpack.c.bf16 %v33_v21, %v33_v21  ;;  %v311_v26 = vld [vmem:[#allocation2] ss:$0 sm:$0xff] }
   0xd   :  { %172 = vmatpush.bf16.msra.mxu0 %v283_v4  ;;  %296 = vmatpush.bf16.msra.mxu2 %v283_v4 }
   0xe   :  { %190 = vmatpush.bf16.msra.mxu1 %v291_v5  ;;  %304 = vmatpush.bf16.msra.mxu3 %v291_v5 }
  0x11   :  { %173 = vmatpush.bf16.msra.mxu0 %v282_v6  ;;  %297 = vmatpush.bf16.msra.mxu2 %v282_v6 }
  0x12   :  { %191 = vmatpush.bf16.msra.mxu1 %v290_v7  ;;  %305 = vmatpush.bf16.msra.mxu3 %v290_v7 }
  0x15   :  { %174 = vmatpush.bf16.msra.mxu0 %v281_v8  ;;  %298 = vmatpush.bf16.msra.mxu2 %v281_v8 }
  0x16   :  { %192 = vmatpush.bf16.msra.mxu1 %v289_v9  ;;  %306 = vmatpush.bf16.msra.mxu3 %v289_v9 }
  0x19   :  { %175 = vmatpush.bf16.msra.mxu0 %v280_v10  ;;  %299 = vmatpush.bf16.msra.mxu2 %v280_v10 }
  0x1a   :  { %193 = vmatpush.bf16.msra.mxu1 %v288_v11  ;;  %307 = vmatpush.bf16.msra.mxu3 %v288_v11 }
  0x1d   :  { %176 = vmatpush.bf16.msra.mxu0 %v279_v12  ;;  %300 = vmatpush.bf16.msra.mxu2 %v279_v12 }
  0x1e   :  { %194 = vmatpush.bf16.msra.mxu1 %v287_v13  ;;  %308 = vmatpush.bf16.msra.mxu3 %v287_v13 }
  0x21   :  { %177 = vmatpush.bf16.msra.mxu0 %v278_v14  ;;  %301 = vmatpush.bf16.msra.mxu2 %v278_v14 }
  0x22   :  { %195 = vmatpush.bf16.msra.mxu1 %v286_v15  ;;  %309 = vmatpush.bf16.msra.mxu3 %v286_v15 }
  0x24   :  { %178 = vmatmul.bf16.vlgmr.msra.gmra.mxu0 %v66_v22  ;;  %183 = vmatmul.bf16.vlgmr.msra.gmra.mxu2 %v68_v23 }
  0x25   :  { %196 = vmatmul.bf16.vlgmr.msra.gmra.mxu1 %v67_v24  ;;  %201 = vmatmul.bf16.vlgmr.msra.gmra.mxu3 %v69_v25 }
  0xa1   :  { %v179_v27 = vpop.f32.mrf.mxu0 }
  0xa2   :  { %v180_v28 = vadd.f32 %v311_v26, %v179_v27  ;;  %v197_v29 = vpop.f32.mrf.mxu1 }
  0xa4   :  { %v198_v30 = vadd.f32 %v197_v29, %v180_v28 }
  0xa6   :  { %206 = vst [vmem:[%s440_s3] sm:$0xff] %v198_v30 }
  0xa7   :  { %v184_v31 = vpop.f32.mrf.mxu2 }
  0xa8   :  { %v185_v32 = vadd.f32 %v311_v26, %v184_v31  ;;  %v202_v33 = vpop.f32.mrf.mxu3 }
  0xa9   :  { %v181_v34 = vpop.f32.mrf.mxu0 }
  0xaa   :  { %v203_v35 = vadd.f32 %v202_v33, %v185_v32  ;;  %v182_v36 = vadd.f32 %v311_v26, %v181_v34  ;;  %v199_v37 = vpop.f32.mrf.mxu1 }
  0xac   :  { %208 = vst [vmem:[%s440_s3 + $0x10] sm:$0x3] %v203_v35  ;;  %v200_v38 = vadd.f32 %v199_v37, %v182_v36 }
  0xae   :  { %207 = vst [vmem:[%s440_s3 + $0x8] sm:$0xff] %v200_v38 }
  0xaf   :  { %v186_v39 = vpop.f32.mrf.mxu2 }
  0xb0   :  { %v204_v40 = vpop.f32.mrf.mxu3 }
  0xb1   :  { %213 = vsyncpa [#allocation3], 1 }

// kernel: obstacle_head_forward.7
= control target key start
LH: loop header
LB: loop body
LE: loop exit
PB: predicated region body
PF: predicated region fallthrough
CT: control target
= control target key end

     0   :  { %vm108_vm0 = vcmask 1040384   ;;  %vm192_vm1 = vcmask 1043456   ;;  %v165_v48 = vlaneseq  ;;  %vm169_vm3 = vcmask 1041409   ;;  %s1219_s1 = inlined_call_operand.vmem [shape: f32[2,1,256], index: 1, kind: input, shape index: {}]   ;;  %s1220_s2 = inlined_call_operand.vmem [shape: f32[2,8,256], index: 2, kind: input, shape index: {}]   ;;  %s1221_s0 = inlined_call_operand.vmem [shape: f32[2,8,256], index: 0, kind: input, shape index: {}]   ;;  %s1222_s3 = inlined_call_operand.vmem [shape: bf16[8,64], index: 3, kind: input, shape index: {}]   ;;  %s1223_s4 = inlined_call_operand.vmem [shape: bf16[8,64], index: 4, kind: input, shape index: {}]   ;;  %s1224_s5 = inlined_call_operand.vmem [shape: f32[1,64], index: 5, kind: input, shape index: {}]   ;;  %s1225_s6 = inlined_call_operand.vmem [shape: f32[1,64], index: 6, kind: input, shape index: {}]   ;;  %s1226_s7 = inlined_call_operand.vmem [shape: f32[1,64], index: 7, kind: input, shape index: {}]   ;;  %s1227_s9 = inlined_call_operand.vmem [shape: f32[1,128], index: 9, kind: input, shape index: {}]   ;;  %s1228_s8 = inlined_call_operand.vmem [shape: bf16[64,128], index: 8, kind: input, shape index: {}]   ;;  %s1229_s10 = inlined_call_operand.vmem [shape: f32[1,128], index: 10, kind: input, shape index: {}]   ;;  %s1230_s11 = inlined_call_operand.vmem [shape: f32[1,128], index: 11, kind: input, shape index: {}]   ;;  %s1231_s13 = inlined_call_operand.vmem [shape: f32[1,64], index: 13, kind: input, shape index: {}]   ;;  %s1232_s12 = inlined_call_operand.vmem [shape: bf16[128,64], index: 12, kind: input, shape index: {}]   ;;  %s1233_s14 = inlined_call_operand.vmem [shape: f32[1,64], index: 14, kind: input, shape index: {}]   ;;  %s1234_s15 = inlined_call_operand.vmem [shape: f32[1,64], index: 15, kind: input, shape index: {}]   ;;  %s1235_s16 = inlined_call_operand.vmem [shape: bf16[64,512], index: 16, kind: input, shape index: {}]   ;;  %s1236_s19 = inlined_call_operand.vmem [shape: f32[2,8], index: 19, kind: output, shape index: {1}]   ;;  %s1237_s17 = inlined_call_operand.vmem [shape: f32[1,512], index: 17, kind: input, shape index: {}]   ;;  %s1238_s18 = inlined_call_operand.vmem [shape: f32[2,512], index: 18, kind: output, shape index: {0}]  }
   0x1   :  { %1242 = sst [smem:[#allocation2_spill]] %s1219_s1  ;;  %v177_v45 = vld [vmem:[%s1223_s4] sm:$0xf]  ;;  %vm188_vm6 = vcmask 64512   ;;  %vm243_vm12 = vcmask 517120  }
   0x2   :  { %1243 = sst [smem:[#allocation3_spill]] %s1220_s2  ;;  %v194_v47 = vsel %vm192_vm1, %v177_v45, 0  ;;  %v1009_v55 = vand.u32 127, %v165_v48  ;;  %v803_v48 = vld [vmem:[%s1228_s8 + $0x18] sm:$0xff] }
   0x3   :  { %1244 = sst [smem:[#allocation4_spill]] %s1221_s0  ;;  %203 = vmatpush.bf16.msra.mxu0 %v194_v47  ;;  %329 = vmatpush.bf16.msra.mxu2 %v803_v48 }
   0x4   :  { %1245 = sst [smem:[#allocation5_spill]] %s1222_s3 }
   0x5   :  { %s1246_s20 = sld [smem:[#allocation2_spill]] }
   0x6   :  { %s1247_s22 = sld [smem:[#allocation3_spill]] }
   0x7   :  { %s1248_s30 = sld [smem:[#allocation4_spill]] }
   0x8   :  { %s1249_s3 = sld [smem:[#allocation5_spill]] }
   0xb   :  { %v66_v0 = vld [vmem:[%s1246_s20] sm:$0x3]  ;;  %v67_v6 = vld [vmem:[%s1246_s20 + $0x2] sm:$0x3] }
   0xc   :  { %v68_v1 = vld [vmem:[%s1247_s22] sm:$0xff]  ;;  %v69_v2 = vld [vmem:[%s1247_s22 + $0x8] sm:$0xff]  ;;  %v74_v3 = vperm.slane %v66_v0, 0  ;;  %v75_v4 = vperm.slane %v66_v0, 1  ;;  %v76_v7 = vperm.slane %v67_v6, 0  ;;  %v77_v8 = vperm.slane %v67_v6, 1 }
   0xd   :  { %v102_v5 = vadd.f32 %v69_v2, %v68_v1  ;;  %v70_v13 = vld [vmem:[%s1247_s22 + $0x10] sm:$0xff]  ;;  %v71_v14 = vld [vmem:[%s1247_s22 + $0x18] sm:$0xff]  ;;  %v992_v28 = vld [vmem:[%s1248_s30] sm:$0xff] }
   0xe   :  { %v109_v9 = vsel %vm108_vm0, %v74_v3, 0.0  ;;  %v110_v10 = vsel %vm108_vm0, %v75_v4, 0.0  ;;  %v92_v11 = vmul.f32 %v74_v3, %v68_v1  ;;  %v93_v12 = vmul.f32 %v75_v4, %v69_v2  ;;  %v980_v22 = vld [vmem:[%s1248_s30 + $0x10] sm:$0xff]  ;;  %v985_v23 = vld [vmem:[%s1248_s30 + $0x18] sm:$0xff]  ;;  %v997_v29 = vld [vmem:[%s1248_s30 + $0x8] sm:$0xff] }
   0xf   :  { %103 = vadd.xlane.f32.xlu1 %v102_v5  ;;  %v111_v15 = vadd.f32 %v110_v10, %v109_v9  ;;  %v105_v17 = vadd.f32 %v71_v14, %v70_v13  ;;  %v114_v18 = vsel %vm108_vm0, %v76_v7, 0.0  ;;  %v115_v19 = vsel %vm108_vm0, %v77_v8, 0.0  ;;  %v174_v38 = vld [vmem:[%s1249_s3] sm:$0xf] }
  0x10   :  { %v96_v16 = vadd.f32 %v93_v12, %v92_v11  ;;  %v94_v20 = vmul.f32 %v76_v7, %v70_v13  ;;  %v95_v21 = vmul.f32 %v77_v8, %v71_v14  ;;  %v116_v24 = vadd.f32 %v115_v19, %v114_v18 }
  0x11   :  { %112 = vadd.xlane.f32.xlu0 %v111_v15  ;;  %v84_v26 = vmul.f32 %v76_v7, %v980_v22  ;;  %v85_v27 = vmul.f32 %v77_v8, %v985_v23  ;;  %v82_v30 = vmul.f32 %v74_v3, %v992_v28  ;;  %v83_v31 = vmul.f32 %v75_v4, %v997_v29 }
  0x12   :  { %97 = vadd.xlane.f32.xlu2 %v96_v16  ;;  %v99_v25 = vadd.f32 %v95_v21, %v94_v20  ;;  %v221_v40 = vsel %vm192_vm1, %v174_v38, 0 }
  0x13   :  { %v89_v32 = vadd.f32 %v85_v27, %v84_v26  ;;  %v86_v33 = vadd.f32 %v83_v31, %v82_v30  ;;  %230 = vmatpush.bf16.msra.mxu1 %v221_v40 }
  0x17   :  { %106 = vadd.xlane.f32.xlu1 %v105_v17 }
  0x19   :  { %117 = vadd.xlane.f32.xlu0 %v116_v24 }
  0x1a   :  { %100 = vadd.xlane.f32.xlu2 %v99_v25 }
  0x1f   :  { %90 = vadd.xlane.f32.xlu1 %v89_v32 }
  0x21   :  { %87 = vadd.xlane.f32.xlu0 %v86_v33 }
  0x82   :  { %v104_v34 = vpop.xlane.xlu1 %103 }
  0x84   :  { %v113_v35 = vpop.xlane.xlu0 %112 }
  0x85   :  { %v119_v36 = vperm.slane %v113_v35, 0  ;;  %v98_v37 = vpop.xlane.xlu2 %97 }
  0x87   :  { %v121_v39 = vadd.f32 %v119_v36, %v104_v34  ;;  %v830_v36 = vld [vmem:[%s1224_s5] ss:$0 sm:$0xff] }
  0x89   :  { %v123_v41 = vsub.f32 %v121_v39, %v98_v37 }
  0x8a   :  { %v107_v42 = vpop.xlane.xlu1 %106 }
  0x8b   :  { %v125_v43 = vadd.f32 1e-08, %v123_v41 }
  0x8c   :  { %v118_v44 = vpop.xlane.xlu0 %117 }
  0x8d   :  { %839 = vrcp.f32 %v125_v43  ;;  %v120_v46 = vperm.slane %v118_v44, 0  ;;  %v101_v49 = vpop.xlane.xlu2 %100  ;;  %v138_v1 = vand.u32 2147483648, %v125_v43  ;;  %v136_v2 = vand.u32 2147483647, %v125_v43 }
  0x8e   :  { %vm132_vm4 = vweird.f32 %v125_v43  ;;  %v853_v44 = vmov 64.0  }
  0x8f   :  { %v122_v50 = vadd.f32 %v120_v46, %v107_v42  ;;  %v139_v8 = vor.u32 1.1754944e-38, %v138_v1  ;;  %vm137_vm7 = vcmp.eq.f32.partialorder %v136_v2, 8.507059e+37 }
  0x91   :  { %v124_v52 = vsub.f32 %v122_v50, %v101_v49  ;;  %v802_v50 = vld [vmem:[%s1228_s8 + $0x10] sm:$0xff] }
  0x92   :  { %v91_v51 = vpop.xlane.xlu1 %90  ;;  %330 = vmatpush.bf16.msra.mxu2 %v802_v50 }
  0x93   :  { %v176_v53 = vpack.c.bf16 %v91_v51, %v91_v51  ;;  %v840_v54 = vpop.eup %839  ;;  %v126_v57 = vadd.f32 1e-08, %v124_v52  ;;  %v801_v52 = vld [vmem:[%s1228_s8 + $0x8] sm:$0xff] }
  0x94   :  { %v128_v56 = vmul.f32 %v840_v54, %v125_v43  ;;  %v88_v59 = vpop.xlane.xlu0 %87  ;;  %vm133_vm2 = vweird.f32 %v840_v54 }
  0x95   :  { %v212_v58 = vunpack.c.l.b16 %v176_v53  ;;  %v175_v60 = vpack.c.bf16 %v88_v59, %v88_v59  ;;  %841 = vrcp.f32 %v126_v57  ;;  %vm134_vm5 = vmor %vm132_vm4, %vm133_vm2  ;;  %v153_v13 = vand.u32 2147483648, %v126_v57 }
  0x96   :  { %v129_v61 = vsub.f32 1.0, %v128_v56  ;;  %v151_v16 = vand.u32 2147483647, %v126_v57  ;;  %vm147_vm9 = vweird.f32 %v126_v57  ;;  %843 = vrcp.f32 %v853_v44  ;;  %331 = vmatpush.bf16.msra.mxu2 %v801_v52 }
  0x97   :  { %v214_v62 = vperm.slane %v212_v58, %v1009_v55  ;;  %v211_v63 = vunpack.c.l.b16 %v175_v60  ;;  %v154_v18 = vor.u32 1.1754944e-38, %v153_v13  ;;  %vm321_vm2 = vcmask 523264  }
  0x98   :  { %v130_v0 = vmul.f32 %v840_v54, %v129_v61  ;;  %vm152_vm11 = vcmp.eq.f32.partialorder %v151_v16, 8.507059e+37  ;;  %vm340_vm4 = vcmask 1041408  }
  0x99   :  { %v213_v3 = vperm.slane %v211_v63, %v1009_v55 }
  0x9a   :  { %v131_v4 = vadd.f32 %v840_v54, %v130_v0 }
  0x9b   :  { %v215_v5 = vsel %vm169_vm3, %v214_v62, %v213_v3  ;;  %v842_v6 = vpop.eup %841 }
  0x9c   :  { %v135_v7 = vsel %vm134_vm5, %v840_v54, %v131_v4  ;;  %v216_v9 = vpack.c.b16 %v215_v5, %v215_v5  ;;  %v143_v10 = vmul.f32 %v842_v6, %v126_v57  ;;  %vm148_vm8 = vweird.f32 %v842_v6  ;;  %v844_v45 = vpop.eup %843  ;;  %v800_v54 = vld [vmem:[%s1228_s8] sm:$0xff] }
  0x9d   :  { %v140_v11 = vsel %vm137_vm7, %v139_v8, %v135_v7  ;;  %vm149_vm10 = vmor %vm147_vm9, %vm148_vm8  ;;  %v248_v46 = vmul.f32 64.0, %v844_v45  ;;  %vm252_vm13 = vweird.f32 %v844_v45  ;;  %332 = vmatpush.bf16.msra.mxu2 %v800_v54 }
  0x9e   :  { %682 = vmatmul.msk.bf16.vlgmr.msra.gmra.mxu1 %vm188_vm6, %v216_v9  ;;  %v144_v12 = vsub.f32 1.0, %v143_v10  ;;  %v141_v14 = vmul.f32 %v140_v11, %v98_v37  ;;  %v832_v9 = vld [vmem:[%s1226_s7] ss:$0 sm:$0xff] }
  0x9f   :  { %v249_v47 = vsub.f32 1.0, %v248_v46 }
  0xa0   :  { %v145_v15 = vmul.f32 %v842_v6, %v144_v12  ;;  %v178_v19 = vpack.c.bf16 %v141_v14, %v141_v14  ;;  %v833_v14 = vld [vmem:[%s1227_s9] ss:$0 sm:$0xff] }
  0xa2   :  { %v146_v17 = vadd.f32 %v842_v6, %v145_v15  ;;  %v182_v25 = vunpack.c.l.b16 %v178_v19 }
  0xa4   :  { %v150_v20 = vsel %vm149_vm10, %v842_v6, %v146_v17  ;;  %v184_v30 = vperm.slane %v182_v25, %v1009_v55  ;;  %v831_v6 = vld [vmem:[%s1225_s6] ss:$0 sm:$0xff]  ;;  %v810_v25 = vld [vmem:[%s1232_s12 + $0x30] sm:$0xff] }
  0xa5   :  { %v155_v21 = vsel %vm152_vm11, %v154_v18, %v150_v20 }
  0xa6   :  { %v156_v24 = vmul.f32 %v155_v21, %v101_v49  ;;  %v250_v49 = vmul.f32 %v844_v45, %v249_v47  ;;  %v854_v21 = vmov 128.0  }
  0xa8   :  { %v179_v26 = vpack.c.bf16 %v156_v24, %v156_v24  ;;  %v251_v51 = vadd.f32 %v844_v45, %v250_v49  ;;  %v811_v24 = vld [vmem:[%s1232_s12 + $0x38] sm:$0xff] }
  0xa9   :  { %450 = vmatpush.bf16.msra.mxu3 %v811_v24  ;;  %v823_v24 = vld [vmem:[%s1235_s16 + $0x54] sm:$0xf0] }
  0xaa   :  { %v183_v27 = vunpack.c.l.b16 %v179_v26  ;;  %v1033_v53 = vsel %vm252_vm13, %v844_v45, %v251_v51 }
  0xac   :  { %v185_v31 = vperm.slane %v183_v27, %v1009_v55  ;;  %v809_v27 = vld [vmem:[%s1232_s12 + $0x28] sm:$0xff] }
  0xad   :  { %451 = vmatpush.bf16.msra.mxu3 %v810_v25 }
  0xae   :  { %v186_v32 = vsel %vm169_vm3, %v185_v31, %v184_v30  ;;  %v808_v31 = vld [vmem:[%s1232_s12 + $0x20] sm:$0xff] }
  0xaf   :  { %v187_v33 = vpack.c.b16 %v186_v32, %v186_v32 }
  0xb1   :  { %681 = vmatmul.msk.bf16.vlgmr.msra.gmra.mxu0 %vm188_vm6, %v187_v33  ;;  %452 = vmatpush.bf16.msra.mxu3 %v809_v27  ;;  %v807_v33 = vld [vmem:[%s1232_s12 + $0x18] sm:$0xff]  ;;  %v750_v27 = vld [vmem:[%s1235_s16 + $0x20] sm:$0xf] }
  0xb5   :  { %453 = vmatpush.bf16.msra.mxu3 %v808_v31  ;;  %v816_v31 = vld [vmem:[%s1235_s16 + $0x24] sm:$0xf] }
  0xb9   :  { %454 = vmatpush.bf16.msra.mxu3 %v807_v33  ;;  %v752_v33 = vld [vmem:[%s1235_s16 + $0x30] sm:$0xf0] }
 0x11b   :  { %v232_v34 = vpop.f32.mrf.mxu1 }
 0x123   :  { %v234_v35 = vpop.f32.mrf.mxu1 }
 0x124   :  { %v806_v35 = vld [vmem:[%s1232_s12 + $0x10] sm:$0xff] }
 0x125   :  { %455 = vmatpush.bf16.msra.mxu3 %v806_v35  ;;  %v819_v35 = vld [vmem:[%s1235_s16 + $0x34] sm:$0xf0] }
 0x12e   :  { %v205_v37 = vpop.f32.mrf.mxu0 }
 0x12f   :  { %v233_v38 = vadd.f32 %v232_v34, %v205_v37  ;;  %v805_v37 = vld [vmem:[%s1232_s12 + $0x8] sm:$0xff] }
 0x130   :  { %456 = vmatpush.bf16.msra.mxu3 %v805_v37 }
 0x131   :  { %v240_v39 = vadd.f32 %v830_v36, %v233_v38 }
 0x133   :  { %v244_v40 = vsel %vm243_vm12, %v240_v39, 0.0  ;;  %v255_v41 = vmul.f32 %v240_v39, %v240_v39 }
 0x134   :  { %245 = vadd.xlane.f32.xlu2 %v244_v40 }
 0x135   :  { %v256_v42 = vsel %vm243_vm12, %v255_v41, 0.0 }
 0x136   :  { %v207_v43 = vpop.f32.mrf.mxu0  ;;  %257 = vadd.xlane.f32.xlu0 %v256_v42 }
 0x1a7   :  { %v246_v56 = vpop.xlane.xlu2 %245 }
 0x1a8   :  { %v254_v57 = vmul.f32 %v1033_v53, %v246_v56  ;;  %v834_v56 = vld [vmem:[%s1229_s10] ss:$0 sm:$0xff] }
 0x1a9   :  { %v258_v58 = vpop.xlane.xlu0 %257 }
 0x1aa   :  { %v260_v59 = vmul.f32 %v254_v57, %v254_v57  ;;  %v259_v60 = vmul.f32 %v258_v58, %v1033_v53  ;;  %v262_v5 = vsub.f32 %v240_v39, %v254_v57  ;;  %v804_v39 = vld [vmem:[%s1232_s12] sm:$0xff] }
 0x1ab   :  { %457 = vmatpush.bf16.msra.mxu3 %v804_v39  ;;  %v814_v39 = vld [vmem:[%s1235_s16 + $0xc] sm:$0xf0] }
 0x1ac   :  { %v261_v61 = vsub.f32 %v259_v60, %v260_v59  ;;  %v835_v59 = vld [vmem:[%s1230_s11] ss:$0 sm:$0xff] }
 0x1ae   :  { %v263_v62 = vadd.f32 1e-05, %v261_v61 }
 0x1b0   :  { %845 = vrsqrt.f32 %v263_v62  ;;  %vm270_vm15 = vweird.f32 %v263_v62 }
 0x1b1   :  { %847 = vrcp.f32 %v854_v21  ;;  %v774_v21 = vld [vmem:[%s1235_s16 + $0x48] sm:$0xf] }
 0x1b6   :  { %v846_v63 = vpop.eup %845 }
 0x1b7   :  { %v265_v0 = vmul.f32 %v846_v63, %v263_v62  ;;  %vm271_vm14 = vweird.f32 %v846_v63  ;;  %v848_v26 = vpop.eup %847 }
 0x1b8   :  { %vm272_vm0 = vmor %vm270_vm15, %vm271_vm14  ;;  %v345_v30 = vmul.f32 128.0, %v848_v26  ;;  %vm349_vm5 = vweird.f32 %v848_v26 }
 0x1b9   :  { %v266_v1 = vmul.f32 %v846_v63, %v265_v0  ;;  %v836_v0 = vld [vmem:[%s1231_s13] ss:$0 sm:$0xff] }
 0x1ba   :  { %v346_v32 = vsub.f32 1.0, %v345_v30  ;;  %v818_v30 = vld [vmem:[%s1235_s16 + $0x2c] sm:$0xf0] }
 0x1bb   :  { %v267_v2 = vmul.f32 0.5, %v266_v1 }
 0x1bc   :  { %v347_v34 = vmul.f32 %v848_v26, %v346_v32  ;;  %v751_v32 = vor.u32 %v818_v30, %v750_v27 }
 0x1bd   :  { %v268_v3 = vsub.f32 1.5, %v267_v2 }
 0x1be   :  { %v348_v36 = vadd.f32 %v848_v26, %v347_v34  ;;  %v758_v34 = vld [vmem:[%s1235_s16 + $0x28] sm:$0xf] }
 0x1bf   :  { %v269_v4 = vmul.f32 %v846_v63, %v268_v3  ;;  %v759_v37 = vor.u32 %v819_v35, %v758_v34 }
 0x1c0   :  { %v350_v38 = vsel %vm349_vm5, %v848_v26, %v348_v36  ;;  %v775_v26 = vor.u32 %v823_v24, %v774_v21  ;;  %v755_v36 = vor.u32 %v816_v31, %v752_v33 }
 0x1c1   :  { %v273_v7 = vsel %vm272_vm0, %v846_v63, %v269_v4 }
 0x1c2   :  { %v274_v8 = vmul.f32 %v273_v7, %v262_v5  ;;  %v782_v7 = vld [vmem:[%s1235_s16 + $0x60] sm:$0xf] }
 0x1c4   :  { %v278_v10 = vmul.f32 %v831_v6, %v274_v8  ;;  %v826_v8 = vld [vmem:[%s1235_s16 + $0x6c] sm:$0xf0] }
 0x1c6   :  { %v282_v11 = vadd.f32 %v832_v9, %v278_v10  ;;  %v824_v9 = vld [vmem:[%s1235_s16 + $0x64] sm:$0xf]  ;;  %v783_v10 = vor.u32 %v826_v8, %v782_v7  ;;  %v157_v8 = vadd.f32 %v997_v29, %v992_v28  ;;  %v838_v28 = vld [vmem:[%s1234_s15] ss:$0 sm:$0xff] }
 0x1c8   :  { %v283_v12 = vmax.f32 %v282_v11, 0.0  ;;  %v784_v11 = vld [vmem:[%s1235_s16 + $0x70] sm:$0xf0]  ;;  %612 = vmatpush.bf16.msrb.mxu0 %v783_v10 }
 0x1ca   :  { %v292_v13 = vpack.c.bf16 %v283_v12, %v283_v12  ;;  %v790_v12 = vld [vmem:[%s1235_s16 + $0x68] sm:$0xf] }
 0x1cc   :  { %699 = vmatmul.msk.bf16.vlgmr.msra.gmra.mxu2 %vm321_vm2, %v292_v13  ;;  %v827_v13 = vld [vmem:[%s1235_s16 + $0x74] sm:$0xf0] }
 0x24f   :  { %v334_v15 = vpop.f32.mrf.mxu2 }
 0x250   :  { %v335_v16 = vadd.f32 %v833_v14, %v334_v15  ;;  %v787_v14 = vor.u32 %v824_v9, %v784_v11  ;;  %v791_v15 = vor.u32 %v827_v13, %v790_v12  ;;  %v160_v9 = vadd.f32 %v985_v23, %v980_v22  ;;  %v837_v13 = vld [vmem:[%s1233_s14] ss:$0 sm:$0xff] }
 0x252   :  { %v341_v17 = vsel %vm340_vm4, %v335_v16, 0.0  ;;  %v352_v18 = vmul.f32 %v335_v16, %v335_v16  ;;  %625 = vmatpush.bf16.msrb.mxu1 %v787_v14  ;;  %638 = vmatpush.bf16.msrb.mxu2 %v791_v15 }
 0x253   :  { %342 = vadd.xlane.f32.xlu1 %v341_v17  ;;  %v822_v17 = vld [vmem:[%s1235_s16 + $0x4c] sm:$0xf0] }
 0x254   :  { %v353_v19 = vsel %vm340_vm4, %v352_v18, 0.0  ;;  %v820_v18 = vld [vmem:[%s1235_s16 + $0x44] sm:$0xf] }
 0x255   :  { %354 = vadd.xlane.f32.xlu2 %v353_v19 }
 0x256   :  { %639 = vmatpush.bf16.msrb.mxu2 %v775_v26 }
 0x257   :  { %v336_v20 = vpop.f32.mrf.mxu2 }
 0x258   :  { %v768_v20 = vld [vmem:[%s1235_s16 + $0x50] sm:$0xf0] }
 0x259   :  { %v771_v25 = vor.u32 %v820_v18, %v768_v20 }
 0x25a   :  { %640 = vmatpush.bf16.msrb.mxu2 %v759_v37 }
 0x25b   :  { %626 = vmatpush.bf16.msrb.mxu1 %v771_v25  ;;  %v515_v25 = vld [vmem:[%s1237_s17] sm:$0xf] }
 0x25c   :  { %v518_v31 = vperm.slane %v515_v25, 1  ;;  %v517_v34 = vperm.slane %v515_v25, 0 }
 0x25d   :  { %158 = vadd.xlane.f32.xlu2 %v157_v8 }
 0x25f   :  { %627 = vmatpush.bf16.msrb.mxu1 %v755_v36 }
 0x2c6   :  { %v343_v40 = vpop.xlane.xlu1 %342 }
 0x2c7   :  { %v351_v41 = vmul.f32 %v350_v38, %v343_v40  ;;  %v812_v40 = vld [vmem:[%s1235_s16 + $0x4] sm:$0xf] }
 0x2c8   :  { %v355_v42 = vpop.xlane.xlu2 %354 }
 0x2c9   :  { %v357_v43 = vmul.f32 %v351_v41, %v351_v41  ;;  %v356_v44 = vmul.f32 %v355_v42, %v350_v38  ;;  %v359_v54 = vsub.f32 %v335_v16, %v351_v41  ;;  %v766_v16 = vld [vmem:[%s1235_s16 + $0x40] sm:$0xf]  ;;  %v736_v41 = vld [vmem:[%s1235_s16 + $0x10] sm:$0xf0]  ;;  %v742_v42 = vld [vmem:[%s1235_s16 + $0x8] sm:$0xf] }
 0x2ca   :  { %v767_v19 = vor.u32 %v822_v17, %v766_v16  ;;  %v734_v38 = vld [vmem:[%s1235_s16] sm:$0xf] }
 0x2cb   :  { %v358_v45 = vsub.f32 %v356_v44, %v357_v43  ;;  %v815_v43 = vld [vmem:[%s1235_s16 + $0x14] sm:$0xf0]  ;;  %v735_v44 = vor.u32 %v814_v39, %v734_v38 }
 0x2cc   :  { %613 = vmatpush.bf16.msrb.mxu0 %v767_v19 }
 0x2cd   :  { %v360_v46 = vadd.f32 1e-05, %v358_v45 }
 0x2cf   :  { %849 = vrsqrt.f32 %v360_v46  ;;  %vm367_vm7 = vweird.f32 %v360_v46 }
 0x2d0   :  { %614 = vmatpush.bf16.msrb.mxu0 %v751_v32  ;;  %v519_v32 = vperm.slane %v515_v25, 2 }
 0x2d4   :  { %615 = vmatpush.bf16.msrb.mxu0 %v735_v44 }
 0x2d5   :  { %v850_v47 = vpop.eup %849 }
 0x2d6   :  { %v362_v48 = vmul.f32 %v850_v47, %v360_v46  ;;  %vm368_vm6 = vweird.f32 %v850_v47  ;;  %v739_v46 = vor.u32 %v812_v40, %v736_v41 }
 0x2d7   :  { %vm369_vm8 = vmor %vm367_vm7, %vm368_vm6 }
 0x2d8   :  { %v363_v49 = vmul.f32 %v850_v47, %v362_v48  ;;  %628 = vmatpush.bf16.msrb.mxu1 %v739_v46 }
 0x2da   :  { %v364_v50 = vmul.f32 0.5, %v363_v49 }
 0x2dc   :  { %v365_v51 = vsub.f32 1.5, %v364_v50 }
 0x2de   :  { %v366_v52 = vmul.f32 %v850_v47, %v365_v51 }
 0x2e0   :  { %v370_v57 = vsel %vm369_vm8, %v850_v47, %v366_v52  ;;  %v743_v47 = vor.u32 %v815_v43, %v742_v42  ;;  %v825_v52 = vld [vmem:[%s1235_s16 + $0x6c] sm:$0xf] }
 0x2e1   :  { %v371_v58 = vmul.f32 %v370_v57, %v359_v54  ;;  %v792_v54 = vld [vmem:[%s1235_s16 + $0x78] sm:$0xf0] }
 0x2e2   :  { %641 = vmatpush.bf16.msrb.mxu2 %v743_v47  ;;  %v795_v57 = vor.u32 %v825_v52, %v792_v54 }
 0x2e3   :  { %v375_v60 = vmul.f32 %v834_v56, %v371_v58  ;;  %v821_v58 = vld [vmem:[%s1235_s16 + $0x4c] sm:$0xf] }
 0x2e4   :  { %651 = vmatpush.bf16.msra.mxu0 %v795_v57 }
 0x2e5   :  { %v379_v61 = vadd.f32 %v835_v59, %v375_v60 }
 0x2e7   :  { %v380_v62 = vmax.f32 %v379_v61, 0.0  ;;  %v817_v61 = vld [vmem:[%s1235_s16 + $0x2c] sm:$0xf] }
 0x2e9   :  { %v397_v63 = vpack.c.bf16 %v380_v62, %v380_v62  ;;  %v760_v62 = vld [vmem:[%s1235_s16 + $0x38] sm:$0xf0] }
 0x2eb   :  { %458 = vmatmul.bf16.vlgmr.msra.gmra.mxu3 %v397_v63  ;;  %v763_v63 = vor.u32 %v817_v61, %v760_v62 }
 0x36e   :  { %v459_v1 = vpop.f32.mrf.mxu3 }
 0x36f   :  { %v1085_v2 = vadd.f32 %v836_v0, %v459_v1  ;;  %v813_v0 = vld [vmem:[%s1235_s16 + $0xc] sm:$0xf]  ;;  %v744_v1 = vld [vmem:[%s1235_s16 + $0x18] sm:$0xf0] }
 0x371   :  { %v465_v3 = vsel %vm243_vm12, %v1085_v2, 0.0  ;;  %v469_v4 = vmul.f32 %v1085_v2, %v1085_v2 }
 0x372   :  { %466 = vadd.xlane.f32.xlu0 %v465_v3 }
 0x373   :  { %v470_v5 = vsel %vm243_vm12, %v469_v4, 0.0  ;;  %v747_v4 = vor.u32 %v813_v0, %v744_v1  ;;  %vm172_vm12 = vcmask 58368  }
 0x374   :  { %471 = vadd.xlane.f32.xlu1 %v470_v5 }
 0x376   :  { %v461_v6 = vpop.f32.mrf.mxu3 }
 0x37a   :  { %161 = vadd.xlane.f32.xlu0 %v160_v9 }
 0x3e5   :  { %v467_v45 = vpop.xlane.xlu0 %466 }
 0x3e6   :  { %v468_v48 = vmul.f32 %v467_v45, %v1033_v53 }
 0x3e7   :  { %v472_v49 = vpop.xlane.xlu1 %471 }
 0x3e8   :  { %v474_v50 = vmul.f32 %v468_v48, %v468_v48  ;;  %v473_v51 = vmul.f32 %v472_v49, %v1033_v53  ;;  %v776_v53 = vld [vmem:[%s1235_s16 + $0x58] sm:$0xf0]  ;;  %v476_v12 = vsub.f32 %v1085_v2, %v468_v48  ;;  %v159_v2 = vpop.xlane.xlu2 %158 }
 0x3e9   :  { %v779_v60 = vor.u32 %v821_v58, %v776_v53  ;;  %v167_v18 = vperm.slane %v159_v2, %v1009_v55 }
 0x3ea   :  { %v475_v56 = vsub.f32 %v473_v51, %v474_v50 }
 0x3eb   :  { %652 = vmatpush.bf16.msra.mxu0 %v779_v60 }
 0x3ec   :  { %v477_v59 = vadd.f32 1e-05, %v475_v56 }
 0x3ed   :  { %v162_v17 = vpop.xlane.xlu0 %161 }
 0x3ee   :  { %851 = vrsqrt.f32 %v477_v59  ;;  %vm484_vm10 = vweird.f32 %v477_v59  ;;  %v168_v19 = vperm.slane %v162_v17, %v1009_v55  ;;  %v520_v55 = vperm.slane %v515_v25, 3 }
 0x3ef   :  { %653 = vmatpush.bf16.msra.mxu0 %v763_v63 }
 0x3f0   :  { %v170_v20 = vsel %vm169_vm3, %v168_v19, %v167_v18  ;;  %vm668_vm3 = vcmask 1045508  }
 0x3f1   :  { %173 = vst.msk [vmem:[%s1236_s19] sm:$0x3] %vm172_vm12, %v170_v20 }
 0x3f3   :  { %654 = vmatpush.bf16.msra.mxu0 %v747_v4 }
 0x3f4   :  { %v852_v3 = vpop.eup %851 }
 0x3f5   :  { %v479_v5 = vmul.f32 %v852_v3, %v477_v59  ;;  %vm485_vm9 = vweird.f32 %v852_v3 }
 0x3f6   :  { %vm486_vm11 = vmor %vm484_vm10, %vm485_vm9 }
 0x3f7   :  { %v480_v6 = vmul.f32 %v852_v3, %v479_v5 }
 0x3f9   :  { %v481_v7 = vmul.f32 0.5, %v480_v6 }
 0x3fb   :  { %v482_v10 = vsub.f32 1.5, %v481_v7 }
 0x3fd   :  { %v483_v11 = vmul.f32 %v852_v3, %v482_v10 }
 0x3ff   :  { %v487_v14 = vsel %vm486_vm11, %v852_v3, %v483_v11 }
 0x400   :  { %v488_v15 = vmul.f32 %v487_v14, %v476_v12 }
 0x402   :  { %v492_v22 = vmul.f32 %v837_v13, %v488_v15 }
 0x404   :  { %v496_v23 = vadd.f32 %v838_v28, %v492_v22 }
 0x406   :  { %v497_v29 = vmax.f32 %v496_v23, 0.0 }
 0x408   :  { %v514_v16 = vpack.c.bf16 %v497_v29, %v497_v29 }
 0x40a   :  { %796 = vmatmul.msk.bf16.vlgmr.msrb.gmra.mxu0 %vm321_vm2, %v514_v16  ;;  %797 = vmatmul.msk.bf16.vlgmr.msrb.gmra.mxu1 %vm321_vm2, %v514_v16 }
 0x40b   :  { %798 = vmatmul.msk.bf16.vlgmr.msrb.gmra.mxu2 %vm321_vm2, %v514_v16 }
 0x41a   :  { %799 = vmatmul.msk.bf16.vlgmr.msra.gmra.mxu0 %vm321_vm2, %v514_v16 }
 0x487   :  { %v617_v21 = vpop.f32.mrf.mxu0  ;;  %v630_v24 = vpop.f32.mrf.mxu1 }
 0x488   :  { %v631_v33 = vadd.f32 %v630_v24, %v518_v31  ;;  %v618_v40 = vadd.f32 %v617_v21, %v517_v34 }
 0x48a   :  { %v664_v38 = vrot.slane %v631_v33, 6 }
 0x48c   :  { %v667_v43 = vsel %vm340_vm4, %v618_v40, %v664_v38 }
 0x48e   :  { %v643_v26 = vpop.f32.mrf.mxu2 }
 0x48f   :  { %v619_v27 = vpop.f32.mrf.mxu0  ;;  %v632_v30 = vpop.f32.mrf.mxu1  ;;  %v644_v35 = vadd.f32 %v643_v26, %v519_v32 }
 0x491   :  { %v665_v41 = vrot.slane %v644_v35, 4 }
 0x496   :  { %v645_v36 = vpop.f32.mrf.mxu2 }
 0x497   :  { %v656_v37 = vpop.f32.mrf.mxu0 }
 0x498   :  { %v657_v39 = vadd.f32 %v656_v37, %v520_v55 }
 0x49a   :  { %v666_v42 = vrot.slane %v657_v39, 2 }
 0x49c   :  { %v669_v44 = vsel %vm668_vm3, %v665_v41, %v666_v42 }
 0x49d   :  { %v670_v45 = vsel %vm192_vm1, %v667_v43, %v669_v44 }
 0x49e   :  { %672 = vst [vmem:[%s1238_s18] sm:$0xff] %v670_v45 }
 0x49f   :  { %v658_v46 = vpop.f32.mrf.mxu0 }

// kernel: obstacle_head_forward.8
= control target key start
LH: loop header
LB: loop body
LE: loop exit
PB: predicated region body
PF: predicated region fallthrough
CT: control target
= control target key end

     0   :  { %s2753_s0 = inlined_call_operand.vmem [shape: f32[2,8,64], index: 0, kind: input, shape index: {}]   ;;  %s2754_s1 = inlined_call_operand.vmem [shape: f32[2,8,64], index: 1, kind: input, shape index: {}]   ;;  %s2755_s2 = inlined_call_operand.vmem [shape: f32[2,8,64], index: 2, kind: input, shape index: {}]   ;;  %s2756_s3 = inlined_call_operand.vmem [shape: f32[2,512], index: 3, kind: input, shape index: {}]   ;;  %s2757_s4 = inlined_call_operand.vmem [shape: f32[2,8], index: 4, kind: input, shape index: {}]   ;;  %s2758_s5 = inlined_call_operand.vmem [shape: bf16[8,64,128], index: 5, kind: input, shape index: {}]   ;;  %s2759_s6 = inlined_call_operand.hbm [shape: bf16[512,128], index: 6, kind: input, shape index: {}]   ;;  %s2760_s7 = inlined_call_operand.vmem [shape: f32[1,128], index: 7, kind: input, shape index: {}]   ;;  %s2761_s8 = inlined_call_operand.vmem [shape: f32[1,128], index: 8, kind: input, shape index: {}]   ;;  %s2762_s9 = inlined_call_operand.vmem [shape: f32[1,128], index: 9, kind: input, shape index: {}]   ;;  %s2763_s10 = inlined_call_operand.hbm [shape: bf16[128,256], index: 10, kind: input, shape index: {}]   ;;  %s2764_s11 = inlined_call_operand.vmem [shape: f32[1,256], index: 11, kind: input, shape index: {}]   ;;  %s2765_s12 = inlined_call_operand.vmem [shape: f32[1,256], index: 12, kind: input, shape index: {}]   ;;  %s2766_s13 = inlined_call_operand.vmem [shape: f32[1,256], index: 13, kind: input, shape index: {}]   ;;  %s2767_s14 = inlined_call_operand.hbm [shape: bf16[256,128], index: 14, kind: input, shape index: {}]   ;;  %s2768_s15 = inlined_call_operand.vmem [shape: f32[1,128], index: 15, kind: input, shape index: {}]   ;;  %s2769_s16 = inlined_call_operand.vmem [shape: f32[1,128], index: 16, kind: input, shape index: {}]   ;;  %s2770_s17 = inlined_call_operand.vmem [shape: f32[1,128], index: 17, kind: input, shape index: {}]   ;;  %s2771_s18 = inlined_call_operand.vmem [shape: bf16[128,64], index: 18, kind: input, shape index: {}]   ;;  %s2772_s19 = inlined_call_operand.vmem [shape: f32[1,64], index: 19, kind: input, shape index: {}]   ;;  %s2773_s20 = inlined_call_operand.vmem [shape: f32[1,64], index: 20, kind: input, shape index: {}]   ;;  %s2774_s21 = inlined_call_operand.vmem [shape: f32[1,64], index: 21, kind: input, shape index: {}]   ;;  %s2775_s22 = inlined_call_operand.vmem [shape: bf16[64,8], index: 22, kind: input, shape index: {}]   ;;  %s2776_s23 = inlined_call_operand.vmem [shape: f32[1,8], index: 23, kind: input, shape index: {}]   ;;  %s2777_s24 = inlined_call_operand.vmem [shape: f32[2,8], index: 24, kind: output, shape index: {}]  }
   0x1   :  { %2782 = sst [smem:[#allocation9_spill]] %s2753_s0 }
   0x2   :  { %2783 = sst [smem:[#allocation10_spill]] %s2754_s1 }
   0x3   :  { %2784 = sst [smem:[#allocation11_spill]] %s2755_s2 }
   0x4   :  { %2785 = sst [smem:[#allocation12_spill]] %s2756_s3 }
   0x5   :  { %2786 = sst [smem:[#allocation13_spill]] %s2757_s4 }
   0x6   :  { %2787 = sst [smem:[#allocation14_spill]] %s2758_s5 }
   0x7   :  { %2788 = sst [smem:[#allocation15_spill]] %s2759_s6 }
   0x8   :  { %2789 = sst [smem:[#allocation16_spill]] %s2760_s7 }
   0x9   :  { %2790 = sst [smem:[#allocation17_spill]] %s2761_s8 }
   0xa   :  { %2791 = sst [smem:[#allocation18_spill]] %s2777_s24 }
   0xb   :  { %29 = vsyncpa [#allocation3], 0 }
   0xc   :  { %30 = vsyncpa [#allocation5], 0  ;;  %s66_s27 = sshll.u32 %s2763_s10, 4  ;;  %s2344_s28 = smov [#allocation4]   ;;  %s67_s27 = int_to_ptr.hbm [resolvable:$true] %s66_s27 }
   0xd   :  { %s68_s6 = sshll.u32 %s2344_s28, 4  ;;  %s2792_s0 = sld [smem:[#allocation15_spill]]  ;;  %s69_s6 = int_to_ptr.vmem [resolvable:$true] %s68_s6 }
   0xe   :  { %s2345_s30 = smov 128   ;;  %s2346_s3 = smov 8  }
   0xf   :  { %74 = dma.hbm_to_vmem [thread:$0]  %s67_s27, 2048, %s69_s6, [#allocation5], %s2345_s30, %s2345_s30, %s2346_s3  }
  0x10   :  { %s2347_s25 = smov [#allocation2]   ;;  %s2348_s4 = smov 64  }
  0x11   :  { %s49_s8 = sshll.u32 %s2347_s25, 4  ;;  %s2349_s1 = smov 4   ;;  %s50_s8 = int_to_ptr.vmem [resolvable:$true] %s49_s8 }
  0x12   :  { %s85_s26 = sshll.u32 %s2767_s14, 4  ;;  %s2350_s28 = smov [#allocation6]   ;;  %s86_s26 = int_to_ptr.hbm [resolvable:$true] %s85_s26 }
  0x13   :  { %s47_s7 = sshll.u32 %s2792_s0, 4  ;;  %s87_s24 = sshll.u32 %s2350_s28, 4  ;;  %s48_s7 = int_to_ptr.hbm [resolvable:$true] %s47_s7  ;;  %s88_s24 = int_to_ptr.vmem [resolvable:$true] %s87_s24 }
  0x14   :  { %55 = dma.hbm_to_vmem [thread:$0]  %s48_s7, 4096, %s50_s8, [#allocation3], %s2348_s4, %s2348_s4, %s2349_s1  }
  0x15   :  { %93 = dma.hbm_to_vmem [thread:$0]  %s86_s26, 2048, %s88_s24, [#allocation5], %s2348_s4, %s2348_s4, %s2349_s1  }
  0x16   :  { %2340 = dma.done.wait [#allocation3], 4096  }
  0x17   :  { %2341 = vsyncadd [#allocation3], 4294963200 }
  0x18   :  { %2342 = dma.done.wait [#allocation5], 4096  }
  0x19   :  { %2343 = vsyncadd [#allocation5], 4294963200  ;;  %s2793_s2 = sld [smem:[#allocation10_spill]]  ;;  %vm133_vm0 = vcmask 523264   ;;  %vm174_vm1 = vcmask 64512   ;;  %vm206_vm2 = vcmask 1043456  }
  0x1a   :  { %s2794_s30 = sld [smem:[#allocation9_spill]]  ;;  %v2125_v34 = vld [vmem:[#allocation2 + $0x38] sm:$0xff]  ;;  %v2124_v37 = vld [vmem:[#allocation2 + $0x30] sm:$0xff]  ;;  %v2123_v42 = vld [vmem:[#allocation2 + $0x28] sm:$0xff]  ;;  %vm584_vm3 = vcmask 1041409   ;;  %vm1007_vm4 = vcmask 1041408  }
  0x1b   :  { %s2795_s4 = sld [smem:[#allocation11_spill]]  ;;  %v2133_v35 = vld [vmem:[#allocation2 + $0x78] sm:$0xff]  ;;  %v2132_v38 = vld [vmem:[#allocation2 + $0x70] sm:$0xff]  ;;  %v2131_v43 = vld [vmem:[#allocation2 + $0x68] sm:$0xff] }
  0x1c   :  { %v2141_v36 = vld [vmem:[#allocation2 + $0xb8] sm:$0xff]  ;;  %v2140_v39 = vld [vmem:[#allocation2 + $0xb0] sm:$0xff]  ;;  %v2139_v44 = vld [vmem:[#allocation2 + $0xa8] sm:$0xff]  ;;  %s2796_s28 = sld [smem:[#allocation12_spill]] }
  0x1d   :  { %v2149_v40 = vld [vmem:[#allocation2 + $0xf8] sm:$0xff]  ;;  %v2148_v41 = vld [vmem:[#allocation2 + $0xf0] sm:$0xff]  ;;  %v2147_v45 = vld [vmem:[#allocation2 + $0xe8] sm:$0xff]  ;;  %s2798_s5 = sld [smem:[#allocation16_spill]] }
  0x1e   :  { %v2122_v47 = vld [vmem:[#allocation2 + $0x20] sm:$0xff]  ;;  %v2121_v52 = vld [vmem:[#allocation2 + $0x18] sm:$0xff]  ;;  %v2120_v56 = vld [vmem:[#allocation2 + $0x10] sm:$0xff]  ;;  %s2799_s27 = sld [smem:[#allocation17_spill]] }
  0x1f   :  { %v129_v0 = vld [vmem:[%s2793_s2] sm:$0xff]  ;;  %v130_v1 = vld [vmem:[%s2793_s2 + $0x8] sm:$0xff]  ;;  %v2128_v57 = vld [vmem:[#allocation2 + $0x50] sm:$0xff]  ;;  %s2797_s2 = sld [smem:[#allocation14_spill]] }
  0x20   :  { %v131_v2 = vpack.c.bf16 %v129_v0, %v129_v0  ;;  %v132_v3 = vpack.c.bf16 %v130_v1, %v130_v1  ;;  %v125_v4 = vld [vmem:[%s2794_s30] sm:$0xff]  ;;  %v126_v5 = vld [vmem:[%s2794_s30 + $0x8] sm:$0xff]  ;;  %v2136_v59 = vld [vmem:[#allocation2 + $0x90] sm:$0xff] }
  0x21   :  { %v127_v8 = vpack.c.bf16 %v125_v4, %v125_v4  ;;  %v128_v9 = vpack.c.bf16 %v126_v5, %v126_v5  ;;  %v200_v28 = vld [vmem:[%s2795_s4 + $0x8] sm:$0xff]  ;;  %v199_v31 = vld [vmem:[%s2795_s4] sm:$0xff]  ;;  %v2144_v62 = vld [vmem:[#allocation2 + $0xd0] sm:$0xff] }
  0x22   :  { %v138_v6 = vsel %vm133_vm0, %v131_v2, 0  ;;  %v157_v7 = vsel %vm133_vm0, %v132_v3, 0  ;;  %v202_v29 = vpack.c.bf16 %v200_v28, %v200_v28  ;;  %v201_v32 = vpack.c.bf16 %v199_v31, %v199_v31  ;;  %v242_v46 = vld [vmem:[%s2796_s28] sm:$0xff]  ;;  %v2130_v48 = vld [vmem:[#allocation2 + $0x60] sm:$0xff]  ;;  %v2119_v0 = vld [vmem:[#allocation2 + $0x8] sm:$0xff]  ;;  %s2801_s28 = sld [smem:[#allocation18_spill]] }
  0x23   :  { %147 = vmatpush.bf16.xpose.msra.mxu0 %v138_v6  ;;  %166 = vmatpush.bf16.xpose.msra.mxu1 %v157_v7  ;;  %308 = vst [vmem:[#allocation1] ss:$4 sm:$0xff] %v242_v46  ;;  %v2138_v49 = vld [vmem:[#allocation2 + $0xa0] sm:$0xff]  ;;  %v2129_v53 = vld [vmem:[#allocation2 + $0x58] sm:$0xff]  ;;  %v2127_v1 = vld [vmem:[#allocation2 + $0x48] sm:$0xff] }
  0x24   :  { %v227_v30 = vsel %vm206_vm2, %v202_v29, 0  ;;  %v208_v33 = vsel %vm206_vm2, %v201_v32, 0  ;;  %v2146_v51 = vld [vmem:[#allocation2 + $0xe0] sm:$0xff]  ;;  %v2137_v54 = vld [vmem:[#allocation2 + $0x98] sm:$0xff]  ;;  %v2135_v2 = vld [vmem:[#allocation2 + $0x88] sm:$0xff] }
  0x25   :  { %236 = vmatpush.bf16.msra.mxu3 %v227_v30  ;;  %217 = vmatpush.bf16.msra.mxu2 %v208_v33  ;;  %v2145_v55 = vld [vmem:[#allocation2 + $0xd8] sm:$0xff]  ;;  %v2143_v3 = vld [vmem:[#allocation2 + $0xc8] sm:$0xff]  ;;  %v2118_v4 = vld [vmem:[#allocation2] sm:$0xff] }
  0x26   :  { %v2126_v5 = vld [vmem:[#allocation2 + $0x40] sm:$0xff]  ;;  %v2150_v31 = vld [vmem:[%s2797_s2] sm:$0xff] }
  0x27   :  { %v2134_v7 = vld [vmem:[#allocation2 + $0x80] sm:$0xff]  ;;  %v2154_v32 = vld [vmem:[%s2797_s2 + $0x20] sm:$0xff] }
  0x28   :  { %v2155_v28 = vld [vmem:[%s2797_s2 + $0x28] sm:$0xff]  ;;  %v2162_v33 = vld [vmem:[%s2797_s2 + $0x60] sm:$0xff] }
  0x29   :  { %517 = vmatpush.bf16.msrb.mxu2 %v2125_v34  ;;  %530 = vmatpush.bf16.msrb.mxu3 %v2133_v35  ;;  %v2163_v29 = vld [vmem:[%s2797_s2 + $0x68] sm:$0xff]  ;;  %v2166_v34 = vld [vmem:[%s2797_s2 + $0x80] sm:$0xff]  ;;  %v2161_v35 = vld [vmem:[%s2797_s2 + $0x58] sm:$0xff] }
  0x2a   :  { %1617 = vmatmul.msk.bf16.vlgmr.msra.gmra.mxu0 %vm133_vm0, %v127_v8  ;;  %1618 = vmatmul.msk.bf16.vlgmr.msra.gmra.mxu1 %vm133_vm0, %v128_v9  ;;  %v311_v8 = vld.sshfl [vmem:[#allocation1 + $0x10] sm:$0xff pattern:$0x73625140]  ;;  %v2167_v30 = vld [vmem:[%s2797_s2 + $0x88] sm:$0xff]  ;;  %v2178_v46 = vld [vmem:[%s2797_s2 + $0xe0] sm:$0xff] }
  0x2b   :  { %543 = vmatpush.bf16.msrb.mxu0 %v2141_v36  ;;  %556 = vmatpush.bf16.msrb.mxu1 %v2149_v40  ;;  %v2173_v36 = vld [vmem:[%s2797_s2 + $0xb8] sm:$0xff]  ;;  %v2180_v40 = vld [vmem:[%s2797_s2 + $0xf0] sm:$0xff] }
  0x2d   :  { %518 = vmatpush.bf16.msrb.mxu2 %v2124_v37  ;;  %531 = vmatpush.bf16.msrb.mxu3 %v2132_v38  ;;  %v2181_v37 = vld [vmem:[%s2797_s2 + $0xf8] sm:$0xff]  ;;  %v2160_v38 = vld [vmem:[%s2797_s2 + $0x50] sm:$0xff] }
  0x2f   :  { %544 = vmatpush.bf16.msrb.mxu0 %v2140_v39  ;;  %557 = vmatpush.bf16.msrb.mxu1 %v2148_v41  ;;  %v2172_v39 = vld [vmem:[%s2797_s2 + $0xb0] sm:$0xff]  ;;  %v2159_v41 = vld [vmem:[%s2797_s2 + $0x48] sm:$0xff] }
  0x31   :  { %519 = vmatpush.bf16.msrb.mxu2 %v2123_v42  ;;  %532 = vmatpush.bf16.msrb.mxu3 %v2131_v43  ;;  %v2171_v42 = vld [vmem:[%s2797_s2 + $0xa8] sm:$0xff] }
  0x32   :  { %v2179_v43 = vld [vmem:[%s2797_s2 + $0xe8] sm:$0xff] }
  0x33   :  { %545 = vmatpush.bf16.msrb.mxu0 %v2139_v44  ;;  %558 = vmatpush.bf16.msrb.mxu1 %v2147_v45  ;;  %v2158_v44 = vld [vmem:[%s2797_s2 + $0x40] sm:$0xff] }
  0x34   :  { %v2170_v45 = vld [vmem:[%s2797_s2 + $0xa0] sm:$0xff] }
  0x35   :  { %520 = vmatpush.bf16.msrb.mxu2 %v2122_v47  ;;  %533 = vmatpush.bf16.msrb.mxu3 %v2130_v48 }
  0x37   :  { %546 = vmatpush.bf16.msrb.mxu0 %v2138_v49  ;;  %559 = vmatpush.bf16.msrb.mxu1 %v2146_v51 }
  0x39   :  { %521 = vmatpush.bf16.msrb.mxu2 %v2121_v52  ;;  %534 = vmatpush.bf16.msrb.mxu3 %v2129_v53 }
  0x3b   :  { %547 = vmatpush.bf16.msrb.mxu0 %v2137_v54  ;;  %560 = vmatpush.bf16.msrb.mxu1 %v2145_v55 }
  0x3d   :  { %522 = vmatpush.bf16.msrb.mxu2 %v2120_v56  ;;  %535 = vmatpush.bf16.msrb.mxu3 %v2128_v57 }
  0x3f   :  { %548 = vmatpush.bf16.msrb.mxu0 %v2136_v59  ;;  %561 = vmatpush.bf16.msrb.mxu1 %v2144_v62 }
  0x41   :  { %523 = vmatpush.bf16.msrb.mxu2 %v2119_v0  ;;  %536 = vmatpush.bf16.msrb.mxu3 %v2127_v1 }
  0x43   :  { %549 = vmatpush.bf16.msrb.mxu0 %v2135_v2  ;;  %562 = vmatpush.bf16.msrb.mxu1 %v2143_v3 }
  0x45   :  { %524 = vmatpush.bf16.msrb.mxu2 %v2118_v4  ;;  %537 = vmatpush.bf16.msrb.mxu3 %v2126_v5 }
  0x47   :  { %550 = vmatpush.bf16.msrb.mxu0 %v2134_v7  ;;  %v2176_v7 = vld [vmem:[%s2797_s2 + $0xd0] sm:$0xff] }
  0xa7   :  { %v149_v10 = vpop.f32.mrf.mxu0  ;;  %v168_v11 = vpop.f32.mrf.mxu1 }
  0xa8   :  { %v173_v12 = vmul.f32 0.125, %v168_v11  ;;  %v172_v14 = vmul.f32 0.125, %v149_v10  ;;  %v2142_v10 = vld [vmem:[#allocation2 + $0xc0] sm:$0xff] }
  0xa9   :  { %563 = vmatpush.bf16.msrb.mxu1 %v2142_v10  ;;  %v2236_v10 = vld [vmem:[%s2798_s5] ss:$0 sm:$0xff] }
  0xaa   :  { %v178_v13 = vsel %vm174_vm1, %v173_v12, -inf  ;;  %v175_v17 = vsel %vm174_vm1, %v172_v14, -inf }
  0xab   :  { %179 = vmax.xlane.f32.xlu0 %v178_v13  ;;  %v310_v13 = vld.sshfl [vmem:[#allocation1 + $0x8] sm:$0xff pattern:$0x73625140] }
  0xaf   :  { %v151_v15 = vpop.f32.mrf.mxu0  ;;  %v170_v16 = vpop.f32.mrf.mxu1 }
  0xb0   :  { %v309_v15 = vld.sshfl [vmem:[#allocation1] sm:$0xff pattern:$0x73625140] }
  0xb1   :  { %v317_v16 = vpack.c.bf16 %v309_v15, %v309_v15 }
  0xb3   :  { %176 = vmax.xlane.f32.xlu0 %v175_v17  ;;  %v2153_v17 = vld [vmem:[%s2797_s2 + $0x18] sm:$0xff] }
  0xb4   :  { %618 = vmatpush.bf16.msra.mxu0 %v2153_v17  ;;  %v2174_v17 = vld [vmem:[%s2797_s2 + $0xc0] sm:$0xff] }
 0x11e   :  { %v180_v18 = vpop.xlane.xlu0 %179 }
 0x11f   :  { %v182_v19 = vsub.f32 %v173_v12, %v180_v18  ;;  %v319_v12 = vpack.c.bf16 %v311_v8, %v311_v8  ;;  %v312_v18 = vld.sshfl [vmem:[#allocation1 + $0x18] sm:$0xff pattern:$0x73625140] }
 0x121   :  { %v185_v20 = vmul.f32 1.442695, %v182_v19  ;;  %551 = vmatmul.bf16.vlgmr.msrb.gmra.mxu0 %v319_v12  ;;  %v320_v19 = vpack.c.bf16 %v312_v18, %v312_v18 }
 0x123   :  { %2246 = vpow2.f32 %v185_v20  ;;  %v2157_v20 = vld [vmem:[%s2797_s2 + $0x38] sm:$0xff]  ;;  %564 = vmatmul.bf16.vlgmr.msrb.gmra.mxu1 %v320_v19 }
 0x126   :  { %v177_v21 = vpop.xlane.xlu0 %176 }
 0x127   :  { %v181_v22 = vsub.f32 %v172_v14, %v177_v21  ;;  %v318_v14 = vpack.c.bf16 %v310_v13, %v310_v13  ;;  %v2165_v21 = vld [vmem:[%s2797_s2 + $0x78] sm:$0xff] }
 0x128   :  { %779 = vmatpush.bf16.msra.mxu1 %v2165_v21 }
 0x129   :  { %v2506_v23 = vpop.eup %2246  ;;  %v183_v24 = vmul.f32 1.442695, %v181_v22  ;;  %v2169_v22 = vld [vmem:[%s2797_s2 + $0x98] sm:$0xff] }
 0x12a   :  { %v190_v25 = vsel %vm174_vm1, %v2506_v23, 0.0 }
 0x12b   :  { %2248 = vpow2.f32 %v183_v24  ;;  %191 = vadd.xlane.f32.xlu1 %v190_v25  ;;  %v2156_v24 = vld [vmem:[%s2797_s2 + $0x30] sm:$0xff] }
 0x12c   :  { %v2164_v25 = vld [vmem:[%s2797_s2 + $0x70] sm:$0xff] }
 0x12d   :  { %780 = vmatpush.bf16.msra.mxu1 %v2164_v25 }
 0x131   :  { %v2510_v26 = vpop.eup %2248  ;;  %781 = vmatpush.bf16.msra.mxu1 %v2163_v29 }
 0x132   :  { %v187_v27 = vsel %vm174_vm1, %v2510_v26, 0.0 }
 0x133   :  { %188 = vadd.xlane.f32.xlu1 %v187_v27  ;;  %v2151_v27 = vld [vmem:[%s2797_s2 + $0x8] sm:$0xff] }
 0x135   :  { %782 = vmatpush.bf16.msra.mxu1 %v2162_v33 }
 0x139   :  { %995 = vmatpush.bf16.msrb.mxu1 %v2181_v37 }
 0x13d   :  { %996 = vmatpush.bf16.msrb.mxu1 %v2180_v40 }
 0x141   :  { %997 = vmatpush.bf16.msrb.mxu1 %v2179_v43 }
 0x145   :  { %998 = vmatpush.bf16.msrb.mxu1 %v2178_v46 }
 0x19e   :  { %v192_v50 = vpop.xlane.xlu1 %191 }
 0x19f   :  { %2250 = vrcp.f32 %v192_v50 }
 0x1a5   :  { %v2251_v58 = vpop.eup %2250 }
 0x1a6   :  { %v189_v60 = vpop.xlane.xlu1 %188  ;;  %v196_v61 = vmul.f32 %v2251_v58, %v2506_v23  ;;  %v2152_v23 = vld [vmem:[%s2797_s2 + $0x10] sm:$0xff] }
 0x1a7   :  { %2252 = vrcp.f32 %v189_v60  ;;  %619 = vmatpush.bf16.msra.mxu0 %v2152_v23 }
 0x1a8   :  { %v198_v63 = vpack.c.bf16 %v196_v61, %v196_v61  ;;  %v2177_v61 = vld [vmem:[%s2797_s2 + $0xd8] sm:$0xff] }
 0x1aa   :  { %1620 = vmatmul.msk.bf16.vlgmr.msra.gmra.mxu3 %vm174_vm1, %v198_v63 }
 0x1ab   :  { %671 = vmatpush.bf16.msra.mxu3 %v2157_v20  ;;  %620 = vmatpush.bf16.msra.mxu0 %v2151_v27 }
 0x1ad   :  { %v2253_v6 = vpop.eup %2252 }
 0x1ae   :  { %v195_v9 = vmul.f32 %v2253_v6, %v2510_v26  ;;  %v2168_v26 = vld [vmem:[%s2797_s2 + $0x90] sm:$0xff]  ;;  %v552_v6 = vpop.f32.mrf.mxu0 }
 0x1af   :  { %672 = vmatpush.bf16.msra.mxu3 %v2156_v24  ;;  %621 = vmatpush.bf16.msra.mxu0 %v2150_v31 }
 0x1b0   :  { %v197_v11 = vpack.c.bf16 %v195_v9, %v195_v9  ;;  %v2175_v9 = vld [vmem:[%s2797_s2 + $0xc8] sm:$0xff] }
 0x1b2   :  { %1619 = vmatmul.msk.bf16.vlgmr.msra.gmra.mxu2 %vm174_vm1, %v197_v11  ;;  %vm1512_vm1 = vcmask 517120  }
 0x1b3   :  { %833 = vmatpush.bf16.msra.mxu2 %v2169_v22  ;;  %673 = vmatpush.bf16.msra.mxu3 %v2155_v28 }
 0x1b4   :  { %725 = vmatpush.bf16.msrb.mxu0 %v2161_v35  ;;  %v565_v35 = vpop.f32.mrf.mxu1 }
 0x1b6   :  { %v554_v13 = vpop.f32.mrf.mxu0 }
 0x1b7   :  { %834 = vmatpush.bf16.msra.mxu2 %v2168_v26  ;;  %674 = vmatpush.bf16.msra.mxu3 %v2154_v32  ;;  %v1993_v13 = vld [vmem:[#allocation4 + $0x68] sm:$0xf0] }
 0x1b8   :  { %726 = vmatpush.bf16.msrb.mxu0 %v2160_v38 }
 0x1ba   :  { %538 = vmatmul.bf16.vlgmr.msrb.gmra.mxu3 %v318_v14 }
 0x1bb   :  { %835 = vmatpush.bf16.msra.mxu2 %v2167_v30  ;;  %887 = vmatpush.bf16.msrb.mxu3 %v2173_v36 }
 0x1bc   :  { %727 = vmatpush.bf16.msrb.mxu0 %v2159_v41  ;;  %v567_v37 = vpop.f32.mrf.mxu1 }
 0x1bd   :  { %v1959_v37 = vld [vmem:[#allocation4 + $0x20] sm:$0xf] }
 0x1bf   :  { %836 = vmatpush.bf16.msra.mxu2 %v2166_v34  ;;  %888 = vmatpush.bf16.msrb.mxu3 %v2172_v39 }
 0x1c0   :  { %728 = vmatpush.bf16.msrb.mxu0 %v2158_v44 }
 0x1c2   :  { %525 = vmatmul.bf16.vlgmr.msrb.gmra.mxu2 %v317_v16 }
 0x1c3   :  { %889 = vmatpush.bf16.msrb.mxu3 %v2171_v42 }
 0x1c7   :  { %890 = vmatpush.bf16.msrb.mxu3 %v2170_v45 }
 0x22d   :  { %v238_v47 = vpop.f32.mrf.mxu3 }
 0x22e   :  { %v578_v48 = vpack.c.bf16 %v238_v47, %v238_v47 }
 0x230   :  { %v582_v49 = vunpack.c.l.b16 %v578_v48 }
 0x232   :  { %v583_v54 = vrot.slane %v582_v49, 7  ;;  %v745_v55 = vrot.slane %v582_v49, 2  ;;  %v799_v56 = vrot.slane %v582_v49, 3  ;;  %v691_v14 = vrot.slane %v582_v49, 1 }
 0x233   :  { %v853_v21 = vrot.slane %v582_v49, 4  ;;  %v961_v22 = vrot.slane %v582_v49, 6  ;;  %v907_v32 = vrot.slane %v582_v49, 5 }
 0x235   :  { %v219_v50 = vpop.f32.mrf.mxu2  ;;  %v240_v51 = vpop.f32.mrf.mxu3 }
 0x236   :  { %v577_v52 = vpack.c.bf16 %v219_v50, %v219_v50 }
 0x238   :  { %v581_v53 = vunpack.c.l.b16 %v577_v52 }
 0x23a   :  { %v585_v57 = vsel %vm584_vm3, %v583_v54, %v581_v53  ;;  %v637_v58 = vrot.slane %v581_v53, 1  ;;  %v744_v59 = vrot.slane %v581_v53, 3  ;;  %v798_v60 = vrot.slane %v581_v53, 4 }
 0x23b   :  { %v586_v62 = vpack.c.b16 %v585_v57, %v585_v57  ;;  %v690_v11 = vrot.slane %v581_v53, 2  ;;  %v852_v15 = vrot.slane %v581_v53, 5  ;;  %v960_v16 = vrot.slane %v581_v53, 7 }
 0x23c   :  { %v638_v63 = vsel %vm584_vm3, %v582_v49, %v637_v58  ;;  %v746_v0 = vsel %vm584_vm3, %v745_v55, %v744_v59  ;;  %v800_v1 = vsel %vm584_vm3, %v799_v56, %v798_v60  ;;  %v906_v31 = vrot.slane %v581_v53, 6 }
 0x23d   :  { %v221_v2 = vpop.f32.mrf.mxu2  ;;  %1765 = vmatmul.msk.bf16.vlgmr.msra.gmra.mxu0 %vm133_vm0, %v586_v62  ;;  %v639_v3 = vpack.c.b16 %v638_v63, %v638_v63  ;;  %v747_v4 = vpack.c.b16 %v746_v0, %v746_v0  ;;  %v801_v5 = vpack.c.b16 %v800_v1, %v800_v1  ;;  %v539_v8 = vpop.f32.mrf.mxu3  ;;  %v692_v20 = vsel %vm584_vm3, %v691_v14, %v690_v11  ;;  %v2194_v11 = vld [vmem:[#allocation4 + $0x64] sm:$0xf] }
 0x23e   :  { %941 = vmatpush.bf16.msra.mxu0 %v2177_v61  ;;  %v854_v24 = vsel %vm584_vm3, %v853_v21, %v852_v15  ;;  %v962_v25 = vsel %vm584_vm3, %v961_v22, %v960_v16  ;;  %v693_v27 = vpack.c.b16 %v692_v20, %v692_v20  ;;  %v908_v33 = vsel %vm584_vm3, %v907_v32, %v906_v31  ;;  %v1999_v2 = vld [vmem:[#allocation4 + $0x70] sm:$0xf]  ;;  %v1985_v20 = vld [vmem:[#allocation4 + $0x58] sm:$0xf0]  ;;  %v2189_v31 = vld [vmem:[#allocation4 + $0x34] sm:$0xf0] }
 0x23f   :  { %1790 = vmatmul.msk.bf16.vlgmr.msra.gmra.mxu3 %vm133_vm0, %v639_v3  ;;  %1840 = vmatmul.msk.bf16.vlgmr.msra.gmra.mxu1 %vm133_vm0, %v747_v4  ;;  %v855_v28 = vpack.c.b16 %v854_v24, %v854_v24  ;;  %v963_v29 = vpack.c.b16 %v962_v25, %v962_v25  ;;  %v909_v34 = vpack.c.b16 %v908_v33, %v908_v33  ;;  %v2351_v1 = vmov 128.0   ;;  %v2197_v3 = vld [vmem:[#allocation4 + $0x74] sm:$0xf0]  ;;  %v2196_v4 = vld [vmem:[#allocation4 + $0x74] sm:$0xf] }
 0x240   :  { %1865 = vmatmul.msk.bf16.vlgmr.msra.gmra.mxu2 %vm133_vm0, %v801_v5  ;;  %2254 = vrcp.f32 %v2351_v1  ;;  %v2000_v5 = vor.u32 %v2197_v3, %v1999_v2  ;;  %v1996_v14 = vor.u32 %v2194_v11, %v1993_v13  ;;  %v1983_v16 = vld [vmem:[#allocation4 + $0x50] sm:$0xf]  ;;  %v2191_v24 = vld [vmem:[#allocation4 + $0x44] sm:$0xf0]  ;;  %v2190_v25 = vld [vmem:[#allocation4 + $0x44] sm:$0xf] }
 0x241   :  { %v2188_v32 = vld [vmem:[#allocation4 + $0x34] sm:$0xf] }
 0x242   :  { %942 = vmatpush.bf16.msra.mxu0 %v2176_v7  ;;  %1151 = vmatpush.bf16.msrb.mxu2 %v2000_v5 }
 0x245   :  { %v526_v12 = vpop.f32.mrf.mxu2  ;;  %v541_v19 = vpop.f32.mrf.mxu3 }
 0x246   :  { %943 = vmatpush.bf16.msra.mxu0 %v2175_v9  ;;  %v527_v18 = vadd.f32 %v2236_v10, %v526_v12  ;;  %v1991_v9 = vld [vmem:[#allocation4 + $0x60] sm:$0xf]  ;;  %v2195_v10 = vld [vmem:[#allocation4 + $0x64] sm:$0xf0] }
 0x247   :  { %v1992_v12 = vor.u32 %v2195_v10, %v1991_v9  ;;  %v2238_v10 = vld [vmem:[%s2762_s9] ss:$0 sm:$0xff] }
 0x248   :  { %v540_v23 = vadd.f32 %v539_v8, %v527_v18  ;;  %v2255_v8 = vpop.eup %2254  ;;  %v2192_v18 = vld [vmem:[#allocation4 + $0x54] sm:$0xf] }
 0x249   :  { %v1012_v15 = vmul.f32 128.0, %v2255_v8  ;;  %1152 = vmatpush.bf16.msrb.mxu2 %v1992_v12  ;;  %v1988_v21 = vor.u32 %v2192_v18, %v1985_v20  ;;  %vm1016_vm5 = vweird.f32 %v2255_v8 }
 0x24a   :  { %944 = vmatpush.bf16.msra.mxu0 %v2174_v17  ;;  %v553_v26 = vadd.f32 %v552_v6, %v540_v23  ;;  %v2001_v6 = vld [vmem:[#allocation4 + $0x78] sm:$0xf0]  ;;  %v2193_v17 = vld [vmem:[#allocation4 + $0x54] sm:$0xf0]  ;;  %v1975_v23 = vld [vmem:[#allocation4 + $0x40] sm:$0xf] }
 0x24b   :  { %v2004_v7 = vor.u32 %v2196_v4, %v2001_v6  ;;  %v1984_v19 = vor.u32 %v2193_v17, %v1983_v16  ;;  %v1013_v22 = vsub.f32 1.0, %v1012_v15 }
 0x24c   :  { %v566_v36 = vadd.f32 %v565_v35, %v553_v26  ;;  %v1976_v26 = vor.u32 %v2191_v24, %v1975_v23 }
 0x24d   :  { %1815 = vmatmul.msk.bf16.vlgmr.msrb.gmra.mxu0 %vm133_vm0, %v693_v27  ;;  %v528_v30 = vpop.f32.mrf.mxu2  ;;  %1164 = vmatpush.bf16.msra.mxu3 %v2004_v7  ;;  %v1977_v27 = vld [vmem:[#allocation4 + $0x48] sm:$0xf0]  ;;  %v2237_v7 = vld [vmem:[%s2799_s27] ss:$0 sm:$0xff] }
 0x24e   :  { %1153 = vmatpush.bf16.msrb.mxu2 %v1984_v19  ;;  %v1967_v30 = vld [vmem:[#allocation4 + $0x30] sm:$0xf] }
 0x24f   :  { %1890 = vmatmul.msk.bf16.vlgmr.msrb.gmra.mxu3 %vm133_vm0, %v855_v28  ;;  %1940 = vmatmul.msk.bf16.vlgmr.msrb.gmra.mxu1 %vm133_vm0, %v963_v29  ;;  %v1980_v28 = vor.u32 %v2190_v25, %v1977_v27  ;;  %v1014_v29 = vmul.f32 %v2255_v8, %v1013_v22  ;;  %v1968_v33 = vor.u32 %v2189_v31, %v1967_v30  ;;  %v2352_v31 = vmov 256.0  }
 0x251   :  { %1165 = vmatpush.bf16.msra.mxu3 %v1996_v14 }
 0x252   :  { %1154 = vmatpush.bf16.msrb.mxu2 %v1976_v26 }
 0x255   :  { %1166 = vmatpush.bf16.msra.mxu3 %v1988_v21 }
 0x256   :  { %1155 = vmatpush.bf16.msrb.mxu2 %v1968_v33  ;;  %v2213_v33 = vld [vmem:[#allocation6 + $0x78] sm:$0xff] }
 0x257   :  { %1380 = vmatpush.bf16.msra.mxu1 %v2213_v33  ;;  %v2221_v33 = vld [vmem:[%s2771_s18 + $0x38] sm:$0xff] }
 0x259   :  { %1167 = vmatpush.bf16.msra.mxu3 %v1980_v28 }
 0x25d   :  { %1915 = vmatmul.msk.bf16.vlgmr.msra.gmra.mxu0 %vm133_vm0, %v909_v34  ;;  %v1969_v34 = vld [vmem:[#allocation4 + $0x38] sm:$0xf0] }
 0x25e   :  { %v1972_v35 = vor.u32 %v2188_v32, %v1969_v34  ;;  %v2205_v32 = vld [vmem:[#allocation6 + $0x38] sm:$0xff]  ;;  %v2204_v34 = vld [vmem:[#allocation6 + $0x30] sm:$0xff] }
 0x25f   :  { %1367 = vmatpush.bf16.msrb.mxu0 %v2205_v32 }
 0x260   :  { %1168 = vmatpush.bf16.msra.mxu3 %v1972_v35  ;;  %v2212_v35 = vld [vmem:[#allocation6 + $0x70] sm:$0xff] }
 0x261   :  { %1381 = vmatpush.bf16.msra.mxu1 %v2212_v35  ;;  %v2219_v35 = vld [vmem:[%s2771_s18 + $0x28] sm:$0xff] }
 0x263   :  { %1368 = vmatpush.bf16.msrb.mxu0 %v2204_v34  ;;  %v2220_v34 = vld [vmem:[%s2771_s18 + $0x30] sm:$0xff] }
 0x2ba   :  { %v623_v38 = vpop.f32.mrf.mxu0 }
 0x2bb   :  { %v627_v46 = vadd.f32 %v623_v38, %v566_v36  ;;  %v1015_v36 = vadd.f32 %v2255_v8, %v1014_v29  ;;  %v2187_v38 = vld [vmem:[#allocation4 + $0x24] sm:$0xf0] }
 0x2bc   :  { %v784_v39 = vpop.f32.mrf.mxu1 }
 0x2c2   :  { %v625_v40 = vpop.f32.mrf.mxu0  ;;  %v676_v41 = vpop.f32.mrf.mxu3 }
 0x2c3   :  { %v838_v42 = vpop.f32.mrf.mxu2  ;;  %v680_v49 = vadd.f32 %v676_v41, %v627_v46  ;;  %v1960_v41 = vor.u32 %v2187_v38, %v1959_v37  ;;  %v2184_v46 = vld [vmem:[#allocation4 + $0x14] sm:$0xf]  ;;  %v2203_v38 = vld [vmem:[#allocation6 + $0x28] sm:$0xff] }
 0x2c4   :  { %v786_v43 = vpop.f32.mrf.mxu1  ;;  %1369 = vmatpush.bf16.msrb.mxu0 %v2203_v38  ;;  %v2216_v38 = vld [vmem:[%s2771_s18 + $0x10] sm:$0xff] }
 0x2c5   :  { %1156 = vmatpush.bf16.msrb.mxu2 %v1960_v41  ;;  %v2202_v41 = vld [vmem:[#allocation6 + $0x20] sm:$0xff] }
 0x2c8   :  { %1370 = vmatpush.bf16.msrb.mxu0 %v2202_v41  ;;  %v2214_v41 = vld [vmem:[%s2771_s18] sm:$0xff] }
 0x2ca   :  { %v678_v44 = vpop.f32.mrf.mxu3  ;;  %v730_v45 = vpop.f32.mrf.mxu0 }
 0x2cb   :  { %v840_v47 = vpop.f32.mrf.mxu2  ;;  %v734_v50 = vadd.f32 %v730_v45, %v680_v49  ;;  %v1951_v44 = vld [vmem:[#allocation4 + $0x10] sm:$0xf]  ;;  %v2185_v45 = vld [vmem:[#allocation4 + $0x14] sm:$0xf0]  ;;  %v1953_v49 = vld [vmem:[#allocation4 + $0x18] sm:$0xf0] }
 0x2cc   :  { %v1000_v48 = vpop.f32.mrf.mxu1  ;;  %v2649_v47 = vsel %vm1016_vm5, %v2255_v8, %v1015_v36 }
 0x2cd   :  { %v788_v53 = vadd.f32 %v784_v39, %v734_v50  ;;  %v2186_v39 = vld [vmem:[#allocation4 + $0x24] sm:$0xf]  ;;  %v1956_v50 = vor.u32 %v2184_v46, %v1953_v49  ;;  %v2208_v49 = vld [vmem:[#allocation6 + $0x50] sm:$0xff] }
 0x2cf   :  { %v842_v55 = vadd.f32 %v838_v42, %v788_v53  ;;  %v1961_v42 = vld [vmem:[#allocation4 + $0x28] sm:$0xf0]  ;;  %v2182_v53 = vld [vmem:[#allocation4 + $0x4] sm:$0xf] }
 0x2d0   :  { %v1964_v43 = vor.u32 %v2186_v39, %v1961_v42  ;;  %v2211_v39 = vld [vmem:[#allocation6 + $0x68] sm:$0xff]  ;;  %v2210_v42 = vld [vmem:[#allocation6 + $0x60] sm:$0xff] }
 0x2d1   :  { %1382 = vmatpush.bf16.msra.mxu1 %v2211_v39  ;;  %v2215_v39 = vld [vmem:[%s2771_s18 + $0x8] sm:$0xff] }
 0x2d2   :  { %v732_v51 = vpop.f32.mrf.mxu0  ;;  %v892_v52 = vpop.f32.mrf.mxu3  ;;  %1169 = vmatpush.bf16.msra.mxu3 %v1964_v43 }
 0x2d3   :  { %v896_v56 = vadd.f32 %v892_v52, %v842_v55  ;;  %v1943_v51 = vld [vmem:[#allocation4] sm:$0xf]  ;;  %v2183_v52 = vld [vmem:[#allocation4 + $0x4] sm:$0xf0] }
 0x2d4   :  { %v1002_v54 = vpop.f32.mrf.mxu1 }
 0x2d5   :  { %v1945_v54 = vld [vmem:[#allocation4 + $0x8] sm:$0xf0]  ;;  %1383 = vmatpush.bf16.msra.mxu1 %v2210_v42 }
 0x2d6   :  { %1170 = vmatpush.bf16.msra.mxu3 %v1956_v50  ;;  %v2199_v50 = vld [vmem:[#allocation6 + $0x8] sm:$0xff] }
 0x2da   :  { %v894_v57 = vpop.f32.mrf.mxu3  ;;  %v946_v58 = vpop.f32.mrf.mxu0 }
 0x2db   :  { %v950_v59 = vadd.f32 %v946_v58, %v896_v56  ;;  %v1944_v56 = vor.u32 %v2183_v52, %v1943_v51  ;;  %v1948_v57 = vor.u32 %v2182_v53, %v1945_v54  ;;  %v2207_v51 = vld [vmem:[#allocation6 + $0x48] sm:$0xff]  ;;  %v2198_v54 = vld [vmem:[#allocation6] sm:$0xff] }
 0x2dd   :  { %v2642_v60 = vadd.f32 %v1000_v48, %v950_v59  ;;  %v1952_v48 = vor.u32 %v2185_v45, %v1951_v44  ;;  %1171 = vmatpush.bf16.msra.mxu3 %v1948_v57  ;;  %v2201_v44 = vld [vmem:[#allocation6 + $0x18] sm:$0xff] }
 0x2de   :  { %v2209_v45 = vld [vmem:[#allocation6 + $0x58] sm:$0xff]  ;;  %1371 = vmatpush.bf16.msrb.mxu0 %v2201_v44 }
 0x2df   :  { %v1008_v61 = vsel %vm1007_vm4, %v2642_v60, 0.0  ;;  %v1019_v63 = vmul.f32 %v2642_v60, %v2642_v60  ;;  %1157 = vmatpush.bf16.msrb.mxu2 %v1952_v48  ;;  %1384 = vmatpush.bf16.msra.mxu1 %v2209_v45  ;;  %v2200_v48 = vld [vmem:[#allocation6 + $0x10] sm:$0xff] }
 0x2e0   :  { %1009 = vadd.xlane.f32.xlu2 %v1008_v61 }
 0x2e1   :  { %v1020_v0 = vsel %vm1007_vm4, %v1019_v63, 0.0 }
 0x2e2   :  { %v948_v62 = vpop.f32.mrf.mxu0  ;;  %1372 = vmatpush.bf16.msrb.mxu0 %v2200_v48 }
 0x2e3   :  { %1158 = vmatpush.bf16.msrb.mxu2 %v1944_v56  ;;  %1385 = vmatpush.bf16.msra.mxu1 %v2208_v49 }
 0x2e6   :  { %1373 = vmatpush.bf16.msrb.mxu0 %v2199_v50 }
 0x2e7   :  { %1386 = vmatpush.bf16.msra.mxu1 %v2207_v51  ;;  %1497 = vmatpush.bf16.msra.mxu2 %v2221_v33 }
 0x2e8   :  { %1021 = vadd.xlane.f32.xlu2 %v1020_v0 }
 0x2ea   :  { %1374 = vmatpush.bf16.msrb.mxu0 %v2198_v54 }
 0x2eb   :  { %1498 = vmatpush.bf16.msra.mxu2 %v2220_v34  ;;  %v2244_v34 = vld [vmem:[%s2774_s21] ss:$0 sm:$0xff] }
 0x2ef   :  { %1499 = vmatpush.bf16.msra.mxu2 %v2219_v35 }
 0x353   :  { %v1010_v40 = vpop.xlane.xlu2 %1009 }
 0x354   :  { %v1018_v55 = vmul.f32 %v2649_v47, %v1010_v40 }
 0x356   :  { %v1024_v59 = vmul.f32 %v1018_v55, %v1018_v55  ;;  %v1026_v6 = vsub.f32 %v2642_v60, %v1018_v55  ;;  %v1065_v60 = vld [vmem:[%s2764_s11] sm:$0x3]  ;;  %v2206_v55 = vld [vmem:[#allocation6 + $0x40] sm:$0xff] }
 0x357   :  { %v1067_v15 = vperm.slane %v1065_v60, 0  ;;  %v1068_v16 = vperm.slane %v1065_v60, 1  ;;  %1387 = vmatpush.bf16.msra.mxu1 %v2206_v55 }
 0x35b   :  { %v1022_v58 = vpop.xlane.xlu2 %1021 }
 0x35c   :  { %v1023_v61 = vmul.f32 %v1022_v58, %v2649_v47 }
 0x35e   :  { %v1025_v62 = vsub.f32 %v1023_v61, %v1024_v59 }
 0x360   :  { %v1027_v63 = vadd.f32 1e-05, %v1025_v62 }
 0x362   :  { %2256 = vrsqrt.f32 %v1027_v63  ;;  %vm1034_vm7 = vweird.f32 %v1027_v63 }
 0x363   :  { %2258 = vrcp.f32 %v2352_v31 }
 0x368   :  { %v2257_v0 = vpop.eup %2256 }
 0x369   :  { %v1029_v1 = vmul.f32 %v2257_v0, %v1027_v63  ;;  %vm1035_vm6 = vweird.f32 %v2257_v0  ;;  %v2259_v36 = vpop.eup %2258 }
 0x36a   :  { %vm1036_vm8 = vmor %vm1034_vm7, %vm1035_vm6  ;;  %v1185_v37 = vmul.f32 256.0, %v2259_v36  ;;  %vm1189_vm9 = vweird.f32 %v2259_v36  ;;  %vm1609_vm7 = vcmask 58368  }
 0x36b   :  { %v1030_v2 = vmul.f32 %v2257_v0, %v1029_v1 }
 0x36c   :  { %v1186_v40 = vsub.f32 1.0, %v1185_v37  ;;  %v2217_v37 = vld [vmem:[%s2771_s18 + $0x18] sm:$0xff] }
 0x36d   :  { %v1031_v3 = vmul.f32 0.5, %v1030_v2 }
 0x36e   :  { %v1187_v43 = vmul.f32 %v2259_v36, %v1186_v40 }
 0x36f   :  { %v1032_v4 = vsub.f32 1.5, %v1031_v3 }
 0x370   :  { %v1188_v46 = vadd.f32 %v2259_v36, %v1187_v43 }
 0x371   :  { %v1033_v5 = vmul.f32 %v2257_v0, %v1032_v4  ;;  %v1177_v4 = vld [vmem:[%s2765_s12] sm:$0x3] }
 0x372   :  { %v1190_v52 = vsel %vm1189_vm9, %v2259_v36, %v1188_v46  ;;  %v2218_v36 = vld [vmem:[%s2771_s18 + $0x20] sm:$0xff] }
 0x373   :  { %v1037_v8 = vsel %vm1036_vm8, %v2257_v0, %v1033_v5  ;;  %1500 = vmatpush.bf16.msra.mxu2 %v2218_v36 }
 0x374   :  { %v1038_v9 = vmul.f32 %v1037_v8, %v1026_v6  ;;  %v1178_v6 = vld [vmem:[%s2766_s13] sm:$0x3] }
 0x375   :  { %v1226_v60 = vperm.slane %v1178_v6, 1 }
 0x376   :  { %v1042_v11 = vmul.f32 %v2237_v7, %v1038_v9  ;;  %v1218_v9 = vperm.slane %v1177_v4, 0 }
 0x377   :  { %1501 = vmatpush.bf16.msra.mxu2 %v2217_v37 }
 0x378   :  { %v1046_v12 = vadd.f32 %v2238_v10, %v1042_v11  ;;  %v1219_v10 = vperm.slane %v1177_v4, 1 }
 0x37a   :  { %v1047_v13 = vmax.f32 %v1046_v12, 0.0 }
 0x37b   :  { %1502 = vmatpush.bf16.msra.mxu2 %v2216_v38 }
 0x37c   :  { %v1064_v14 = vpack.c.bf16 %v1047_v13, %v1047_v13 }
 0x37e   :  { %1159 = vmatmul.bf16.vlgmr.msrb.gmra.mxu2 %v1064_v14  ;;  %1172 = vmatmul.bf16.vlgmr.msra.gmra.mxu3 %v1064_v14  ;;  %v1225_v14 = vperm.slane %v1178_v6, 0 }
 0x37f   :  { %1503 = vmatpush.bf16.msra.mxu2 %v2215_v39  ;;  %v2245_v39 = vld [vmem:[%s2776_s23] ss:$0 sm:$0xff] }
 0x383   :  { %1504 = vmatpush.bf16.msra.mxu2 %v2214_v41 }
 0x401   :  { %v1160_v17 = vpop.f32.mrf.mxu2  ;;  %v1173_v18 = vpop.f32.mrf.mxu3 }
 0x402   :  { %v2663_v19 = vadd.f32 %v1160_v17, %v1067_v15  ;;  %v2665_v20 = vadd.f32 %v1173_v18, %v1068_v16 }
 0x404   :  { %v1179_v21 = vsel %vm1007_vm4, %v2663_v19, 0.0  ;;  %v1180_v22 = vsel %vm1007_vm4, %v2665_v20, 0.0  ;;  %v1192_v23 = vmul.f32 %v2663_v19, %v2663_v19  ;;  %v1193_v24 = vmul.f32 %v2665_v20, %v2665_v20 }
 0x405   :  { %v1181_v25 = vadd.f32 %v1180_v22, %v1179_v21 }
 0x406   :  { %v1194_v26 = vsel %vm1007_vm4, %v1192_v23, 0.0  ;;  %v1195_v27 = vsel %vm1007_vm4, %v1193_v24, 0.0 }
 0x407   :  { %1182 = vadd.xlane.f32.xlu0 %v1181_v25  ;;  %v1196_v28 = vadd.f32 %v1195_v27, %v1194_v26 }
 0x409   :  { %v1162_v29 = vpop.f32.mrf.mxu2  ;;  %v1175_v30 = vpop.f32.mrf.mxu3  ;;  %1197 = vadd.xlane.f32.xlu1 %v1196_v28 }
 0x47a   :  { %v1183_v53 = vpop.xlane.xlu0 %1182 }
 0x47b   :  { %v1191_v56 = vmul.f32 %v1190_v52, %v1183_v53 }
 0x47c   :  { %v1198_v57 = vpop.xlane.xlu1 %1197 }
 0x47d   :  { %v1199_v58 = vmul.f32 %v1198_v57, %v1190_v52  ;;  %v1200_v59 = vmul.f32 %v1191_v56, %v1191_v56  ;;  %v1202_v7 = vsub.f32 %v2663_v19, %v1191_v56  ;;  %v1203_v8 = vsub.f32 %v2665_v20, %v1191_v56  ;;  %v2239_v19 = vld [vmem:[%s2768_s15] ss:$0 sm:$0xff] }
 0x47e   :  { %v2240_v56 = vld [vmem:[%s2769_s16] ss:$0 sm:$0xff] }
 0x47f   :  { %v1201_v61 = vsub.f32 %v1199_v58, %v1200_v59  ;;  %v2241_v58 = vld [vmem:[%s2770_s17] ss:$0 sm:$0xff] }
 0x481   :  { %v1204_v62 = vadd.f32 1e-05, %v1201_v61 }
 0x483   :  { %2260 = vrsqrt.f32 %v1204_v62  ;;  %vm1211_vm11 = vweird.f32 %v1204_v62 }
 0x489   :  { %v2261_v63 = vpop.eup %2260 }
 0x48a   :  { %v1206_v0 = vmul.f32 %v2261_v63, %v1204_v62  ;;  %vm1212_vm10 = vweird.f32 %v2261_v63 }
 0x48b   :  { %vm1213_vm12 = vmor %vm1211_vm11, %vm1212_vm10 }
 0x48c   :  { %v1207_v1 = vmul.f32 %v2261_v63, %v1206_v0  ;;  %v2242_v0 = vld [vmem:[%s2772_s19] ss:$0 sm:$0xff] }
 0x48e   :  { %v1208_v2 = vmul.f32 0.5, %v1207_v1 }
 0x490   :  { %v1209_v3 = vsub.f32 1.5, %v1208_v2 }
 0x492   :  { %v1210_v5 = vmul.f32 %v2261_v63, %v1209_v3 }
 0x494   :  { %v1214_v11 = vsel %vm1213_vm12, %v2261_v63, %v1210_v5 }
 0x495   :  { %v1215_v12 = vmul.f32 %v1214_v11, %v1202_v7  ;;  %v1216_v13 = vmul.f32 %v1214_v11, %v1203_v8  ;;  %v2353_v7 = vmov 64.0  }
 0x497   :  { %v1222_v15 = vmul.f32 %v1218_v9, %v1215_v12  ;;  %v1223_v16 = vmul.f32 %v1219_v10, %v1216_v13  ;;  %v2225_v12 = vld [vmem:[%s2775_s22 + $0x18] sm:$0xff] }
 0x498   :  { %1597 = vmatpush.bf16.msrb.mxu3 %v2225_v12 }
 0x499   :  { %v1229_v17 = vadd.f32 %v1225_v14, %v1222_v15  ;;  %v1230_v18 = vadd.f32 %v1226_v60, %v1223_v16  ;;  %v2224_v14 = vld [vmem:[%s2775_s22 + $0x10] sm:$0xff]  ;;  %v2223_v60 = vld [vmem:[%s2775_s22 + $0x8] sm:$0xff] }
 0x49b   :  { %v1231_v21 = vmax.f32 %v1229_v17, 0.0  ;;  %v1232_v22 = vmax.f32 %v1230_v18, 0.0  ;;  %v2222_v17 = vld [vmem:[%s2775_s22] sm:$0xff] }
 0x49c   :  { %1598 = vmatpush.bf16.msrb.mxu3 %v2224_v14 }
 0x49d   :  { %v1265_v23 = vpack.c.bf16 %v1231_v21, %v1231_v21  ;;  %v1266_v24 = vpack.c.bf16 %v1232_v22, %v1232_v22 }
 0x49f   :  { %1375 = vmatmul.bf16.vlgmr.msrb.gmra.mxu0 %v1265_v23  ;;  %1388 = vmatmul.bf16.vlgmr.msra.gmra.mxu1 %v1266_v24 }
 0x4a0   :  { %1599 = vmatpush.bf16.msrb.mxu3 %v2223_v60 }
 0x4a4   :  { %1600 = vmatpush.bf16.msrb.mxu3 %v2222_v17 }
 0x51c   :  { %v1376_v20 = vpop.f32.mrf.mxu0  ;;  %v1389_v25 = vpop.f32.mrf.mxu1 }
 0x51d   :  { %v1377_v26 = vadd.f32 %v2239_v19, %v1376_v20 }
 0x51f   :  { %v1390_v27 = vadd.f32 %v1389_v25, %v1377_v26 }
 0x521   :  { %v1395_v28 = vsel %vm1007_vm4, %v1390_v27, 0.0  ;;  %v1399_v29 = vmul.f32 %v1390_v27, %v1390_v27 }
 0x522   :  { %1396 = vadd.xlane.f32.xlu2 %v1395_v28 }
 0x523   :  { %v1400_v30 = vsel %vm1007_vm4, %v1399_v29, 0.0 }
 0x524   :  { %v1378_v31 = vpop.f32.mrf.mxu0  ;;  %v1391_v32 = vpop.f32.mrf.mxu1  ;;  %1401 = vadd.xlane.f32.xlu0 %v1400_v30 }
 0x525   :  { %v2243_v31 = vld [vmem:[%s2773_s20] ss:$0 sm:$0xff]  ;;  %s2800_s20 = sld [smem:[#allocation13_spill]] }
 0x595   :  { %v1397_v40 = vpop.xlane.xlu2 %1396 }
 0x596   :  { %v1398_v42 = vmul.f32 %v1397_v40, %v2649_v47  ;;  %v1606_v40 = vld [vmem:[%s2800_s20] sm:$0x3] }
 0x597   :  { %v1402_v43 = vpop.xlane.xlu0 %1401  ;;  %vm1607_vm6 = vcmp.eq.f32.partialorder %v1606_v40, 0.0 }
 0x598   :  { %v1404_v44 = vmul.f32 %v1398_v42, %v1398_v42  ;;  %v1403_v45 = vmul.f32 %v1402_v43, %v2649_v47  ;;  %v1406_v55 = vsub.f32 %v1390_v27, %v1398_v42 }
 0x59a   :  { %v1405_v46 = vsub.f32 %v1403_v45, %v1404_v44 }
 0x59c   :  { %v1407_v48 = vadd.f32 1e-05, %v1405_v46 }
 0x59e   :  { %2262 = vrsqrt.f32 %v1407_v48  ;;  %vm1414_vm14 = vweird.f32 %v1407_v48 }
 0x59f   :  { %2264 = vrcp.f32 %v2353_v7 }
 0x5a4   :  { %v2263_v49 = vpop.eup %2262 }
 0x5a5   :  { %v1409_v50 = vmul.f32 %v2263_v49, %v1407_v48  ;;  %vm1415_vm13 = vweird.f32 %v2263_v49  ;;  %v2265_v8 = vpop.eup %2264 }
 0x5a6   :  { %vm1416_vm15 = vmor %vm1414_vm14, %vm1415_vm13  ;;  %v1517_v9 = vmul.f32 64.0, %v2265_v8  ;;  %vm1521_vm2 = vweird.f32 %v2265_v8 }
 0x5a7   :  { %v1410_v51 = vmul.f32 %v2263_v49, %v1409_v50 }
 0x5a8   :  { %v1518_v10 = vsub.f32 1.0, %v1517_v9 }
 0x5a9   :  { %v1411_v52 = vmul.f32 0.5, %v1410_v51 }
 0x5aa   :  { %v1519_v11 = vmul.f32 %v2265_v8, %v1518_v10 }
 0x5ab   :  { %v1412_v53 = vsub.f32 1.5, %v1411_v52 }
 0x5ac   :  { %v1520_v13 = vadd.f32 %v2265_v8, %v1519_v11 }
 0x5ad   :  { %v1413_v54 = vmul.f32 %v2263_v49, %v1412_v53 }
 0x5ae   :  { %v1522_v15 = vsel %vm1521_vm2, %v2265_v8, %v1520_v13 }
 0x5af   :  { %v1417_v57 = vsel %vm1416_vm15, %v2263_v49, %v1413_v54 }
 0x5b0   :  { %v1418_v47 = vmul.f32 %v1417_v57, %v1406_v55 }
 0x5b2   :  { %v1422_v59 = vmul.f32 %v2240_v56, %v1418_v47 }
 0x5b4   :  { %v1426_v61 = vadd.f32 %v2241_v58, %v1422_v59 }
 0x5b6   :  { %v1427_v62 = vmax.f32 %v1426_v61, 0.0 }
 0x5b8   :  { %v1444_v63 = vpack.c.bf16 %v1427_v62, %v1427_v62 }
 0x5ba   :  { %1505 = vmatmul.bf16.vlgmr.msra.gmra.mxu2 %v1444_v63 }
 0x63d   :  { %v1506_v1 = vpop.f32.mrf.mxu2 }
 0x63e   :  { %v1507_v2 = vadd.f32 %v2242_v0, %v1506_v1 }
 0x640   :  { %v1513_v3 = vsel %vm1512_vm1, %v1507_v2, 0.0  ;;  %v1524_v4 = vmul.f32 %v1507_v2, %v1507_v2 }
 0x641   :  { %1514 = vadd.xlane.f32.xlu1 %v1513_v3 }
 0x642   :  { %v1525_v5 = vsel %vm1512_vm1, %v1524_v4, 0.0 }
 0x643   :  { %1526 = vadd.xlane.f32.xlu2 %v1525_v5 }
 0x645   :  { %v1508_v6 = vpop.f32.mrf.mxu2 }
 0x6b4   :  { %v1515_v16 = vpop.xlane.xlu1 %1514 }
 0x6b5   :  { %v1523_v18 = vmul.f32 %v1522_v15, %v1515_v16 }
 0x6b6   :  { %v1527_v21 = vpop.xlane.xlu2 %1526 }
 0x6b7   :  { %v1529_v22 = vmul.f32 %v1523_v18, %v1523_v18  ;;  %v1528_v23 = vmul.f32 %v1527_v21, %v1522_v15  ;;  %v1531_v30 = vsub.f32 %v1507_v2, %v1523_v18 }
 0x6b9   :  { %v1530_v24 = vsub.f32 %v1528_v23, %v1529_v22 }
 0x6bb   :  { %v1532_v19 = vadd.f32 1e-05, %v1530_v24 }
 0x6bd   :  { %2266 = vrsqrt.f32 %v1532_v19  ;;  %vm1539_vm4 = vweird.f32 %v1532_v19 }
 0x6c3   :  { %v2267_v20 = vpop.eup %2266 }
 0x6c4   :  { %v1534_v25 = vmul.f32 %v2267_v20, %v1532_v19  ;;  %vm1540_vm3 = vweird.f32 %v2267_v20 }
 0x6c5   :  { %vm1541_vm5 = vmor %vm1539_vm4, %vm1540_vm3 }
 0x6c6   :  { %v1535_v26 = vmul.f32 %v2267_v20, %v1534_v25 }
 0x6c8   :  { %v1536_v27 = vmul.f32 0.5, %v1535_v26 }
 0x6ca   :  { %v1537_v28 = vsub.f32 1.5, %v1536_v27 }
 0x6cc   :  { %v1538_v29 = vmul.f32 %v2267_v20, %v1537_v28 }
 0x6ce   :  { %v1542_v32 = vsel %vm1541_vm5, %v2267_v20, %v1538_v29 }
 0x6cf   :  { %v1543_v33 = vmul.f32 %v1542_v32, %v1531_v30 }
 0x6d1   :  { %v1547_v35 = vmul.f32 %v2243_v31, %v1543_v33 }
 0x6d3   :  { %v1551_v36 = vadd.f32 %v2244_v34, %v1547_v35 }
 0x6d5   :  { %v1552_v37 = vmax.f32 %v1551_v36, 0.0 }
 0x6d7   :  { %v1561_v38 = vpack.c.bf16 %v1552_v37, %v1552_v37 }
 0x6d9   :  { %2117 = vmatmul.msk.bf16.vlgmr.msrb.gmra.mxu3 %vm133_vm0, %v1561_v38 }
 0x75c   :  { %v1602_v41 = vpop.f32.mrf.mxu3 }
 0x75d   :  { %v1603_v42 = vadd.f32 %v2245_v39, %v1602_v41 }
 0x75f   :  { %v1608_v43 = vsel %vm1607_vm6, -1e-06, %v1603_v42 }
 0x760   :  { %1610 = vst.msk [vmem:[%s2801_s28] sm:$0x3] %vm1609_vm7, %v1608_v43 }
 0x764   :  { %v1604_v44 = vpop.f32.mrf.mxu3 }
 0x765   :  { %1615 = vsyncpa [#allocation3], 1 }
 0x766   :  { %1616 = vsyncpa [#allocation5], 1 }

// kernel: obstacle_head_forward.9
= control target key start
LH: loop header
LB: loop body
LE: loop exit
PB: predicated region body
PF: predicated region fallthrough
CT: control target
= control target key end

     0   :  { %v18_v0 = vlaneseq  ;;  %vm69_vm0 = vcmask 1041408   ;;  %vm77_vm1 = vcmask 1041409   ;;  %vm79_vm2 = vcmask 1043459   ;;  %s207_s0 = inlined_call_operand.vmem [shape: f32[2,8], index: 0, kind: input, shape index: {}]   ;;  %s208_s1 = inlined_call_operand.vmem [shape: f32[2,8,256], index: 1, kind: input, shape index: {}]   ;;  %s209_s2 = inlined_call_operand.vmem [shape: f32[2,8,256], index: 2, kind: input, shape index: {}]   ;;  %s210_s3 = inlined_call_operand.vmem [shape: f32[2,256], index: 3, kind: output, shape index: {0}]   ;;  %s211_s4 = inlined_call_operand.vmem [shape: f32[2,256], index: 4, kind: output, shape index: {1}]  }
   0x1   :  { %v16_v2 = vld [vmem:[%s207_s0] sm:$0x3]  ;;  %v33_v5 = vld [vmem:[%s208_s1 + $0x10] sm:$0xff]  ;;  %v34_v6 = vld [vmem:[%s208_s1 + $0x18] sm:$0xff]  ;;  %vm81_vm3 = vcmask 1045509   ;;  %vm83_vm4 = vcmask 1047559  }
   0x2   :  { %v19_v1 = vshrl.u32 %v18_v0, 7  ;;  %v24_v3 = vperm.slane %v16_v2, 1  ;;  %v17_v4 = vperm.slane %v16_v2, 0  ;;  %v89_v7 = vld [vmem:[%s209_s2 + $0x10] sm:$0xff]  ;;  %v90_v8 = vld [vmem:[%s209_s2 + $0x18] sm:$0xff]  ;;  %v31_v22 = vld [vmem:[%s208_s1] sm:$0xff] }
   0x3   :  { %v32_v26 = vld [vmem:[%s208_s1 + $0x8] sm:$0xff]  ;;  %v87_v27 = vld [vmem:[%s209_s2] sm:$0xff] }
   0x4   :  { %144 = vset.pattern.permute.xlu0 %v19_v1  ;;  %v88_v28 = vld [vmem:[%s209_s2 + $0x8] sm:$0xff] }
   0xc   :  { %29 = vperm.xlu0 %144, %v24_v3  }
  0x14   :  { %22 = vperm.xlu0 %144, %v17_v4  }
  0x7e   :  { %v30_v9 = vpop.permute.xlu0 %29 }
  0x7f   :  { %v37_v10 = vmul.f32 %v33_v5, %v30_v9  ;;  %v38_v11 = vmul.f32 %v34_v6, %v30_v9  ;;  %v93_v12 = vmul.f32 %v89_v7, %v30_v9  ;;  %v94_v13 = vmul.f32 %v90_v8, %v30_v9 }
  0x81   :  { %v51_v14 = vrot.slane %v37_v10, 4  ;;  %v57_v15 = vrot.slane %v38_v11, 4  ;;  %v107_v16 = vrot.slane %v93_v12, 4  ;;  %v113_v17 = vrot.slane %v94_v13, 4 }
  0x83   :  { %v52_v18 = vadd.f32 %v51_v14, %v37_v10  ;;  %v58_v19 = vadd.f32 %v57_v15, %v38_v11  ;;  %v108_v20 = vadd.f32 %v107_v16, %v93_v12  ;;  %v114_v21 = vadd.f32 %v113_v17, %v94_v13 }
  0x85   :  { %v53_v23 = vrot.slane %v52_v18, 2  ;;  %v59_v24 = vrot.slane %v58_v19, 2  ;;  %v115_v25 = vrot.slane %v114_v21, 2  ;;  %v109_v31 = vrot.slane %v108_v20, 2 }
  0x86   :  { %v23_v29 = vpop.permute.xlu0 %22 }
  0x87   :  { %v60_v30 = vadd.f32 %v59_v24, %v58_v19  ;;  %v116_v32 = vadd.f32 %v115_v25, %v114_v21  ;;  %v35_v33 = vmul.f32 %v31_v22, %v23_v29  ;;  %v36_v34 = vmul.f32 %v32_v26, %v23_v29 }
  0x88   :  { %v91_v35 = vmul.f32 %v87_v27, %v23_v29  ;;  %v92_v36 = vmul.f32 %v88_v28, %v23_v29  ;;  %v54_v37 = vadd.f32 %v53_v23, %v52_v18  ;;  %v110_v45 = vadd.f32 %v109_v31, %v108_v20 }
  0x89   :  { %v61_v38 = vrot.slane %v60_v30, 1  ;;  %v117_v39 = vrot.slane %v116_v32, 1  ;;  %v39_v40 = vrot.slane %v35_v33, 4  ;;  %v45_v41 = vrot.slane %v36_v34, 4 }
  0x8a   :  { %v95_v42 = vrot.slane %v91_v35, 4  ;;  %v101_v43 = vrot.slane %v92_v36, 4  ;;  %v55_v50 = vrot.slane %v54_v37, 1  ;;  %v111_v56 = vrot.slane %v110_v45, 1 }
  0x8b   :  { %v62_v44 = vadd.f32 %v61_v38, %v60_v30  ;;  %v40_v46 = vadd.f32 %v39_v40, %v35_v33  ;;  %v46_v47 = vadd.f32 %v45_v41, %v36_v34  ;;  %v118_v51 = vadd.f32 %v117_v39, %v116_v32 }
  0x8c   :  { %v96_v48 = vadd.f32 %v95_v42, %v91_v35  ;;  %v102_v49 = vadd.f32 %v101_v43, %v92_v36  ;;  %v56_v63 = vadd.f32 %v55_v50, %v54_v37  ;;  %v112_v2 = vadd.f32 %v111_v56, %v110_v45 }
  0x8d   :  { %v41_v52 = vrot.slane %v40_v46, 2  ;;  %v47_v53 = vrot.slane %v46_v47, 2  ;;  %v68_v57 = vrot.slane %v62_v44, 6  ;;  %v124_v60 = vrot.slane %v118_v51, 6 }
  0x8e   :  { %v97_v54 = vrot.slane %v96_v48, 2  ;;  %v103_v55 = vrot.slane %v102_v49, 2 }
  0x8f   :  { %v42_v58 = vadd.f32 %v41_v52, %v40_v46  ;;  %v48_v59 = vadd.f32 %v47_v53, %v46_v47  ;;  %v71_v5 = vsel %vm69_vm0, %v56_v63, %v68_v57  ;;  %v126_v7 = vsel %vm69_vm0, %v112_v2, %v124_v60 }
  0x90   :  { %v98_v61 = vadd.f32 %v97_v54, %v96_v48  ;;  %v104_v62 = vadd.f32 %v103_v55, %v102_v49  ;;  %v76_v11 = vrot.slane %v71_v5, 7  ;;  %v129_v14 = vrot.slane %v126_v7, 7 }
  0x91   :  { %v43_v0 = vrot.slane %v42_v58, 1  ;;  %v49_v1 = vrot.slane %v48_v59, 1 }
  0x92   :  { %v99_v3 = vrot.slane %v98_v61, 1  ;;  %v105_v4 = vrot.slane %v104_v62, 1 }
  0x93   :  { %v50_v6 = vadd.f32 %v49_v1, %v48_v59  ;;  %v44_v9 = vadd.f32 %v43_v0, %v42_v58 }
  0x94   :  { %v106_v8 = vadd.f32 %v105_v4, %v104_v62  ;;  %v100_v12 = vadd.f32 %v99_v3, %v98_v61 }
  0x95   :  { %v67_v10 = vrot.slane %v50_v6, 6 }
  0x96   :  { %v123_v13 = vrot.slane %v106_v8, 6 }
  0x97   :  { %v70_v15 = vsel %vm69_vm0, %v44_v9, %v67_v10 }
  0x98   :  { %v78_v16 = vsel %vm77_vm1, %v76_v11, %v70_v15  ;;  %v125_v17 = vsel %vm69_vm0, %v100_v12, %v123_v13 }
  0x99   :  { %v80_v18 = vsel %vm79_vm2, %v76_v11, %v78_v16  ;;  %v130_v19 = vsel %vm77_vm1, %v129_v14, %v125_v17 }
  0x9a   :  { %v82_v20 = vsel %vm81_vm3, %v76_v11, %v80_v18  ;;  %v131_v21 = vsel %vm79_vm2, %v129_v14, %v130_v19 }
  0x9b   :  { %v84_v22 = vsel %vm83_vm4, %v76_v11, %v82_v20  ;;  %v132_v23 = vsel %vm81_vm3, %v129_v14, %v131_v21 }
  0x9c   :  { %86 = vst [vmem:[%s210_s3] sm:$0xf] %v84_v22  ;;  %v133_v24 = vsel %vm83_vm4, %v129_v14, %v132_v23 }
  0x9d   :  { %135 = vst [vmem:[%s211_s4] sm:$0xf] %v133_v24 }

// kernel: obstacle_head_forward.6
= control target key start
LH: loop header
LB: loop body
LE: loop exit
PB: predicated region body
PF: predicated region fallthrough
CT: control target
= control target key end

     0   :  { %s4759_s0 = inlined_call_operand.vmem [shape: f32[2,128], index: 0, kind: input, shape index: {}]   ;;  %s4760_s1 = inlined_call_operand.vmem [shape: f32[2,1024], index: 1, kind: input, shape index: {}]   ;;  %s4761_s2 = inlined_call_operand.hbm [shape: bf16[128,256], index: 2, kind: input, shape index: {}]   ;;  %s4762_s3 = inlined_call_operand.hbm [shape: f32[1,256], index: 3, kind: input, shape index: {}]   ;;  %s4763_s4 = inlined_call_operand.hbm [shape: f32[1,256], index: 4, kind: input, shape index: {}]   ;;  %s4764_s5 = inlined_call_operand.hbm [shape: f32[1,256], index: 5, kind: input, shape index: {}]   ;;  %s4765_s6 = inlined_call_operand.hbm [shape: bf16[256,128], index: 6, kind: input, shape index: {}]   ;;  %s4766_s7 = inlined_call_operand.hbm [shape: f32[1,128], index: 7, kind: input, shape index: {}]   ;;  %s4767_s8 = inlined_call_operand.hbm [shape: f32[1,128], index: 8, kind: input, shape index: {}]   ;;  %s4768_s9 = inlined_call_operand.hbm [shape: f32[1,128], index: 9, kind: input, shape index: {}]   ;;  %s4769_s10 = inlined_call_operand.vmem [shape: bf16[128,512], index: 10, kind: input, shape index: {}]   ;;  %s4770_s11 = inlined_call_operand.hbm [shape: f32[1,512], index: 11, kind: input, shape index: {}]   ;;  %s4771_s12 = inlined_call_operand.hbm [shape: bf16[1024,256], index: 12, kind: input, shape index: {}]   ;;  %s4772_s13 = inlined_call_operand.vmem [shape: f32[1,256], index: 13, kind: input, shape index: {}]   ;;  %s4773_s14 = inlined_call_operand.vmem [shape: f32[1,256], index: 14, kind: input, shape index: {}]   ;;  %s4774_s15 = inlined_call_operand.vmem [shape: f32[1,256], index: 15, kind: input, shape index: {}]   ;;  %s4775_s16 = inlined_call_operand.hbm [shape: bf16[256,128], index: 16, kind: input, shape index: {}]   ;;  %s4776_s17 = inlined_call_operand.hbm [shape: f32[1,128], index: 17, kind: input, shape index: {}]   ;;  %s4777_s18 = inlined_call_operand.hbm [shape: f32[1,128], index: 18, kind: input, shape index: {}]   ;;  %s4778_s19 = inlined_call_operand.hbm [shape: f32[1,128], index: 19, kind: input, shape index: {}]   ;;  %s4779_s20 = inlined_call_operand.vmem [shape: bf16[128,512], index: 20, kind: input, shape index: {}]   ;;  %s4780_s21 = inlined_call_operand.vmem [shape: f32[1,512], index: 21, kind: input, shape index: {}]   ;;  %s4781_s22 = inlined_call_operand.vmem [shape: f32[2,512], index: 22, kind: output, shape index: {0}]   ;;  %s4782_s23 = inlined_call_operand.vmem [shape: f32[2,512], index: 23, kind: output, shape index: {1}]  }
   0x1   :  { %4784 = sst [smem:[#allocation32_spill]] %s4759_s0 }
   0x2   :  { %4785 = sst [smem:[#allocation33_spill]] %s4760_s1 }
   0x3   :  { %4786 = sst [smem:[#allocation34_spill]] %s4761_s2 }
   0x4   :  { %4787 = sst [smem:[#allocation35_spill]] %s4762_s3 }
   0x5   :  { %4788 = sst [smem:[#allocation36_spill]] %s4763_s4 }
   0x6   :  { %4789 = sst [smem:[#allocation37_spill]] %s4764_s5 }
   0x7   :  { %4790 = sst [smem:[#allocation38_spill]] %s4765_s6 }
   0x8   :  { %4791 = sst [smem:[#allocation39_spill]] %s4766_s7 }
   0x9   :  { %4792 = sst [smem:[#allocation40_spill]] %s4780_s21 }
   0xa   :  { %4793 = sst [smem:[#allocation41_spill]] %s4782_s23 }
   0xb   :  { %29 = vsyncpa [#allocation3], 0 }
   0xc   :  { %30 = vsyncpa [#allocation5], 0 }
   0xd   :  { %31 = vsyncpa [#allocation8], 0 }
   0xe   :  { %32 = vsyncpa [#allocation11], 0 }
   0xf   :  { %33 = vsyncpa [#allocation14], 0 }
  0x10   :  { %34 = vsyncpa [#allocation17], 0 }
  0x11   :  { %35 = vsyncpa [#allocation20], 0  ;;  %s4794_s24 = sld [smem:[#allocation35_spill]] }
  0x17   :  { %s59_s25 = sshll.u32 %s4794_s24, 4  ;;  %s60_s25 = int_to_ptr.hbm [resolvable:$true] %s59_s25 }
  0x18   :  { %36 = vsyncpa [#allocation23], 0  ;;  %s4059_s5 = smov [#allocation4]   ;;  %s4795_s6 = sld [smem:[#allocation37_spill]] }
  0x19   :  { %s61_s1 = sshll.u32 %s4059_s5, 4  ;;  %s4060_s7 = smov [#allocation7]   ;;  %s62_s1 = int_to_ptr.vmem [resolvable:$true] %s61_s1 }
  0x1a   :  { %64 = dma.hbm_to_vmem [thread:$0]  %s60_s25, 32, %s62_s1, [#allocation5]  }
  0x1b   :  { %s83_s28 = sshll.u32 %s4060_s7, 4  ;;  %s4796_s0 = sld [smem:[#allocation39_spill]]  ;;  %s84_s28 = int_to_ptr.vmem [resolvable:$true] %s83_s28 }
  0x1c   :  { %s127_s24 = sshll.u32 %s4768_s9, 4  ;;  %s4061_s5 = smov [#allocation10]   ;;  %s128_s24 = int_to_ptr.hbm [resolvable:$true] %s127_s24 }
  0x1d   :  { %s107_s21 = sshll.u32 %s4061_s5, 4  ;;  %s4062_s25 = smov [#allocation13]   ;;  %s108_s21 = int_to_ptr.vmem [resolvable:$true] %s107_s21 }
  0x1e   :  { %s81_s27 = sshll.u32 %s4795_s6, 4  ;;  %s129_s1 = sshll.u32 %s4062_s25, 4  ;;  %s82_s27 = int_to_ptr.hbm [resolvable:$true] %s81_s27  ;;  %s130_s1 = int_to_ptr.vmem [resolvable:$true] %s129_s1 }
  0x1f   :  { %86 = dma.hbm_to_vmem [thread:$0]  %s82_s27, 32, %s84_s28, [#allocation8]  }
  0x20   :  { %132 = dma.hbm_to_vmem [thread:$0]  %s128_s24, 16, %s130_s1, [#allocation14]  }
  0x21   :  { %s105_s23 = sshll.u32 %s4796_s0, 4  ;;  %s150_s6 = sshll.u32 %s4771_s12, 4  ;;  %s106_s23 = int_to_ptr.hbm [resolvable:$true] %s105_s23  ;;  %s151_s6 = int_to_ptr.hbm [resolvable:$true] %s150_s6 }
  0x22   :  { %110 = dma.hbm_to_vmem [thread:$0]  %s106_s23, 16, %s108_s21, [#allocation11]  }
  0x23   :  { %s4063_s7 = smov [#allocation16]   ;;  %s183_s9 = sshll.u32 %s4776_s17, 4  ;;  %s184_s9 = int_to_ptr.hbm [resolvable:$true] %s183_s9 }
  0x24   :  { %s152_s27 = sshll.u32 %s4063_s7, 4  ;;  %s4064_s3 = smov 128   ;;  %s153_s27 = int_to_ptr.vmem [resolvable:$true] %s152_s27 }
  0x25   :  { %s4065_s0 = smov 8   ;;  %s4066_s21 = smov [#allocation19]  }
  0x26   :  { %158 = dma.hbm_to_vmem [thread:$0]  %s151_s6, 16384, %s153_s27, [#allocation17], %s4064_s3, %s4064_s3, %s4065_s0  }
  0x27   :  { %s185_s23 = sshll.u32 %s4066_s21, 4  ;;  %s4797_s24 = sld [smem:[#allocation34_spill]]  ;;  %s186_s23 = int_to_ptr.vmem [resolvable:$true] %s185_s23 }
  0x28   :  { %188 = dma.hbm_to_vmem [thread:$0]  %s184_s9, 16, %s186_s23, [#allocation20]  }
  0x29   :  { %s4798_s1 = sld [smem:[#allocation36_spill]]  ;;  %s4067_s2 = smov [#allocation2]  }
  0x2a   :  { %s47_s7 = sshll.u32 %s4067_s2, 4  ;;  %s4068_s17 = smov [#allocation6]   ;;  %s48_s7 = int_to_ptr.vmem [resolvable:$true] %s47_s7 }
  0x2b   :  { %s72_s6 = sshll.u32 %s4068_s17, 4  ;;  %s4799_s29 = sld [smem:[#allocation38_spill]]  ;;  %s73_s6 = int_to_ptr.vmem [resolvable:$true] %s72_s6 }
  0x2c   :  { %s4069_s4 = smov [#allocation9]   ;;  %s4070_s12 = smov 64  }
  0x2d   :  { %s45_s5 = sshll.u32 %s4797_s24, 4  ;;  %s93_s9 = sshll.u32 %s4069_s4, 4  ;;  %s46_s5 = int_to_ptr.hbm [resolvable:$true] %s45_s5  ;;  %s94_s9 = int_to_ptr.vmem [resolvable:$true] %s93_s9 }
  0x2e   :  { %53 = dma.hbm_to_vmem [thread:$0]  %s46_s5, 2048, %s48_s7, [#allocation3], %s4064_s3, %s4064_s3, %s4065_s0  }
  0x2f   :  { %s70_s26 = sshll.u32 %s4798_s1, 4  ;;  %s116_s24 = sshll.u32 %s4767_s8, 4  ;;  %s71_s26 = int_to_ptr.hbm [resolvable:$true] %s70_s26  ;;  %s117_s24 = int_to_ptr.hbm [resolvable:$true] %s116_s24 }
  0x30   :  { %75 = dma.hbm_to_vmem [thread:$0]  %s71_s26, 32, %s73_s6, [#allocation5]  }
  0x31   :  { %s91_s21 = sshll.u32 %s4799_s29, 4  ;;  %s4071_s25 = smov 4   ;;  %s92_s21 = int_to_ptr.hbm [resolvable:$true] %s91_s21 }
  0x32   :  { %99 = dma.hbm_to_vmem [thread:$0]  %s92_s21, 2048, %s94_s9, [#allocation8], %s4070_s12, %s4070_s12, %s4071_s25  }
  0x33   :  { %s4072_s3 = smov [#allocation12]   ;;  %s140_s2 = sshll.u32 %s4770_s11, 4  ;;  %s141_s2 = int_to_ptr.hbm [resolvable:$true] %s140_s2 }
  0x34   :  { %s118_s0 = sshll.u32 %s4072_s3, 4  ;;  %s169_s17 = sshll.u32 %s4775_s16, 4  ;;  %s119_s0 = int_to_ptr.vmem [resolvable:$true] %s118_s0  ;;  %s170_s17 = int_to_ptr.hbm [resolvable:$true] %s169_s17 }
  0x35   :  { %121 = dma.hbm_to_vmem [thread:$0]  %s117_s24, 16, %s119_s0, [#allocation11]  }
  0x36   :  { %s4073_s6 = smov [#allocation15]   ;;  %s4074_s8 = smov [#allocation18]  }
  0x37   :  { %s142_s27 = sshll.u32 %s4073_s6, 4  ;;  %s171_s28 = sshll.u32 %s4074_s8, 4  ;;  %s143_s27 = int_to_ptr.vmem [resolvable:$true] %s142_s27  ;;  %s172_s28 = int_to_ptr.vmem [resolvable:$true] %s171_s28 }
  0x38   :  { %145 = dma.hbm_to_vmem [thread:$0]  %s141_s2, 64, %s143_s27, [#allocation14]  }
  0x39   :  { %s194_s4 = sshll.u32 %s4777_s18, 4  ;;  %s205_s23 = sshll.u32 %s4778_s19, 4  ;;  %s195_s4 = int_to_ptr.hbm [resolvable:$true] %s194_s4  ;;  %s206_s23 = int_to_ptr.hbm [resolvable:$true] %s205_s23 }
  0x3a   :  { %177 = dma.hbm_to_vmem [thread:$0]  %s170_s17, 2048, %s172_s28, [#allocation17], %s4070_s12, %s4070_s12, %s4071_s25  }
  0x3b   :  { %s4075_s30 = smov [#allocation21]   ;;  %s4076_s24 = smov [#allocation22]  }
  0x3c   :  { %s196_s16 = sshll.u32 %s4075_s30, 4  ;;  %s207_s3 = sshll.u32 %s4076_s24, 4  ;;  %s197_s16 = int_to_ptr.vmem [resolvable:$true] %s196_s16  ;;  %s208_s3 = int_to_ptr.vmem [resolvable:$true] %s207_s3 }
  0x3d   :  { %199 = dma.hbm_to_vmem [thread:$0]  %s195_s4, 16, %s197_s16, [#allocation20]  }
  0x3e   :  { %210 = dma.hbm_to_vmem [thread:$0]  %s206_s23, 16, %s208_s3, [#allocation23]  }
  0x3f   :  { %4043 = dma.done.wait [#allocation3], 2048  }
  0x40   :  { %4044 = vsyncadd [#allocation3], 4294965248 }
  0x41   :  { %4045 = dma.done.wait [#allocation5], 64  }
  0x42   :  { %4046 = vsyncadd [#allocation5], 4294967232 }
  0x43   :  { %4047 = dma.done.wait [#allocation8], 2080  }
  0x44   :  { %4048 = vsyncadd [#allocation8], 4294965216 }
  0x45   :  { %4049 = dma.done.wait [#allocation11], 32  }
  0x46   :  { %4050 = vsyncadd [#allocation11], 4294967264 }
  0x47   :  { %4051 = dma.done.wait [#allocation14], 80  }
  0x48   :  { %4052 = vsyncadd [#allocation14], 4294967216 }
  0x49   :  { %4053 = dma.done.wait [#allocation17], 18432  }
  0x4a   :  { %4054 = vsyncadd [#allocation17], 4294948864 }
  0x4b   :  { %4055 = dma.done.wait [#allocation20], 32  }
  0x4c   :  { %4056 = vsyncadd [#allocation20], 4294967264 }
  0x4d   :  { %4057 = dma.done.wait [#allocation23], 16  }
  0x4e   :  { %4058 = vsyncadd [#allocation23], 4294967280  ;;  %v2527_v0 = vld [vmem:[#allocation2 + $0x70] sm:$0xf]  ;;  %v3444_v1 = vld [vmem:[#allocation2 + $0x74] sm:$0xf0] }
  0x4f   :  { %v3443_v2 = vld [vmem:[#allocation2 + $0x74] sm:$0xf]  ;;  %v2528_v3 = vor.u32 %v3444_v1, %v2527_v0  ;;  %v2529_v4 = vld [vmem:[#allocation2 + $0x78] sm:$0xf0]  ;;  %v2519_v5 = vld [vmem:[#allocation2 + $0x60] sm:$0xf] }
  0x50   :  { %v3442_v6 = vld [vmem:[#allocation2 + $0x64] sm:$0xf0]  ;;  %v2532_v7 = vor.u32 %v3443_v2, %v2529_v4  ;;  %v3441_v8 = vld [vmem:[#allocation2 + $0x64] sm:$0xf]  ;;  %v2521_v9 = vld [vmem:[#allocation2 + $0x68] sm:$0xf0] }
  0x51   :  { %375 = vmatpush.bf16.msra.mxu0 %v2528_v3  ;;  %v2520_v10 = vor.u32 %v3442_v6, %v2519_v5  ;;  %v2524_v11 = vor.u32 %v3441_v8, %v2521_v9  ;;  %v2511_v12 = vld [vmem:[#allocation2 + $0x50] sm:$0xf]  ;;  %v3440_v13 = vld [vmem:[#allocation2 + $0x54] sm:$0xf0]  ;;  %v3439_v14 = vld [vmem:[#allocation2 + $0x54] sm:$0xf] }
  0x52   :  { %388 = vmatpush.bf16.msra.mxu1 %v2532_v7  ;;  %v2513_v15 = vld [vmem:[#allocation2 + $0x58] sm:$0xf0]  ;;  %v2512_v16 = vor.u32 %v3440_v13, %v2511_v12  ;;  %v2503_v18 = vld [vmem:[#allocation2 + $0x40] sm:$0xf]  ;;  %v3438_v19 = vld [vmem:[#allocation2 + $0x44] sm:$0xf0] }
  0x53   :  { %v2516_v17 = vor.u32 %v3439_v14, %v2513_v15  ;;  %v3437_v20 = vld [vmem:[#allocation2 + $0x44] sm:$0xf]  ;;  %v2505_v21 = vld [vmem:[#allocation2 + $0x48] sm:$0xf0]  ;;  %v2495_v22 = vld [vmem:[#allocation2 + $0x30] sm:$0xf]  ;;  %v2504_v23 = vor.u32 %v3438_v19, %v2503_v18 }
  0x54   :  { %v3436_v24 = vld [vmem:[#allocation2 + $0x34] sm:$0xf0]  ;;  %v2508_v25 = vor.u32 %v3437_v20, %v2505_v21  ;;  %v3435_v26 = vld [vmem:[#allocation2 + $0x34] sm:$0xf]  ;;  %v2497_v27 = vld [vmem:[#allocation2 + $0x38] sm:$0xf0] }
  0x55   :  { %376 = vmatpush.bf16.msra.mxu0 %v2520_v10  ;;  %v2496_v28 = vor.u32 %v3436_v24, %v2495_v22  ;;  %v2500_v29 = vor.u32 %v3435_v26, %v2497_v27  ;;  %v2487_v30 = vld [vmem:[#allocation2 + $0x20] sm:$0xf]  ;;  %v3434_v31 = vld [vmem:[#allocation2 + $0x24] sm:$0xf0]  ;;  %v3433_v32 = vld [vmem:[#allocation2 + $0x24] sm:$0xf] }
  0x56   :  { %389 = vmatpush.bf16.msra.mxu1 %v2524_v11  ;;  %v2489_v33 = vld [vmem:[#allocation2 + $0x28] sm:$0xf0]  ;;  %v2488_v34 = vor.u32 %v3434_v31, %v2487_v30  ;;  %v2479_v36 = vld [vmem:[#allocation2 + $0x10] sm:$0xf]  ;;  %v3432_v37 = vld [vmem:[#allocation2 + $0x14] sm:$0xf0] }
  0x57   :  { %v2492_v35 = vor.u32 %v3433_v32, %v2489_v33  ;;  %v3431_v38 = vld [vmem:[#allocation2 + $0x14] sm:$0xf]  ;;  %v2481_v39 = vld [vmem:[#allocation2 + $0x18] sm:$0xf0]  ;;  %v2480_v40 = vor.u32 %v3432_v37, %v2479_v36  ;;  %v2471_v42 = vld [vmem:[#allocation2] sm:$0xf] }
  0x58   :  { %v2484_v41 = vor.u32 %v3431_v38, %v2481_v39  ;;  %v3430_v43 = vld [vmem:[#allocation2 + $0x4] sm:$0xf0]  ;;  %v3429_v44 = vld [vmem:[#allocation2 + $0x4] sm:$0xf]  ;;  %v2473_v45 = vld [vmem:[#allocation2 + $0x8] sm:$0xf0] }
  0x59   :  { %377 = vmatpush.bf16.msra.mxu0 %v2512_v16  ;;  %v2472_v46 = vor.u32 %v3430_v43, %v2471_v42  ;;  %s4800_s12 = sld [smem:[#allocation32_spill]]  ;;  %v2476_v48 = vor.u32 %v3429_v44, %v2473_v45  ;;  %v289_v50 = vld [vmem:[#allocation4] sm:$0x3]  ;;  %vm403_vm0 = vcmask 1041408   ;;  %v4077_v3 = vmov 256.0   ;;  %v3451_v6 = vld [vmem:[#allocation9 + $0x30] sm:$0xff] }
  0x5a   :  { %390 = vmatpush.bf16.msra.mxu1 %v2516_v17  ;;  %v291_v51 = vperm.slane %v289_v50, 0  ;;  %v292_v52 = vperm.slane %v289_v50, 1  ;;  %3695 = vrcp.f32 %v4077_v3  ;;  %v3452_v4 = vld [vmem:[#allocation9 + $0x38] sm:$0xff]  ;;  %v3459_v7 = vld [vmem:[#allocation9 + $0x70] sm:$0xff]  ;;  %v3450_v10 = vld [vmem:[#allocation9 + $0x28] sm:$0xff]  ;;  %s4801_s2 = sld [smem:[#allocation33_spill]] }
  0x5b   :  { %v3460_v5 = vld [vmem:[#allocation9 + $0x78] sm:$0xff]  ;;  %592 = vmatpush.bf16.msra.mxu2 %v3452_v4  ;;  %v3458_v11 = vld [vmem:[#allocation9 + $0x68] sm:$0xff]  ;;  %v3449_v13 = vld [vmem:[#allocation9 + $0x20] sm:$0xff]  ;;  %vm923_vm9 = vcmask 1045508   ;;  %vm925_vm10 = vcmask 1043456   ;;  %s4802_s24 = sld [smem:[#allocation40_spill]] }
  0x5c   :  { %605 = vmatpush.bf16.msra.mxu3 %v3460_v5  ;;  %v3457_v14 = vld [vmem:[#allocation9 + $0x60] sm:$0xff]  ;;  %v3448_v16 = vld [vmem:[#allocation9 + $0x18] sm:$0xff]  ;;  %v3447_v18 = vld [vmem:[#allocation9 + $0x10] sm:$0xff]  ;;  %s4803_s19 = sld [smem:[#allocation41_spill]] }
  0x5d   :  { %378 = vmatpush.bf16.msra.mxu0 %v2504_v23  ;;  %v3456_v17 = vld [vmem:[#allocation9 + $0x58] sm:$0xff]  ;;  %v3455_v19 = vld [vmem:[#allocation9 + $0x50] sm:$0xff]  ;;  %v3446_v22 = vld [vmem:[#allocation9 + $0x8] sm:$0xff] }
  0x5e   :  { %391 = vmatpush.bf16.msra.mxu1 %v2508_v25  ;;  %v3454_v23 = vld [vmem:[#allocation9 + $0x48] sm:$0xff]  ;;  %v3445_v25 = vld [vmem:[#allocation9] sm:$0xff]  ;;  %v401_v38 = vld [vmem:[#allocation6] sm:$0x3] }
  0x5f   :  { %v271_v47 = vld [vmem:[%s4800_s12] sm:$0x3]  ;;  %593 = vmatpush.bf16.msra.mxu2 %v3451_v6  ;;  %v3453_v26 = vld [vmem:[#allocation9 + $0x40] sm:$0xff]  ;;  %v402_v39 = vld [vmem:[#allocation7] sm:$0x3]  ;;  %v443_v43 = vperm.slane %v401_v38, 0 }
  0x60   :  { %v288_v49 = vpack.c.bf16 %v271_v47, %v271_v47  ;;  %v3696_v8 = vpop.eup %3695  ;;  %606 = vmatpush.bf16.msra.mxu3 %v3459_v7  ;;  %v444_v44 = vperm.slane %v401_v38, 1  ;;  %v450_v47 = vperm.slane %v402_v39, 0  ;;  %v3490_v3 = vld [vmem:[%s4769_s10 + $0xec] sm:$0xf]  ;;  %v2721_v4 = vld [vmem:[%s4769_s10 + $0xf8] sm:$0xf0] }
  0x61   :  { %379 = vmatpush.bf16.msra.mxu0 %v2496_v28  ;;  %v410_v9 = vmul.f32 256.0, %v3696_v8  ;;  %vm414_vm1 = vweird.f32 %v3696_v8  ;;  %v2695_v5 = vld [vmem:[%s4769_s10 + $0xc0] sm:$0xf]  ;;  %v2724_v6 = vor.u32 %v3490_v3, %v2721_v4  ;;  %v3487_v7 = vld [vmem:[%s4769_s10 + $0xcc] sm:$0xf0] }
  0x62   :  { %392 = vmatpush.bf16.msra.mxu1 %v2500_v29  ;;  %v2673_v38 = vld [vmem:[%s4769_s10 + $0x98] sm:$0xf0]  ;;  %v3469_v3 = vld [vmem:[%s4769_s10 + $0x44] sm:$0xf] }
  0x63   :  { %594 = vmatpush.bf16.msra.mxu2 %v3450_v10  ;;  %v411_v12 = vsub.f32 1.0, %v410_v9  ;;  %v2697_v9 = vld [vmem:[%s4769_s10 + $0xd0] sm:$0xf0]  ;;  %v2696_v10 = vor.u32 %v3487_v7, %v2695_v5  ;;  %v3472_v7 = vld [vmem:[%s4769_s10 + $0x54] sm:$0xf0] }
  0x64   :  { %607 = vmatpush.bf16.msra.mxu3 %v3458_v11  ;;  %v2633_v5 = vld [vmem:[%s4769_s10 + $0x50] sm:$0xf0] }
  0x65   :  { %380 = vmatpush.bf16.msra.mxu0 %v2488_v34  ;;  %v412_v15 = vmul.f32 %v3696_v8, %v411_v12  ;;  %v2703_v12 = vld [vmem:[%s4769_s10 + $0xc8] sm:$0xf] }
  0x66   :  { %393 = vmatpush.bf16.msra.mxu1 %v2492_v35 }
  0x67   :  { %595 = vmatpush.bf16.msra.mxu2 %v3449_v13  ;;  %v413_v20 = vadd.f32 %v3696_v8, %v412_v15  ;;  %v3488_v13 = vld [vmem:[%s4769_s10 + $0xd4] sm:$0xf0] }
  0x68   :  { %608 = vmatpush.bf16.msra.mxu3 %v3457_v14  ;;  %v3486_v14 = vld [vmem:[%s4769_s10 + $0xcc] sm:$0xf]  ;;  %v2704_v15 = vor.u32 %v3488_v13, %v2703_v12  ;;  %v2615_v13 = vld [vmem:[%s4769_s10 + $0x20] sm:$0xf] }
  0x69   :  { %381 = vmatpush.bf16.msra.mxu0 %v2480_v40  ;;  %v4258_v24 = vsel %vm414_vm1, %v3696_v8, %v413_v20  ;;  %v3485_v8 = vld [vmem:[%s4769_s10 + $0xc4] sm:$0xf] }
  0x6a   :  { %394 = vmatpush.bf16.msra.mxu1 %v2484_v41  ;;  %v2700_v11 = vor.u32 %v3485_v8, %v2697_v9  ;;  %v3481_v20 = vld [vmem:[%s4769_s10 + $0xa4] sm:$0xf]  ;;  %v2636_v8 = vor.u32 %v3469_v3, %v2633_v5  ;;  %v3504_v3 = vld [vmem:[#allocation16 + $0x54] sm:$0xf0] }
  0x6b   :  { %596 = vmatpush.bf16.msra.mxu2 %v3448_v16  ;;  %v2705_v16 = vld [vmem:[%s4769_s10 + $0xd8] sm:$0xf0] }
  0x6c   :  { %609 = vmatpush.bf16.msra.mxu3 %v3456_v17  ;;  %v2679_v17 = vld [vmem:[%s4769_s10 + $0xa0] sm:$0xf] }
  0x6d   :  { %382 = vmatpush.bf16.msra.mxu0 %v2472_v46 }
  0x6e   :  { %395 = vmatpush.bf16.msra.mxu1 %v2476_v48 }
  0x6f   :  { %597 = vmatpush.bf16.msra.mxu2 %v3447_v18  ;;  %v3483_v18 = vld [vmem:[%s4769_s10 + $0xac] sm:$0xf0] }
  0x70   :  { %383 = vmatmul.bf16.vlgmr.msra.gmra.mxu0 %v288_v49  ;;  %610 = vmatpush.bf16.msra.mxu3 %v3455_v19  ;;  %v2708_v19 = vor.u32 %v3486_v14, %v2705_v16  ;;  %v3467_v14 = vld [vmem:[%s4769_s10 + $0x2c] sm:$0xf0] }
  0x71   :  { %396 = vmatmul.bf16.vlgmr.msra.gmra.mxu1 %v288_v49  ;;  %v451_v49 = vperm.slane %v402_v39, 1  ;;  %v2616_v16 = vor.u32 %v3467_v14, %v2615_v13 }
  0x73   :  { %598 = vmatpush.bf16.msra.mxu2 %v3446_v22  ;;  %v2687_v22 = vld [vmem:[%s4769_s10 + $0xa8] sm:$0xf] }
  0x74   :  { %611 = vmatpush.bf16.msra.mxu3 %v3454_v23  ;;  %v2680_v23 = vor.u32 %v3483_v18, %v2679_v17  ;;  %v2617_v17 = vld [vmem:[%s4769_s10 + $0x30] sm:$0xf0]  ;;  %v2623_v18 = vld [vmem:[%s4769_s10 + $0x28] sm:$0xf] }
  0x77   :  { %599 = vmatpush.bf16.msra.mxu2 %v3445_v25  ;;  %v3484_v25 = vld [vmem:[%s4769_s10 + $0xb4] sm:$0xf0] }
  0x78   :  { %612 = vmatpush.bf16.msra.mxu3 %v3453_v26  ;;  %v3482_v26 = vld [vmem:[%s4769_s10 + $0xac] sm:$0xf] }
  0x7c   :  { %902 = vmatpush.bf16.msrb.mxu3 %v2724_v6  ;;  %v2639_v6 = vld [vmem:[%s4769_s10 + $0x48] sm:$0xf] }
  0x7d   :  { %v2640_v9 = vor.u32 %v3472_v7, %v2639_v6  ;;  %v3520_v6 = vld [vmem:[#allocation16 + $0xd4] sm:$0xf0]  ;;  %v2895_v7 = vld [vmem:[#allocation16 + $0x150] sm:$0xf] }
  0x80   :  { %903 = vmatpush.bf16.msrb.mxu3 %v2708_v19  ;;  %v3468_v19 = vld [vmem:[%s4769_s10 + $0x34] sm:$0xf0] }
  0xed   :  { %v384_v53 = vpop.f32.mrf.mxu0 }
  0xee   :  { %v4244_v54 = vadd.f32 %v384_v53, %v291_v51  ;;  %v397_v55 = vpop.f32.mrf.mxu1 }
  0xef   :  { %v4246_v56 = vadd.f32 %v397_v55, %v292_v52 }
  0xf0   :  { %v404_v57 = vsel %vm403_vm0, %v4244_v54, 0.0  ;;  %v417_v60 = vmul.f32 %v4244_v54, %v4244_v54 }
  0xf1   :  { %v405_v58 = vsel %vm403_vm0, %v4246_v56, 0.0  ;;  %v418_v61 = vmul.f32 %v4246_v56, %v4246_v56 }
  0xf2   :  { %v406_v59 = vadd.f32 %v405_v58, %v404_v57  ;;  %v419_v0 = vsel %vm403_vm0, %v417_v60, 0.0  ;;  %v3489_v60 = vld [vmem:[%s4769_s10 + $0xe4] sm:$0xf] }
  0xf3   :  { %v420_v1 = vsel %vm403_vm0, %v418_v61, 0.0 }
  0xf4   :  { %407 = vadd.xlane.f32.xlu0 %v406_v59  ;;  %v421_v2 = vadd.f32 %v420_v1, %v419_v0  ;;  %v3492_v0 = vld [vmem:[%s4769_s10 + $0xf4] sm:$0xf0] }
  0xf5   :  { %v386_v62 = vpop.f32.mrf.mxu0 }
  0xf6   :  { %v399_v63 = vpop.f32.mrf.mxu1  ;;  %v2713_v62 = vld [vmem:[%s4769_s10 + $0xf0] sm:$0xf0] }
  0xf7   :  { %v2719_v63 = vld [vmem:[%s4769_s10 + $0xe8] sm:$0xf]  ;;  %v2716_v1 = vor.u32 %v3489_v60, %v2713_v62  ;;  %v3474_v62 = vld [vmem:[%s4769_s10 + $0x6c] sm:$0xf] }
  0xf9   :  { %876 = vmatpush.bf16.msrb.mxu1 %v2716_v1  ;;  %v2631_v1 = vld [vmem:[%s4769_s10 + $0x40] sm:$0xf] }
  0xfc   :  { %422 = vadd.xlane.f32.xlu0 %v421_v2  ;;  %v2720_v2 = vor.u32 %v3492_v0, %v2719_v63  ;;  %v2657_v63 = vld [vmem:[%s4769_s10 + $0x78] sm:$0xf0] }
  0xfd   :  { %877 = vmatpush.bf16.msrb.mxu1 %v2700_v11  ;;  %v2660_v0 = vor.u32 %v3474_v62, %v2657_v63  ;;  %v2641_v11 = vld [vmem:[%s4769_s10 + $0x58] sm:$0xf0]  ;;  %v3554_v62 = vld [vmem:[#allocation16 + $0x1e4] sm:$0xf0] }
  0xfe   :  { %889 = vmatpush.bf16.msrb.mxu2 %v2720_v2  ;;  %v3471_v2 = vld [vmem:[%s4769_s10 + $0x4c] sm:$0xf0] }
  0xff   :  { %v2632_v4 = vor.u32 %v3471_v2, %v2631_v1  ;;  %v2767_v2 = vld [vmem:[#allocation16 + $0x50] sm:$0xf] }
 0x100   :  { %v2768_v5 = vor.u32 %v3504_v3, %v2767_v2  ;;  %v3544_v3 = vld [vmem:[#allocation16 + $0x194] sm:$0xf0] }
 0x102   :  { %890 = vmatpush.bf16.msrb.mxu2 %v2704_v15  ;;  %v3465_v15 = vld [vmem:[%s4769_s10 + $0x24] sm:$0xf] }
 0x167   :  { %v408_v21 = vpop.xlane.xlu0 %407 }
 0x168   :  { %v416_v27 = vmul.f32 %v4258_v24, %v408_v21  ;;  %v2681_v21 = vld [vmem:[%s4769_s10 + $0xb0] sm:$0xf0] }
 0x16a   :  { %v425_v29 = vmul.f32 %v416_v27, %v416_v27  ;;  %v427_v41 = vsub.f32 %v4244_v54, %v416_v27  ;;  %v428_v42 = vsub.f32 %v4246_v56, %v416_v27  ;;  %v2711_v54 = vld [vmem:[%s4769_s10 + $0xe0] sm:$0xf]  ;;  %v3491_v56 = vld [vmem:[%s4769_s10 + $0xec] sm:$0xf0]  ;;  %v2689_v27 = vld [vmem:[%s4769_s10 + $0xb8] sm:$0xf0] }
 0x16b   :  { %v2712_v61 = vor.u32 %v3491_v56, %v2711_v54  ;;  %v2655_v54 = vld [vmem:[%s4769_s10 + $0x68] sm:$0xf]  ;;  %v3476_v56 = vld [vmem:[%s4769_s10 + $0x74] sm:$0xf0] }
 0x16d   :  { %863 = vmatpush.bf16.msrb.mxu0 %v2712_v61  ;;  %v2656_v61 = vor.u32 %v3476_v56, %v2655_v54  ;;  %v2903_v54 = vld [vmem:[#allocation16 + $0x160] sm:$0xf] }
 0x16f   :  { %v423_v28 = vpop.xlane.xlu0 %422 }
 0x170   :  { %v424_v30 = vmul.f32 %v423_v28, %v4258_v24  ;;  %v2684_v28 = vor.u32 %v3481_v20, %v2681_v21  ;;  %v2620_v20 = vor.u32 %v3465_v15, %v2617_v17  ;;  %v2624_v21 = vor.u32 %v3468_v19, %v2623_v18  ;;  %v2759_v15 = vld [vmem:[#allocation16 + $0x40] sm:$0xf]  ;;  %v3518_v19 = vld [vmem:[#allocation16 + $0xc4] sm:$0xf0] }
 0x171   :  { %864 = vmatpush.bf16.msrb.mxu0 %v2696_v10  ;;  %v3470_v10 = vld [vmem:[%s4769_s10 + $0x4c] sm:$0xf]  ;;  %v2823_v17 = vld [vmem:[#allocation16 + $0xc0] sm:$0xf] }
 0x172   :  { %v426_v31 = vsub.f32 %v424_v30, %v425_v29  ;;  %v2688_v29 = vor.u32 %v3484_v25, %v2687_v22  ;;  %v2663_v30 = vld [vmem:[%s4769_s10 + $0x80] sm:$0xf]  ;;  %878 = vmatpush.bf16.msrb.mxu1 %v2684_v28  ;;  %v2644_v12 = vor.u32 %v3470_v10, %v2641_v11  ;;  %v3466_v22 = vld [vmem:[%s4769_s10 + $0x2c] sm:$0xf]  ;;  %v4078_v25 = vmov 128.0  }
 0x173   :  { %v3463_v28 = vld [vmem:[%s4769_s10 + $0xc] sm:$0xf0]  ;;  %v2959_v11 = vld [vmem:[#allocation16 + $0x1d0] sm:$0xf] }
 0x174   :  { %v429_v32 = vadd.f32 1e-05, %v426_v31  ;;  %v3479_v31 = vld [vmem:[%s4769_s10 + $0x8c] sm:$0xf0]  ;;  %891 = vmatpush.bf16.msrb.mxu2 %v2688_v29  ;;  %v3461_v29 = vld [vmem:[%s4769_s10 + $0x4] sm:$0xf] }
 0x175   :  { %865 = vmatpush.bf16.msrb.mxu0 %v2680_v23  ;;  %v2664_v39 = vor.u32 %v3479_v31, %v2663_v30  ;;  %v2625_v23 = vld [vmem:[%s4769_s10 + $0x38] sm:$0xf0]  ;;  %v2601_v31 = vld [vmem:[%s4769_s10 + $0x10] sm:$0xf0] }
 0x176   :  { %3697 = vrsqrt.f32 %v429_v32  ;;  %vm436_vm3 = vweird.f32 %v429_v32 }
 0x177   :  { %3699 = vrcp.f32 %v4078_v25  ;;  %v2951_v25 = vld [vmem:[#allocation16 + $0x1c0] sm:$0xf] }
 0x179   :  { %866 = vmatpush.bf16.msrb.mxu0 %v2664_v39 }
 0x17c   :  { %v3698_v33 = vpop.eup %3697 }
 0x17d   :  { %v431_v34 = vmul.f32 %v3698_v33, %v429_v32  ;;  %vm437_vm2 = vweird.f32 %v3698_v33  ;;  %v3477_v32 = vld [vmem:[%s4769_s10 + $0x84] sm:$0xf] }
 0x17e   :  { %vm438_vm4 = vmor %vm436_vm3, %vm437_vm2 }
 0x17f   :  { %v432_v35 = vmul.f32 %v3698_v33, %v431_v34  ;;  %v2665_v34 = vld [vmem:[%s4769_s10 + $0x90] sm:$0xf0] }
 0x181   :  { %v433_v36 = vmul.f32 0.5, %v432_v35  ;;  %v2671_v35 = vld [vmem:[%s4769_s10 + $0x88] sm:$0xf] }
 0x183   :  { %v434_v37 = vsub.f32 1.5, %v433_v36  ;;  %v3480_v36 = vld [vmem:[%s4769_s10 + $0x94] sm:$0xf0] }
 0x185   :  { %v435_v40 = vmul.f32 %v3698_v33, %v434_v37  ;;  %v3478_v37 = vld [vmem:[%s4769_s10 + $0x8c] sm:$0xf] }
 0x187   :  { %v439_v45 = vsel %vm438_vm4, %v3698_v33, %v435_v40  ;;  %v2692_v33 = vor.u32 %v3482_v26, %v2689_v27  ;;  %v2668_v40 = vor.u32 %v3477_v32, %v2665_v34  ;;  %v2628_v26 = vor.u32 %v3466_v22, %v2625_v23  ;;  %v2599_v27 = vld [vmem:[%s4769_s10] sm:$0xf]  ;;  %v2607_v32 = vld [vmem:[%s4769_s10 + $0x8] sm:$0xf] }
 0x188   :  { %v440_v46 = vmul.f32 %v439_v45, %v427_v41  ;;  %v441_v48 = vmul.f32 %v439_v45, %v428_v42  ;;  %v2672_v41 = vor.u32 %v3480_v36, %v2671_v35  ;;  %v2676_v42 = vor.u32 %v3478_v37, %v2673_v38  ;;  %v3462_v36 = vld [vmem:[%s4769_s10 + $0xc] sm:$0xf]  ;;  %v2609_v37 = vld [vmem:[%s4769_s10 + $0x18] sm:$0xf0]  ;;  %v2783_v38 = vld [vmem:[#allocation16 + $0x70] sm:$0xf] }
 0x189   :  { %904 = vmatpush.bf16.msrb.mxu3 %v2692_v33  ;;  %879 = vmatpush.bf16.msrb.mxu1 %v2668_v40  ;;  %v2600_v30 = vor.u32 %v3463_v28, %v2599_v27  ;;  %v3464_v33 = vld [vmem:[%s4769_s10 + $0x14] sm:$0xf0]  ;;  %v2604_v34 = vor.u32 %v3461_v29, %v2601_v31  ;;  %v2612_v39 = vor.u32 %v3462_v36, %v2609_v37  ;;  %v3508_v40 = vld [vmem:[#allocation16 + $0x74] sm:$0xf0]  ;;  %v2751_v29 = vld [vmem:[#allocation16 + $0x30] sm:$0xf] }
 0x18a   :  { %v447_v50 = vmul.f32 %v443_v43, %v440_v46  ;;  %v448_v51 = vmul.f32 %v444_v44, %v441_v48  ;;  %v3689_v43 = vld [vmem:[#allocation10] ss:$0 sm:$0xff]  ;;  %892 = vmatpush.bf16.msrb.mxu2 %v2672_v41  ;;  %v2608_v35 = vor.u32 %v3464_v33, %v2607_v32  ;;  %v2847_v41 = vld [vmem:[#allocation16 + $0xf0] sm:$0xf]  ;;  %v2824_v22 = vor.u32 %v3518_v19, %v2823_v17  ;;  %v3516_v33 = vld [vmem:[#allocation16 + $0xb4] sm:$0xf0] }
 0x18b   :  { %v2815_v31 = vld [vmem:[#allocation16 + $0xb0] sm:$0xf] }
 0x18c   :  { %v454_v52 = vadd.f32 %v450_v47, %v447_v50  ;;  %v455_v53 = vadd.f32 %v451_v49, %v448_v51  ;;  %v2816_v36 = vor.u32 %v3516_v33, %v2815_v31 }
 0x18d   :  { %905 = vmatpush.bf16.msrb.mxu3 %v2676_v42  ;;  %v3524_v42 = vld [vmem:[#allocation16 + $0xf4] sm:$0xf0] }
 0x18e   :  { %v456_v55 = vmax.f32 %v454_v52, 0.0  ;;  %v457_v57 = vmax.f32 %v455_v53, 0.0  ;;  %v2647_v53 = vld [vmem:[%s4769_s10 + $0x60] sm:$0xf]  ;;  %893 = vmatpush.bf16.msrb.mxu2 %v2656_v61  ;;  %v2967_v61 = vld [vmem:[#allocation16 + $0x1e0] sm:$0xf] }
 0x18f   :  { %v2968_v1 = vor.u32 %v3554_v62, %v2967_v61  ;;  %v3512_v61 = vld [vmem:[#allocation16 + $0x94] sm:$0xf0]  ;;  %v2863_v62 = vld [vmem:[#allocation16 + $0x110] sm:$0xf] }
 0x190   :  { %v490_v58 = vpack.c.bf16 %v456_v55, %v456_v55  ;;  %v491_v59 = vpack.c.bf16 %v457_v57, %v457_v57  ;;  %v3475_v55 = vld [vmem:[%s4769_s10 + $0x6c] sm:$0xf0]  ;;  %v3473_v57 = vld [vmem:[%s4769_s10 + $0x64] sm:$0xf] }
 0x191   :  { %906 = vmatpush.bf16.msrb.mxu3 %v2660_v0 }
 0x192   :  { %600 = vmatmul.bf16.vlgmr.msra.gmra.mxu2 %v490_v58  ;;  %613 = vmatmul.bf16.vlgmr.msra.gmra.mxu3 %v491_v59  ;;  %v2648_v58 = vor.u32 %v3475_v55, %v2647_v53  ;;  %v2649_v59 = vld [vmem:[%s4769_s10 + $0x70] sm:$0xf0]  ;;  %v3506_v53 = vld [vmem:[#allocation16 + $0x64] sm:$0xf0] }
 0x193   :  { %v2652_v60 = vor.u32 %v3473_v57, %v2649_v59  ;;  %894 = vmatpush.bf16.msrb.mxu2 %v2640_v9  ;;  %v3522_v59 = vld [vmem:[#allocation16 + $0xe4] sm:$0xf0] }
 0x194   :  { %867 = vmatpush.bf16.msrb.mxu0 %v2648_v58  ;;  %v2839_v58 = vld [vmem:[#allocation16 + $0xe0] sm:$0xf] }
 0x195   :  { %880 = vmatpush.bf16.msrb.mxu1 %v2652_v60  ;;  %907 = vmatpush.bf16.msrb.mxu3 %v2644_v12  ;;  %v2840_v56 = vor.u32 %v3522_v59, %v2839_v58  ;;  %v3538_v60 = vld [vmem:[#allocation16 + $0x164] sm:$0xf0]  ;;  %v3552_v12 = vld [vmem:[#allocation16 + $0x1d4] sm:$0xf0]  ;;  %v2735_v58 = vld [vmem:[#allocation16 + $0x10] sm:$0xf] }
 0x196   :  { %v2904_v0 = vor.u32 %v3538_v60, %v2903_v54  ;;  %v2960_v14 = vor.u32 %v3552_v12, %v2959_v11  ;;  %v2799_v60 = vld [vmem:[#allocation16 + $0x90] sm:$0xf]  ;;  %v3526_v11 = vld [vmem:[#allocation16 + $0x104] sm:$0xf0]  ;;  %v2919_v12 = vld [vmem:[#allocation16 + $0x180] sm:$0xf] }
 0x197   :  { %895 = vmatpush.bf16.msrb.mxu2 %v2624_v21  ;;  %v3534_v21 = vld [vmem:[#allocation16 + $0x144] sm:$0xf0]  ;;  %v2800_v2 = vor.u32 %v3512_v61, %v2799_v60  ;;  %v3223_v60 = vld [vmem:[#allocation16 + $0x3e0] sm:$0xf] }
 0x198   :  { %868 = vmatpush.bf16.msrb.mxu0 %v2632_v4  ;;  %v2831_v4 = vld [vmem:[#allocation16 + $0xd0] sm:$0xf]  ;;  %v3618_v61 = vld [vmem:[#allocation16 + $0x3e4] sm:$0xf0] }
 0x199   :  { %881 = vmatpush.bf16.msrb.mxu1 %v2636_v8  ;;  %908 = vmatpush.bf16.msrb.mxu3 %v2628_v26  ;;  %v3536_v8 = vld [vmem:[#allocation16 + $0x154] sm:$0xf0]  ;;  %v2832_v9 = vor.u32 %v3520_v6, %v2831_v4  ;;  %v3550_v26 = vld [vmem:[#allocation16 + $0x1c4] sm:$0xf0]  ;;  %v2727_v4 = vld [vmem:[#allocation16] sm:$0xf] }
 0x19a   :  { %v2896_v10 = vor.u32 %v3536_v8, %v2895_v7  ;;  %v2952_v28 = vor.u32 %v3550_v26, %v2951_v25  ;;  %v2791_v7 = vld [vmem:[#allocation16 + $0x80] sm:$0xf]  ;;  %v3510_v8 = vld [vmem:[#allocation16 + $0x84] sm:$0xf0] }
 0x19b   :  { %896 = vmatpush.bf16.msrb.mxu2 %v2608_v35  ;;  %v3532_v35 = vld [vmem:[#allocation16 + $0x134] sm:$0xf0] }
 0x19c   :  { %869 = vmatpush.bf16.msrb.mxu0 %v2616_v16  ;;  %v3502_v16 = vld [vmem:[#allocation16 + $0x44] sm:$0xf0] }
 0x19d   :  { %882 = vmatpush.bf16.msrb.mxu1 %v2620_v20  ;;  %909 = vmatpush.bf16.msrb.mxu3 %v2612_v39  ;;  %v2760_v18 = vor.u32 %v3502_v16, %v2759_v15  ;;  %v2887_v20 = vld [vmem:[#allocation16 + $0x140] sm:$0xf]  ;;  %v3548_v39 = vld [vmem:[#allocation16 + $0x1b4] sm:$0xf0]  ;;  %v2792_v16 = vor.u32 %v3510_v8, %v2791_v7  ;;  %v3215_v7 = vld [vmem:[#allocation16 + $0x3d0] sm:$0xf] }
 0x19e   :  { %v2888_v23 = vor.u32 %v3534_v21, %v2887_v20  ;;  %v3616_v8 = vld [vmem:[#allocation16 + $0x3d4] sm:$0xf0] }
 0x1a0   :  { %870 = vmatpush.bf16.msrb.mxu0 %v2600_v30  ;;  %v3500_v30 = vld [vmem:[#allocation16 + $0x34] sm:$0xf0] }
 0x1a1   :  { %883 = vmatpush.bf16.msrb.mxu1 %v2604_v34  ;;  %v2752_v32 = vor.u32 %v3500_v30, %v2751_v29  ;;  %v2879_v34 = vld [vmem:[#allocation16 + $0x130] sm:$0xf] }
 0x1a2   :  { %v2880_v37 = vor.u32 %v3532_v35, %v2879_v34  ;;  %v3691_v35 = vld [vmem:[#allocation13] ss:$0 sm:$0xff] }
 0x215   :  { %v601_v44 = vpop.f32.mrf.mxu2  ;;  %v614_v45 = vpop.f32.mrf.mxu3 }
 0x216   :  { %v602_v46 = vadd.f32 %v3689_v43, %v601_v44  ;;  %v2784_v43 = vor.u32 %v3508_v40, %v2783_v38  ;;  %v2848_v44 = vor.u32 %v3524_v42, %v2847_v41  ;;  %v2943_v38 = vld [vmem:[#allocation16 + $0x1b0] sm:$0xf]  ;;  %v2743_v42 = vld [vmem:[#allocation16 + $0x20] sm:$0xf] }
 0x217   :  { %v2944_v41 = vor.u32 %v3548_v39, %v2943_v38  ;;  %v3039_v38 = vld [vmem:[#allocation16 + $0x270] sm:$0xf]  ;;  %v3572_v39 = vld [vmem:[#allocation16 + $0x274] sm:$0xf0] }
 0x218   :  { %v4360_v47 = vadd.f32 %v614_v45, %v602_v46  ;;  %v2911_v45 = vld [vmem:[#allocation16 + $0x170] sm:$0xf]  ;;  %v3540_v46 = vld [vmem:[#allocation16 + $0x174] sm:$0xf0]  ;;  %1734 = vmatpush.bf16.msra.mxu0 %v2784_v43  ;;  %1747 = vmatpush.bf16.msra.mxu1 %v2848_v44  ;;  %v3498_v43 = vld [vmem:[#allocation16 + $0x24] sm:$0xf0] }
 0x219   :  { %v2807_v44 = vld [vmem:[#allocation16 + $0xa0] sm:$0xf] }
 0x21a   :  { %v620_v48 = vsel %vm403_vm0, %v4360_v47, 0.0  ;;  %v631_v51 = vmul.f32 %v4360_v47, %v4360_v47 }
 0x21b   :  { %621 = vadd.xlane.f32.xlu1 %v620_v48  ;;  %v2975_v48 = vld [vmem:[#allocation16 + $0x1f0] sm:$0xf] }
 0x21c   :  { %v632_v52 = vsel %vm403_vm0, %v631_v51, 0.0  ;;  %v3556_v51 = vld [vmem:[#allocation16 + $0x1f4] sm:$0xf0]  ;;  %1748 = vmatpush.bf16.msra.mxu1 %v2840_v56 }
 0x21d   :  { %v603_v49 = vpop.f32.mrf.mxu2  ;;  %v616_v50 = vpop.f32.mrf.mxu3  ;;  %v2976_v55 = vor.u32 %v3556_v51, %v2975_v48  ;;  %v3514_v48 = vld [vmem:[#allocation16 + $0xa4] sm:$0xf0]  ;;  %v3496_v56 = vld [vmem:[#allocation16 + $0x14] sm:$0xf0] }
 0x21e   :  { %v4463_v49 = vpop.eup %3699  ;;  %v2912_v50 = vor.u32 %v3540_v46, %v2911_v45  ;;  %v2744_v46 = vor.u32 %v3498_v43, %v2743_v42  ;;  %v3530_v51 = vld [vmem:[#allocation16 + $0x124] sm:$0xf0]  ;;  %v3167_v42 = vld [vmem:[#allocation16 + $0x370] sm:$0xf]  ;;  %v3604_v43 = vld [vmem:[#allocation16 + $0x374] sm:$0xf0] }
 0x21f   :  { %v624_v63 = vmul.f32 128.0, %v4463_v49  ;;  %1773 = vmatpush.bf16.msra.mxu3 %v2976_v55  ;;  %vm628_vm5 = vweird.f32 %v4463_v49  ;;  %v2935_v55 = vld [vmem:[#allocation16 + $0x1a0] sm:$0xf] }
 0x220   :  { %1760 = vmatpush.bf16.msra.mxu2 %v2912_v50  ;;  %1749 = vmatpush.bf16.msra.mxu1 %v2832_v9  ;;  %v2871_v50 = vld [vmem:[#allocation16 + $0x120] sm:$0xf] }
 0x221   :  { %v625_v13 = vsub.f32 1.0, %v624_v63  ;;  %v3528_v63 = vld [vmem:[#allocation16 + $0x114] sm:$0xf0] }
 0x222   :  { %v2864_v6 = vor.u32 %v3528_v63, %v2863_v62 }
 0x223   :  { %633 = vadd.xlane.f32.xlu1 %v632_v52  ;;  %v2775_v52 = vld [vmem:[#allocation16 + $0x60] sm:$0xf]  ;;  %1774 = vmatpush.bf16.msra.mxu3 %v2968_v1  ;;  %v626_v27 = vmul.f32 %v4463_v49, %v625_v13  ;;  %v2736_v1 = vor.u32 %v3496_v56, %v2735_v58  ;;  %v3542_v13 = vld [vmem:[#allocation16 + $0x184] sm:$0xf0] }
 0x224   :  { %v2776_v57 = vor.u32 %v3506_v53, %v2775_v52  ;;  %1761 = vmatpush.bf16.msra.mxu2 %v2904_v0  ;;  %1750 = vmatpush.bf16.msra.mxu1 %v2824_v22  ;;  %v2808_v52 = vor.u32 %v3514_v48, %v2807_v44  ;;  %v2872_v53 = vor.u32 %v3530_v51, %v2871_v50  ;;  %v2927_v0 = vld [vmem:[#allocation16 + $0x190] sm:$0xf]  ;;  %v3586_v58 = vld [vmem:[#allocation16 + $0x2e4] sm:$0xf0] }
 0x225   :  { %v627_v40 = vadd.f32 %v4463_v49, %v626_v27  ;;  %v2928_v9 = vor.u32 %v3544_v3, %v2927_v0  ;;  %v2920_v20 = vor.u32 %v3542_v13, %v2919_v12  ;;  %v3040_v50 = vor.u32 %v3572_v39, %v3039_v38  ;;  %v3602_v56 = vld [vmem:[#allocation16 + $0x364] sm:$0xf0]  ;;  %v3023_v0 = vld [vmem:[#allocation16 + $0x250] sm:$0xf]  ;;  %v3015_v12 = vld [vmem:[#allocation16 + $0x240] sm:$0xf] }
 0x226   :  { %1735 = vmatpush.bf16.msra.mxu0 %v2776_v57  ;;  %v3546_v57 = vld [vmem:[#allocation16 + $0x1a4] sm:$0xf0]  ;;  %v3612_v38 = vld [vmem:[#allocation16 + $0x3b4] sm:$0xf0] }
 0x227   :  { %1775 = vmatpush.bf16.msra.mxu3 %v2960_v14  ;;  %v4472_v59 = vsel %vm628_vm5, %v4463_v49, %v627_v40  ;;  %v2936_v54 = vor.u32 %v3546_v57, %v2935_v55  ;;  %v3494_v49 = vld [vmem:[#allocation16 + $0x4] sm:$0xf0]  ;;  %v3103_v40 = vld [vmem:[#allocation16 + $0x2f0] sm:$0xf]  ;;  %v3095_v57 = vld [vmem:[#allocation16 + $0x2e0] sm:$0xf] }
 0x228   :  { %1762 = vmatpush.bf16.msra.mxu2 %v2896_v10  ;;  %1751 = vmatpush.bf16.msra.mxu1 %v2816_v36  ;;  %v2855_v10 = vld [vmem:[#allocation16 + $0x100] sm:$0xf]  ;;  %v2728_v15 = vor.u32 %v3494_v49, %v2727_v4  ;;  %v3096_v63 = vor.u32 %v3586_v58, %v3095_v57  ;;  %v3224_v4 = vor.u32 %v3618_v61, %v3223_v60  ;;  %v3600_v49 = vld [vmem:[#allocation16 + $0x354] sm:$0xf0]  ;;  %v3566_v13 = vld [vmem:[#allocation16 + $0x244] sm:$0xf0] }
 0x229   :  { %v2856_v19 = vor.u32 %v3526_v11, %v2855_v10  ;;  %v3610_v57 = vld [vmem:[#allocation16 + $0x3a4] sm:$0xf0]  ;;  %v3560_v60 = vld [vmem:[#allocation16 + $0x214] sm:$0xf0] }
 0x22a   :  { %1736 = vmatpush.bf16.msra.mxu0 %v2768_v5 }
 0x22b   :  { %1776 = vmatpush.bf16.msra.mxu3 %v2952_v28  ;;  %v929_v28 = vld [vmem:[%s4801_s2] sm:$0xff] }
 0x22c   :  { %1763 = vmatpush.bf16.msra.mxu2 %v2888_v23  ;;  %1752 = vmatpush.bf16.msra.mxu1 %v2808_v52  ;;  %1061 = vst [vmem:[#allocation1] ss:$4 sm:$0xff] %v929_v28  ;;  %v3570_v52 = vld [vmem:[#allocation16 + $0x264] sm:$0xf0] }
 0x22e   :  { %1737 = vmatpush.bf16.msra.mxu0 %v2760_v18 }
 0x22f   :  { %1777 = vmatpush.bf16.msra.mxu3 %v2944_v41  ;;  %v3588_v41 = vld [vmem:[#allocation16 + $0x2f4] sm:$0xf0] }
 0x230   :  { %1764 = vmatpush.bf16.msra.mxu2 %v2880_v37  ;;  %1753 = vmatpush.bf16.msra.mxu1 %v2800_v2  ;;  %v3104_v51 = vor.u32 %v3588_v41, %v3103_v40  ;;  %v3087_v2 = vld [vmem:[#allocation16 + $0x2d0] sm:$0xf] }
 0x232   :  { %1738 = vmatpush.bf16.msra.mxu0 %v2752_v32  ;;  %v3690_v32 = vld [vmem:[#allocation12] ss:$0 sm:$0xff] }
 0x233   :  { %1778 = vmatpush.bf16.msra.mxu3 %v2936_v54  ;;  %v3159_v54 = vld [vmem:[#allocation16 + $0x360] sm:$0xf] }
 0x234   :  { %1765 = vmatpush.bf16.msra.mxu2 %v2872_v53  ;;  %1754 = vmatpush.bf16.msra.mxu1 %v2792_v16  ;;  %v3168_v53 = vor.u32 %v3604_v43, %v3167_v42  ;;  %v3160_v3 = vor.u32 %v3602_v56, %v3159_v54  ;;  %v3079_v16 = vld [vmem:[#allocation16 + $0x2c0] sm:$0xf]  ;;  %v2991_v56 = vld [vmem:[#allocation16 + $0x210] sm:$0xf] }
 0x236   :  { %1739 = vmatpush.bf16.msra.mxu0 %v2744_v46  ;;  %v3620_v46 = vld [vmem:[#allocation16 + $0x3f4] sm:$0xf0] }
 0x237   :  { %1779 = vmatpush.bf16.msra.mxu3 %v2928_v9  ;;  %v930_v9 = vld [vmem:[%s4801_s2 + $0x8] sm:$0xff] }
 0x238   :  { %1766 = vmatpush.bf16.msra.mxu2 %v2864_v6  ;;  %v3151_v6 = vld [vmem:[#allocation16 + $0x350] sm:$0xf]  ;;  %1063 = vst [vmem:[#allocation1 + $0x20] ss:$4 sm:$0xff] %v930_v9  ;;  %v3574_v9 = vld [vmem:[#allocation16 + $0x284] sm:$0xf0] }
 0x23a   :  { %1740 = vmatpush.bf16.msra.mxu0 %v2736_v1  ;;  %v3568_v1 = vld [vmem:[#allocation16 + $0x254] sm:$0xf0] }
 0x23b   :  { %1780 = vmatpush.bf16.msra.mxu3 %v2920_v20  ;;  %v3024_v10 = vor.u32 %v3568_v1, %v3023_v0  ;;  %v3207_v20 = vld [vmem:[#allocation16 + $0x3c0] sm:$0xf]  ;;  %v3576_v0 = vld [vmem:[#allocation16 + $0x294] sm:$0xf0]  ;;  %v3119_v1 = vld [vmem:[#allocation16 + $0x310] sm:$0xf] }
 0x23c   :  { %1767 = vmatpush.bf16.msra.mxu2 %v2856_v19  ;;  %v3598_v19 = vld [vmem:[#allocation16 + $0x344] sm:$0xf0] }
 0x23e   :  { %1741 = vmatpush.bf16.msra.mxu0 %v2728_v15  ;;  %v3216_v15 = vor.u32 %v3616_v8, %v3215_v7  ;;  %v3558_v7 = vld [vmem:[#allocation16 + $0x204] sm:$0xf0]  ;;  %v3047_v8 = vld [vmem:[#allocation16 + $0x280] sm:$0xf] }
 0x28e   :  { %v622_v45 = vpop.xlane.xlu1 %621 }
 0x28f   :  { %v630_v5 = vmul.f32 %v4472_v59, %v622_v45  ;;  %v3231_v45 = vld [vmem:[#allocation16 + $0x3f0] sm:$0xf] }
 0x290   :  { %v3232_v55 = vor.u32 %v3620_v46, %v3231_v45  ;;  %v2999_v45 = vld [vmem:[#allocation16 + $0x220] sm:$0xf]  ;;  %v3562_v46 = vld [vmem:[#allocation16 + $0x224] sm:$0xf0] }
 0x291   :  { %v636_v17 = vmul.f32 %v630_v5, %v630_v5  ;;  %v638_v31 = vsub.f32 %v4360_v47, %v630_v5  ;;  %v3031_v47 = vld [vmem:[#allocation16 + $0x260] sm:$0xf]  ;;  %v3584_v5 = vld [vmem:[#allocation16 + $0x2d4] sm:$0xf0]  ;;  %v3000_v58 = vor.u32 %v3562_v46, %v2999_v45  ;;  %v3537_v45 = vld [vmem:[#allocation16 + $0x164] sm:$0xf] }
 0x292   :  { %v3032_v62 = vor.u32 %v3570_v52, %v3031_v47  ;;  %v3088_v11 = vor.u32 %v3584_v5, %v3087_v2  ;;  %v3578_v47 = vld [vmem:[#allocation16 + $0x2a4] sm:$0xf0]  ;;  %v3127_v52 = vld [vmem:[#allocation16 + $0x320] sm:$0xf]  ;;  %v3592_v2 = vld [vmem:[#allocation16 + $0x314] sm:$0xf0] }
 0x293   :  { %v2983_v5 = vld [vmem:[#allocation16 + $0x200] sm:$0xf]  ;;  %v2905_v46 = vld [vmem:[#allocation16 + $0x168] sm:$0xf0] }
 0x296   :  { %v634_v14 = vpop.xlane.xlu1 %633 }
 0x297   :  { %v635_v18 = vmul.f32 %v634_v14, %v4472_v59  ;;  %v3152_v14 = vor.u32 %v3600_v49, %v3151_v6  ;;  %v2992_v6 = vor.u32 %v3560_v60, %v2991_v56  ;;  %v2908_v56 = vor.u32 %v3537_v45, %v2905_v46  ;;  %v3495_v45 = vld [vmem:[#allocation16 + $0x14] sm:$0xf]  ;;  %v2737_v46 = vld [vmem:[#allocation16 + $0x18] sm:$0xf0] }
 0x299   :  { %v637_v21 = vsub.f32 %v635_v18, %v636_v17  ;;  %v3582_v17 = vld [vmem:[#allocation16 + $0x2c4] sm:$0xf0]  ;;  %v3143_v18 = vld [vmem:[#allocation16 + $0x340] sm:$0xf] }
 0x29a   :  { %v3080_v28 = vor.u32 %v3582_v17, %v3079_v16  ;;  %v3507_v16 = vld [vmem:[#allocation16 + $0x74] sm:$0xf]  ;;  %v2785_v17 = vld [vmem:[#allocation16 + $0x78] sm:$0xf0] }
 0x29b   :  { %v639_v22 = vadd.f32 1e-05, %v637_v21  ;;  %v3614_v21 = vld [vmem:[#allocation16 + $0x3c4] sm:$0xf0] }
 0x29d   :  { %3701 = vrsqrt.f32 %v639_v22  ;;  %vm646_vm7 = vweird.f32 %v639_v22 }
 0x2a3   :  { %v3702_v23 = vpop.eup %3701 }
 0x2a4   :  { %v641_v25 = vmul.f32 %v3702_v23, %v639_v22  ;;  %vm647_vm6 = vweird.f32 %v3702_v23  ;;  %v3007_v22 = vld [vmem:[#allocation16 + $0x230] sm:$0xf] }
 0x2a5   :  { %vm648_vm8 = vmor %vm646_vm7, %vm647_vm6 }
 0x2a6   :  { %v642_v26 = vmul.f32 %v3702_v23, %v641_v25  ;;  %v1064_v25 = vld.sshfl [vmem:[#allocation1] sm:$0xff pattern:$0x73625140] }
 0x2a7   :  { %v4483_v39 = vpack.c.bf16 %v1064_v25, %v1064_v25  ;;  %v3555_v25 = vld [vmem:[#allocation16 + $0x1f4] sm:$0xf] }
 0x2a8   :  { %v643_v27 = vmul.f32 0.5, %v642_v26  ;;  %v1065_v26 = vld.sshfl [vmem:[#allocation1 + $0x8] sm:$0xff pattern:$0x73625140] }
 0x2a9   :  { %v4485_v40 = vpack.c.bf16 %v1065_v26, %v1065_v26  ;;  %v2977_v26 = vld [vmem:[#allocation16 + $0x1f8] sm:$0xf0] }
 0x2aa   :  { %v644_v29 = vsub.f32 1.5, %v643_v27  ;;  %v3016_v27 = vor.u32 %v3566_v13, %v3015_v12  ;;  %v3111_v12 = vld [vmem:[#allocation16 + $0x300] sm:$0xf]  ;;  %v3590_v13 = vld [vmem:[#allocation16 + $0x304] sm:$0xf0] }
 0x2ac   :  { %v645_v30 = vmul.f32 %v3702_v23, %v644_v29  ;;  %v1066_v29 = vld.sshfl [vmem:[#allocation1 + $0x10] sm:$0xff pattern:$0x73625140] }
 0x2ad   :  { %v4487_v41 = vpack.c.bf16 %v1066_v29, %v1066_v29  ;;  %v3505_v29 = vld [vmem:[#allocation16 + $0x64] sm:$0xf] }
 0x2ae   :  { %v649_v33 = vsel %vm648_vm8, %v3702_v23, %v645_v30  ;;  %v3564_v23 = vld [vmem:[#allocation16 + $0x234] sm:$0xf0]  ;;  %v1067_v30 = vld.sshfl [vmem:[#allocation1 + $0x18] sm:$0xff pattern:$0x73625140] }
 0x2af   :  { %v650_v34 = vmul.f32 %v649_v33, %v638_v31  ;;  %v3144_v31 = vor.u32 %v3598_v19, %v3143_v18  ;;  %v3071_v33 = vld [vmem:[#allocation16 + $0x2b0] sm:$0xf]  ;;  %v4489_v42 = vpack.c.bf16 %v1067_v30, %v1067_v30  ;;  %v3008_v43 = vor.u32 %v3564_v23, %v3007_v22  ;;  %v3523_v18 = vld [vmem:[#allocation16 + $0xf4] sm:$0xf]  ;;  %v2849_v19 = vld [vmem:[#allocation16 + $0xf8] sm:$0xf0] }
 0x2b0   :  { %v3048_v22 = vor.u32 %v3574_v9, %v3047_v8  ;;  %v2913_v23 = vld [vmem:[#allocation16 + $0x178] sm:$0xf0]  ;;  %v2777_v30 = vld [vmem:[#allocation16 + $0x68] sm:$0xf0]  ;;  %v3517_v8 = vld [vmem:[#allocation16 + $0xc4] sm:$0xf] }
 0x2b1   :  { %v654_v36 = vmul.f32 %v3690_v32, %v650_v34  ;;  %v3208_v32 = vor.u32 %v3614_v21, %v3207_v20  ;;  %v3580_v34 = vld [vmem:[#allocation16 + $0x2b4] sm:$0xf0]  ;;  %v3539_v20 = vld [vmem:[#allocation16 + $0x174] sm:$0xf]  ;;  %v2984_v21 = vor.u32 %v3558_v7, %v2983_v5  ;;  %v3501_v5 = vld [vmem:[#allocation16 + $0x44] sm:$0xf] }
 0x2b2   :  { %v2825_v9 = vld [vmem:[#allocation16 + $0xc8] sm:$0xf0] }
 0x2b3   :  { %v658_v37 = vadd.f32 %v3691_v35, %v654_v36  ;;  %v3135_v35 = vld [vmem:[#allocation16 + $0x330] sm:$0xf]  ;;  %v3596_v36 = vld [vmem:[#allocation16 + $0x334] sm:$0xf0] }
 0x2b5   :  { %v659_v44 = vmax.f32 %v658_v37, 0.0  ;;  %v3199_v37 = vld [vmem:[#allocation16 + $0x3b0] sm:$0xf] }
 0x2b7   :  { %v692_v48 = vpack.c.bf16 %v659_v44, %v659_v44  ;;  %v3072_v44 = vor.u32 %v3580_v34, %v3071_v33  ;;  %v2788_v33 = vor.u32 %v3507_v16, %v2785_v17  ;;  %v2852_v34 = vor.u32 %v3523_v18, %v2849_v19  ;;  %v3499_v16 = vld [vmem:[#allocation16 + $0x34] sm:$0xf]  ;;  %v2753_v17 = vld [vmem:[#allocation16 + $0x38] sm:$0xf0] }
 0x2b9   :  { %871 = vmatmul.bf16.vlgmr.msrb.gmra.mxu0 %v692_v48  ;;  %884 = vmatmul.bf16.vlgmr.msrb.gmra.mxu1 %v692_v48 }
 0x2ba   :  { %897 = vmatmul.bf16.vlgmr.msrb.gmra.mxu2 %v692_v48  ;;  %910 = vmatmul.bf16.vlgmr.msrb.gmra.mxu3 %v692_v48  ;;  %v3136_v48 = vor.u32 %v3596_v36, %v3135_v35  ;;  %v1071_v35 = vld.sshfl [vmem:[#allocation1 + $0x38] sm:$0xff pattern:$0x73625140]  ;;  %v1069_v36 = vld.sshfl [vmem:[#allocation1 + $0x28] sm:$0xff pattern:$0x73625140] }
 0x2bb   :  { %1786 = vmatpush.bf16.msrb.mxu0 %v3040_v50  ;;  %1799 = vmatpush.bf16.msrb.mxu1 %v3104_v51  ;;  %v3200_v50 = vor.u32 %v3612_v38, %v3199_v37  ;;  %v3063_v51 = vld [vmem:[#allocation16 + $0x2a0] sm:$0xf]  ;;  %v2916_v37 = vor.u32 %v3539_v20, %v2913_v23  ;;  %v2980_v38 = vor.u32 %v3555_v25, %v2977_v26  ;;  %v3515_v20 = vld [vmem:[#allocation16 + $0xb4] sm:$0xf]  ;;  %v2881_v23 = vld [vmem:[#allocation16 + $0x138] sm:$0xf0] }
 0x2bc   :  { %1812 = vmatpush.bf16.msrb.mxu2 %v3168_v53  ;;  %1825 = vmatpush.bf16.msrb.mxu3 %v3232_v55  ;;  %v3594_v53 = vld [vmem:[#allocation16 + $0x324] sm:$0xf0]  ;;  %v3191_v55 = vld [vmem:[#allocation16 + $0x3a0] sm:$0xf]  ;;  %v3064_v54 = vor.u32 %v3578_v47, %v3063_v51  ;;  %v3547_v25 = vld [vmem:[#allocation16 + $0x1b4] sm:$0xf] }
 0x2bd   :  { %v3128_v61 = vor.u32 %v3594_v53, %v3127_v52  ;;  %v4499_v52 = vpack.c.bf16 %v1071_v35, %v1071_v35  ;;  %v4501_v53 = vpack.c.bf16 %v1069_v36, %v1069_v36  ;;  %v2945_v26 = vld [vmem:[#allocation16 + $0x1b8] sm:$0xf0]  ;;  %v3529_v35 = vld [vmem:[#allocation16 + $0x124] sm:$0xf]  ;;  %v2873_v36 = vld [vmem:[#allocation16 + $0x128] sm:$0xf0] }
 0x2bf   :  { %1787 = vmatpush.bf16.msrb.mxu0 %v3032_v62  ;;  %1800 = vmatpush.bf16.msrb.mxu1 %v3096_v63  ;;  %v3192_v62 = vor.u32 %v3610_v57, %v3191_v55  ;;  %v3055_v63 = vld [vmem:[#allocation16 + $0x290] sm:$0xf]  ;;  %v2780_v55 = vor.u32 %v3505_v29, %v2777_v30  ;;  %v3497_v29 = vld [vmem:[#allocation16 + $0x24] sm:$0xf]  ;;  %v2745_v30 = vld [vmem:[#allocation16 + $0x28] sm:$0xf0] }
 0x2c0   :  { %1813 = vmatpush.bf16.msrb.mxu2 %v3160_v3  ;;  %1826 = vmatpush.bf16.msrb.mxu3 %v3224_v4  ;;  %v3183_v3 = vld [vmem:[#allocation16 + $0x390] sm:$0xf]  ;;  %v3608_v4 = vld [vmem:[#allocation16 + $0x394] sm:$0xf0]  ;;  %v3056_v49 = vor.u32 %v3576_v0, %v3055_v63  ;;  %v3535_v63 = vld [vmem:[#allocation16 + $0x154] sm:$0xf] }
 0x2c1   :  { %v2897_v0 = vld [vmem:[#allocation16 + $0x158] sm:$0xf0] }
 0x2c3   :  { %1788 = vmatpush.bf16.msrb.mxu0 %v3024_v10  ;;  %1801 = vmatpush.bf16.msrb.mxu1 %v3088_v11  ;;  %v3120_v10 = vor.u32 %v3592_v2, %v3119_v1  ;;  %v3184_v11 = vor.u32 %v3608_v4, %v3183_v3  ;;  %v3551_v1 = vld [vmem:[#allocation16 + $0x1d4] sm:$0xf]  ;;  %v2961_v2 = vld [vmem:[#allocation16 + $0x1d8] sm:$0xf0] }
 0x2c4   :  { %1814 = vmatpush.bf16.msrb.mxu2 %v3152_v14  ;;  %1827 = vmatpush.bf16.msrb.mxu3 %v3216_v15  ;;  %v3175_v14 = vld [vmem:[#allocation16 + $0x380] sm:$0xf]  ;;  %v3606_v15 = vld [vmem:[#allocation16 + $0x384] sm:$0xf0]  ;;  %v2964_v7 = vor.u32 %v3551_v1, %v2961_v2  ;;  %v3509_v1 = vld [vmem:[#allocation16 + $0x84] sm:$0xf] }
 0x2c5   :  { %v2793_v2 = vld [vmem:[#allocation16 + $0x88] sm:$0xf0] }
 0x2c7   :  { %1789 = vmatpush.bf16.msrb.mxu0 %v3016_v27  ;;  %1802 = vmatpush.bf16.msrb.mxu1 %v3080_v28  ;;  %v3112_v27 = vor.u32 %v3590_v13, %v3111_v12  ;;  %v3176_v28 = vor.u32 %v3606_v15, %v3175_v14  ;;  %v3549_v12 = vld [vmem:[#allocation16 + $0x1c4] sm:$0xf]  ;;  %v2953_v13 = vld [vmem:[#allocation16 + $0x1c8] sm:$0xf0]  ;;  %v2828_v15 = vor.u32 %v3517_v8, %v2825_v9  ;;  %v3571_v8 = vld [vmem:[#allocation16 + $0x274] sm:$0xf] }
 0x2c8   :  { %1815 = vmatpush.bf16.msrb.mxu2 %v3144_v31  ;;  %1828 = vmatpush.bf16.msrb.mxu3 %v3208_v32  ;;  %v1070_v31 = vld.sshfl [vmem:[#allocation1 + $0x30] sm:$0xff pattern:$0x73625140]  ;;  %v1068_v32 = vld.sshfl [vmem:[#allocation1 + $0x20] sm:$0xff pattern:$0x73625140]  ;;  %v2956_v19 = vor.u32 %v3549_v12, %v2953_v13 }
 0x2c9   :  { %1742 = vmatmul.bf16.vlgmr.msra.gmra.mxu0 %v4483_v39  ;;  %1755 = vmatmul.bf16.vlgmr.msra.gmra.mxu1 %v4485_v40  ;;  %v4495_v51 = vpack.c.bf16 %v1070_v31, %v1070_v31  ;;  %v4497_v47 = vpack.c.bf16 %v1068_v32, %v1068_v32  ;;  %v2948_v32 = vor.u32 %v3547_v25, %v2945_v26  ;;  %v3041_v9 = vld [vmem:[#allocation16 + $0x278] sm:$0xf0]  ;;  %v3603_v12 = vld [vmem:[#allocation16 + $0x374] sm:$0xf] }
 0x2ca   :  { %1768 = vmatmul.bf16.vlgmr.msra.gmra.mxu2 %v4487_v41  ;;  %1781 = vmatmul.bf16.vlgmr.msra.gmra.mxu3 %v4489_v42 }
 0x2cb   :  { %1790 = vmatpush.bf16.msrb.mxu0 %v3008_v43  ;;  %1803 = vmatpush.bf16.msrb.mxu1 %v3072_v44  ;;  %v3521_v43 = vld [vmem:[#allocation16 + $0xe4] sm:$0xf]  ;;  %v2841_v44 = vld [vmem:[#allocation16 + $0xe8] sm:$0xf0] }
 0x2cc   :  { %1816 = vmatpush.bf16.msrb.mxu2 %v3136_v48  ;;  %1829 = vmatpush.bf16.msrb.mxu3 %v3200_v50  ;;  %v3553_v48 = vld [vmem:[#allocation16 + $0x1e4] sm:$0xf]  ;;  %v2969_v50 = vld [vmem:[#allocation16 + $0x1e8] sm:$0xf0]  ;;  %v2844_v57 = vor.u32 %v3521_v43, %v2841_v44  ;;  %v2748_v43 = vor.u32 %v3497_v29, %v2745_v30 }
 0x2cd   :  { %v2972_v60 = vor.u32 %v3553_v48, %v2969_v50  ;;  %v2876_v48 = vor.u32 %v3529_v35, %v2873_v36  ;;  %v3601_v29 = vld [vmem:[#allocation16 + $0x364] sm:$0xf]  ;;  %v3161_v30 = vld [vmem:[#allocation16 + $0x368] sm:$0xf0]  ;;  %v3567_v35 = vld [vmem:[#allocation16 + $0x254] sm:$0xf] }
 0x2ce   :  { %v3025_v36 = vld [vmem:[#allocation16 + $0x258] sm:$0xf0] }
 0x2cf   :  { %1791 = vmatpush.bf16.msrb.mxu0 %v3000_v58  ;;  %1804 = vmatpush.bf16.msrb.mxu1 %v3064_v54  ;;  %v3503_v58 = vld [vmem:[#allocation16 + $0x54] sm:$0xf]  ;;  %v2769_v54 = vld [vmem:[#allocation16 + $0x58] sm:$0xf0] }
 0x2d0   :  { %1817 = vmatpush.bf16.msrb.mxu2 %v3128_v61  ;;  %1830 = vmatpush.bf16.msrb.mxu3 %v3192_v62  ;;  %v3519_v61 = vld [vmem:[#allocation16 + $0xd4] sm:$0xf]  ;;  %v2833_v62 = vld [vmem:[#allocation16 + $0xd8] sm:$0xf0]  ;;  %v2772_v3 = vor.u32 %v3503_v58, %v2769_v54 }
 0x2d1   :  { %v2836_v4 = vor.u32 %v3519_v61, %v2833_v62  ;;  %v3527_v58 = vld [vmem:[#allocation16 + $0x114] sm:$0xf]  ;;  %v2865_v54 = vld [vmem:[#allocation16 + $0x118] sm:$0xf0]  ;;  %v3493_v61 = vld [vmem:[#allocation16 + $0x4] sm:$0xf]  ;;  %v2740_v62 = vor.u32 %v3495_v45, %v2737_v46 }
 0x2d2   :  { %v3599_v45 = vld [vmem:[#allocation16 + $0x354] sm:$0xf]  ;;  %v3153_v46 = vld [vmem:[#allocation16 + $0x358] sm:$0xf0] }
 0x2d3   :  { %1792 = vmatpush.bf16.msrb.mxu0 %v2992_v6  ;;  %1805 = vmatpush.bf16.msrb.mxu1 %v3056_v49  ;;  %v2761_v6 = vld [vmem:[#allocation16 + $0x48] sm:$0xf0]  ;;  %v2900_v49 = vor.u32 %v3535_v63, %v2897_v0 }
 0x2d4   :  { %1818 = vmatpush.bf16.msrb.mxu2 %v3120_v10  ;;  %1831 = vmatpush.bf16.msrb.mxu3 %v3184_v11  ;;  %v3533_v10 = vld [vmem:[#allocation16 + $0x144] sm:$0xf]  ;;  %v2889_v11 = vld [vmem:[#allocation16 + $0x148] sm:$0xf0]  ;;  %v2764_v14 = vor.u32 %v3501_v5, %v2761_v6 }
 0x2d5   :  { %v2892_v18 = vor.u32 %v3533_v10, %v2889_v11  ;;  %v2729_v0 = vld [vmem:[#allocation16 + $0x8] sm:$0xf0]  ;;  %v3525_v5 = vld [vmem:[#allocation16 + $0x104] sm:$0xf]  ;;  %v3587_v10 = vld [vmem:[#allocation16 + $0x2f4] sm:$0xf] }
 0x2d6   :  { %v2857_v6 = vld [vmem:[#allocation16 + $0x108] sm:$0xf0]  ;;  %v3105_v11 = vld [vmem:[#allocation16 + $0x2f8] sm:$0xf0]  ;;  %v2732_v13 = vor.u32 %v3493_v61, %v2729_v0  ;;  %v3613_v0 = vld [vmem:[#allocation16 + $0x3c4] sm:$0xf] }
 0x2d7   :  { %1793 = vmatpush.bf16.msrb.mxu0 %v2984_v21  ;;  %1806 = vmatpush.bf16.msrb.mxu1 %v3048_v22  ;;  %v2817_v21 = vld [vmem:[#allocation16 + $0xb8] sm:$0xf0]  ;;  %v3531_v22 = vld [vmem:[#allocation16 + $0x134] sm:$0xf]  ;;  %v3081_v61 = vld [vmem:[#allocation16 + $0x2c8] sm:$0xf0] }
 0x2d8   :  { %1819 = vmatpush.bf16.msrb.mxu2 %v3112_v27  ;;  %1832 = vmatpush.bf16.msrb.mxu3 %v3176_v28  ;;  %v2756_v27 = vor.u32 %v3499_v16, %v2753_v17  ;;  %v2820_v28 = vor.u32 %v3515_v20, %v2817_v21  ;;  %v2884_v31 = vor.u32 %v3531_v22, %v2881_v23  ;;  %v3619_v16 = vld [vmem:[#allocation16 + $0x3f4] sm:$0xf]  ;;  %v3233_v17 = vld [vmem:[#allocation16 + $0x3f8] sm:$0xf0]  ;;  %v3569_v22 = vld [vmem:[#allocation16 + $0x264] sm:$0xf] }
 0x2d9   :  { %v3044_v20 = vor.u32 %v3571_v8, %v3041_v9  ;;  %v3108_v21 = vor.u32 %v3587_v10, %v3105_v11  ;;  %v3033_v23 = vld [vmem:[#allocation16 + $0x268] sm:$0xf0]  ;;  %v3236_v26 = vor.u32 %v3619_v16, %v3233_v17  ;;  %v3611_v8 = vld [vmem:[#allocation16 + $0x3b4] sm:$0xf]  ;;  %v3201_v9 = vld [vmem:[#allocation16 + $0x3b8] sm:$0xf0] }
 0x2da   :  { %1794 = vmatmul.bf16.vlgmr.msrb.gmra.mxu0 %v4497_v47  ;;  %1807 = vmatmul.bf16.vlgmr.msrb.gmra.mxu1 %v4501_v53  ;;  %v3577_v16 = vld [vmem:[#allocation16 + $0x2a4] sm:$0xf]  ;;  %v3065_v17 = vld [vmem:[#allocation16 + $0x2a8] sm:$0xf0] }
 0x2db   :  { %1838 = vmatpush.bf16.msra.mxu0 %v2788_v33  ;;  %1851 = vmatpush.bf16.msra.mxu1 %v2852_v34  ;;  %v3513_v33 = vld [vmem:[#allocation16 + $0xa4] sm:$0xf]  ;;  %v2809_v34 = vld [vmem:[#allocation16 + $0xa8] sm:$0xf0] }
 0x2dc   :  { %1864 = vmatpush.bf16.msra.mxu2 %v2916_v37  ;;  %1877 = vmatpush.bf16.msra.mxu3 %v2980_v38  ;;  %v3545_v37 = vld [vmem:[#allocation16 + $0x1a4] sm:$0xf]  ;;  %v2937_v38 = vld [vmem:[#allocation16 + $0x1a8] sm:$0xf0]  ;;  %v2812_v44 = vor.u32 %v3513_v33, %v2809_v34  ;;  %v3036_v33 = vor.u32 %v3569_v22, %v3033_v23  ;;  %v3068_v23 = vor.u32 %v3577_v16, %v3065_v17 }
 0x2dd   :  { %1820 = vmatmul.bf16.vlgmr.msrb.gmra.mxu2 %v4495_v51  ;;  %1833 = vmatmul.bf16.vlgmr.msrb.gmra.mxu3 %v4499_v52  ;;  %v2940_v50 = vor.u32 %v3545_v37, %v2937_v38  ;;  %v3164_v37 = vor.u32 %v3601_v29, %v3161_v30  ;;  %v3575_v29 = vld [vmem:[#allocation16 + $0x294] sm:$0xf]  ;;  %v3057_v30 = vld [vmem:[#allocation16 + $0x298] sm:$0xf0] }
 0x2df   :  { %1839 = vmatpush.bf16.msra.mxu0 %v2780_v55  ;;  %1852 = vmatpush.bf16.msra.mxu1 %v2844_v57  ;;  %v3511_v55 = vld [vmem:[#allocation16 + $0x94] sm:$0xf]  ;;  %v2801_v57 = vld [vmem:[#allocation16 + $0x98] sm:$0xf0] }
 0x2e0   :  { %1865 = vmatpush.bf16.msra.mxu2 %v2908_v56  ;;  %1878 = vmatpush.bf16.msra.mxu3 %v2972_v60  ;;  %v3543_v56 = vld [vmem:[#allocation16 + $0x194] sm:$0xf]  ;;  %v2929_v60 = vld [vmem:[#allocation16 + $0x198] sm:$0xf0]  ;;  %v2804_v63 = vor.u32 %v3511_v55, %v2801_v57  ;;  %v3028_v55 = vor.u32 %v3567_v35, %v3025_v36  ;;  %v3060_v36 = vor.u32 %v3575_v29, %v3057_v30 }
 0x2e3   :  { %1840 = vmatpush.bf16.msra.mxu0 %v2772_v3  ;;  %1853 = vmatpush.bf16.msra.mxu1 %v2836_v4  ;;  %v2868_v3 = vor.u32 %v3527_v58, %v2865_v54  ;;  %v2932_v4 = vor.u32 %v3543_v56, %v2929_v60  ;;  %v3565_v58 = vld [vmem:[#allocation16 + $0x244] sm:$0xf]  ;;  %v3017_v54 = vld [vmem:[#allocation16 + $0x248] sm:$0xf0]  ;;  %v3156_v56 = vor.u32 %v3599_v45, %v3153_v46 }
 0x2e4   :  { %1866 = vmatpush.bf16.msra.mxu2 %v2900_v49  ;;  %1879 = vmatpush.bf16.msra.mxu3 %v2964_v7  ;;  %v3541_v49 = vld [vmem:[#allocation16 + $0x184] sm:$0xf]  ;;  %v2921_v7 = vld [vmem:[#allocation16 + $0x188] sm:$0xf0] }
 0x2e5   :  { %v3573_v45 = vld [vmem:[#allocation16 + $0x284] sm:$0xf]  ;;  %v3049_v46 = vld [vmem:[#allocation16 + $0x288] sm:$0xf0] }
 0x2e7   :  { %1841 = vmatpush.bf16.msra.mxu0 %v2764_v14  ;;  %1854 = vmatpush.bf16.msra.mxu1 %v2828_v15  ;;  %v2796_v14 = vor.u32 %v3509_v1, %v2793_v2  ;;  %v3169_v15 = vld [vmem:[#allocation16 + $0x378] sm:$0xf0]  ;;  %v3563_v1 = vld [vmem:[#allocation16 + $0x234] sm:$0xf] }
 0x2e8   :  { %1867 = vmatpush.bf16.msra.mxu2 %v2892_v18  ;;  %1880 = vmatpush.bf16.msra.mxu3 %v2956_v19  ;;  %v2860_v18 = vor.u32 %v3525_v5, %v2857_v6  ;;  %v2924_v19 = vor.u32 %v3541_v49, %v2921_v7  ;;  %v3172_v25 = vor.u32 %v3603_v12, %v3169_v15  ;;  %v3009_v2 = vld [vmem:[#allocation16 + $0x238] sm:$0xf0]  ;;  %v3579_v5 = vld [vmem:[#allocation16 + $0x2b4] sm:$0xf]  ;;  %v3561_v12 = vld [vmem:[#allocation16 + $0x224] sm:$0xf] }
 0x2e9   :  { %v3073_v6 = vld [vmem:[#allocation16 + $0x2b8] sm:$0xf0]  ;;  %v3595_v49 = vld [vmem:[#allocation16 + $0x334] sm:$0xf]  ;;  %v3012_v10 = vor.u32 %v3563_v1, %v3009_v2  ;;  %v3204_v15 = vor.u32 %v3611_v8, %v3201_v9 }
 0x2ea   :  { %v3137_v7 = vld [vmem:[#allocation16 + $0x338] sm:$0xf0]  ;;  %v3076_v11 = vor.u32 %v3579_v5, %v3073_v6 }
 0x2eb   :  { %1842 = vmatpush.bf16.msra.mxu0 %v2756_v27  ;;  %1855 = vmatpush.bf16.msra.mxu1 %v2820_v28  ;;  %v3585_v27 = vld [vmem:[#allocation16 + $0x2e4] sm:$0xf]  ;;  %v3097_v28 = vld [vmem:[#allocation16 + $0x2e8] sm:$0xf0] }
 0x2ec   :  { %1868 = vmatpush.bf16.msra.mxu2 %v2884_v31  ;;  %1881 = vmatpush.bf16.msra.mxu3 %v2948_v32  ;;  %v3617_v31 = vld [vmem:[#allocation16 + $0x3e4] sm:$0xf]  ;;  %v3225_v32 = vld [vmem:[#allocation16 + $0x3e8] sm:$0xf0]  ;;  %v3100_v34 = vor.u32 %v3585_v27, %v3097_v28 }
 0x2ed   :  { %v3228_v38 = vor.u32 %v3617_v31, %v3225_v32  ;;  %v3591_v31 = vld [vmem:[#allocation16 + $0x314] sm:$0xf]  ;;  %v3121_v32 = vld [vmem:[#allocation16 + $0x318] sm:$0xf0] }
 0x2ef   :  { %1843 = vmatpush.bf16.msra.mxu0 %v2748_v43  ;;  %1856 = vmatpush.bf16.msra.mxu1 %v2812_v44  ;;  %v3583_v43 = vld [vmem:[#allocation16 + $0x2d4] sm:$0xf]  ;;  %v3089_v44 = vld [vmem:[#allocation16 + $0x2d8] sm:$0xf0] }
 0x2f0   :  { %1869 = vmatpush.bf16.msra.mxu2 %v2876_v48  ;;  %1882 = vmatpush.bf16.msra.mxu3 %v2940_v50  ;;  %v3615_v48 = vld [vmem:[#allocation16 + $0x3d4] sm:$0xf]  ;;  %v3217_v50 = vld [vmem:[#allocation16 + $0x3d8] sm:$0xf0]  ;;  %v3092_v57 = vor.u32 %v3583_v43, %v3089_v44  ;;  %v3124_v43 = vor.u32 %v3591_v31, %v3121_v32 }
 0x2f1   :  { %v3220_v60 = vor.u32 %v3615_v48, %v3217_v50  ;;  %v3589_v48 = vld [vmem:[#allocation16 + $0x304] sm:$0xf]  ;;  %v3113_v50 = vld [vmem:[#allocation16 + $0x308] sm:$0xf0] }
 0x2f3   :  { %1844 = vmatpush.bf16.msra.mxu0 %v2740_v62  ;;  %1857 = vmatpush.bf16.msra.mxu1 %v2804_v63  ;;  %v3597_v62 = vld [vmem:[#allocation16 + $0x344] sm:$0xf]  ;;  %v3145_v63 = vld [vmem:[#allocation16 + $0x348] sm:$0xf0] }
 0x2f4   :  { %1870 = vmatpush.bf16.msra.mxu2 %v2868_v3  ;;  %1883 = vmatpush.bf16.msra.mxu3 %v2932_v4  ;;  %v3148_v3 = vor.u32 %v3597_v62, %v3145_v63 }
 0x2f7   :  { %1845 = vmatpush.bf16.msra.mxu0 %v2732_v13  ;;  %1858 = vmatpush.bf16.msra.mxu1 %v2796_v14  ;;  %v3001_v13 = vld [vmem:[#allocation16 + $0x228] sm:$0xf0]  ;;  %v3140_v14 = vor.u32 %v3595_v49, %v3137_v7 }
 0x2f8   :  { %1871 = vmatpush.bf16.msra.mxu2 %v2860_v18  ;;  %1884 = vmatpush.bf16.msra.mxu3 %v2924_v19  ;;  %v3593_v18 = vld [vmem:[#allocation16 + $0x324] sm:$0xf]  ;;  %v3129_v19 = vld [vmem:[#allocation16 + $0x328] sm:$0xf0]  ;;  %v3004_v22 = vor.u32 %v3561_v12, %v3001_v13 }
 0x2f9   :  { %v3132_v27 = vor.u32 %v3593_v18, %v3129_v19 }
 0x2fa   :  { %1846 = vmatmul.bf16.vlgmr.msra.gmra.mxu0 %v4483_v39  ;;  %1859 = vmatmul.bf16.vlgmr.msra.gmra.mxu1 %v4485_v40  ;;  %v3209_v39 = vld [vmem:[#allocation16 + $0x3c8] sm:$0xf0] }
 0x2fb   :  { %1890 = vmatpush.bf16.msrb.mxu0 %v3044_v20  ;;  %1903 = vmatpush.bf16.msrb.mxu1 %v3108_v21  ;;  %v3212_v4 = vor.u32 %v3613_v0, %v3209_v39  ;;  %v3609_v20 = vld [vmem:[#allocation16 + $0x3a4] sm:$0xf]  ;;  %v3193_v21 = vld [vmem:[#allocation16 + $0x3a8] sm:$0xf0] }
 0x2fc   :  { %1916 = vmatpush.bf16.msrb.mxu2 %v3172_v25  ;;  %1929 = vmatpush.bf16.msrb.mxu3 %v3236_v26  ;;  %v3559_v25 = vld [vmem:[#allocation16 + $0x214] sm:$0xf]  ;;  %v2993_v26 = vld [vmem:[#allocation16 + $0x218] sm:$0xf0]  ;;  %v3196_v28 = vor.u32 %v3609_v20, %v3193_v21 }
 0x2fd   :  { %1872 = vmatmul.bf16.vlgmr.msra.gmra.mxu2 %v4487_v41  ;;  %1885 = vmatmul.bf16.vlgmr.msra.gmra.mxu3 %v4489_v42  ;;  %v3581_v41 = vld [vmem:[#allocation16 + $0x2c4] sm:$0xf]  ;;  %v3020_v42 = vor.u32 %v3565_v58, %v3017_v54  ;;  %v2996_v35 = vor.u32 %v3559_v25, %v2993_v26  ;;  %v3052_v54 = vor.u32 %v3573_v45, %v3049_v46 }
 0x2fe   :  { %v3084_v40 = vor.u32 %v3581_v41, %v3081_v61  ;;  %v693_v41 = vld [vmem:[#allocation15] sm:$0xf] }
 0x2ff   :  { %1891 = vmatpush.bf16.msrb.mxu0 %v3036_v33  ;;  %1904 = vmatpush.bf16.msrb.mxu1 %v3100_v34  ;;  %v3607_v33 = vld [vmem:[#allocation16 + $0x394] sm:$0xf]  ;;  %v3185_v34 = vld [vmem:[#allocation16 + $0x398] sm:$0xf0]  ;;  %v696_v62 = vperm.slane %v693_v41, 1  ;;  %v697_v39 = vperm.slane %v693_v41, 2 }
 0x300   :  { %1917 = vmatpush.bf16.msrb.mxu2 %v3164_v37  ;;  %1930 = vmatpush.bf16.msrb.mxu3 %v3228_v38  ;;  %v3557_v37 = vld [vmem:[#allocation16 + $0x204] sm:$0xf]  ;;  %v2985_v38 = vld [vmem:[#allocation16 + $0x208] sm:$0xf0]  ;;  %v3188_v44 = vor.u32 %v3607_v33, %v3185_v34 }
 0x301   :  { %v2988_v58 = vor.u32 %v3557_v37, %v2985_v38 }
 0x303   :  { %1892 = vmatpush.bf16.msrb.mxu0 %v3028_v55  ;;  %1905 = vmatpush.bf16.msrb.mxu1 %v3092_v57  ;;  %v3605_v55 = vld [vmem:[#allocation16 + $0x384] sm:$0xf]  ;;  %v3177_v57 = vld [vmem:[#allocation16 + $0x388] sm:$0xf0] }
 0x304   :  { %1918 = vmatpush.bf16.msrb.mxu2 %v3156_v56  ;;  %1931 = vmatpush.bf16.msrb.mxu3 %v3220_v60  ;;  %v3116_v56 = vor.u32 %v3589_v48, %v3113_v50  ;;  %v3180_v60 = vor.u32 %v3605_v55, %v3177_v57 }
 0x307   :  { %1893 = vmatpush.bf16.msrb.mxu0 %v3020_v42  ;;  %1906 = vmatpush.bf16.msrb.mxu1 %v3084_v40  ;;  %v698_v42 = vperm.slane %v693_v41, 3  ;;  %v695_v40 = vperm.slane %v693_v41, 0 }
 0x308   :  { %1919 = vmatpush.bf16.msrb.mxu2 %v3148_v3  ;;  %1932 = vmatpush.bf16.msrb.mxu3 %v3212_v4 }
 0x30b   :  { %1894 = vmatpush.bf16.msrb.mxu0 %v3012_v10  ;;  %1907 = vmatpush.bf16.msrb.mxu1 %v3076_v11 }
 0x30c   :  { %1920 = vmatpush.bf16.msrb.mxu2 %v3140_v14  ;;  %1933 = vmatpush.bf16.msrb.mxu3 %v3204_v15 }
 0x30f   :  { %1895 = vmatpush.bf16.msrb.mxu0 %v3004_v22  ;;  %1908 = vmatpush.bf16.msrb.mxu1 %v3068_v23 }
 0x310   :  { %1921 = vmatpush.bf16.msrb.mxu2 %v3132_v27  ;;  %1934 = vmatpush.bf16.msrb.mxu3 %v3196_v28 }
 0x313   :  { %1896 = vmatpush.bf16.msrb.mxu0 %v2996_v35  ;;  %1909 = vmatpush.bf16.msrb.mxu1 %v3060_v36 }
 0x314   :  { %1922 = vmatpush.bf16.msrb.mxu2 %v3124_v43  ;;  %1935 = vmatpush.bf16.msrb.mxu3 %v3188_v44 }
 0x317   :  { %1897 = vmatpush.bf16.msrb.mxu0 %v2988_v58  ;;  %1910 = vmatpush.bf16.msrb.mxu1 %v3052_v54 }
 0x318   :  { %1923 = vmatpush.bf16.msrb.mxu2 %v3116_v56  ;;  %1936 = vmatpush.bf16.msrb.mxu3 %v3180_v60 }
 0x31a   :  { %1898 = vmatmul.bf16.vlgmr.msrb.gmra.mxu0 %v4497_v47  ;;  %1911 = vmatmul.bf16.vlgmr.msrb.gmra.mxu1 %v4501_v53 }
 0x31b   :  { %1924 = vmatmul.bf16.vlgmr.msrb.gmra.mxu2 %v4495_v51  ;;  %1937 = vmatmul.bf16.vlgmr.msrb.gmra.mxu3 %v4499_v52  ;;  %v1088_v52 = vld [vmem:[%s4772_s13] sm:$0x3] }
 0x31c   :  { %v1090_v10 = vperm.slane %v1088_v52, 0  ;;  %v1091_v44 = vperm.slane %v1088_v52, 1 }
 0x336   :  { %v872_v61 = vpop.f32.mrf.mxu0  ;;  %v885_v63 = vpop.f32.mrf.mxu1 }
 0x337   :  { %v886_v0 = vadd.f32 %v885_v63, %v696_v62  ;;  %v873_v53 = vadd.f32 %v872_v61, %v695_v40 }
 0x339   :  { %v919_v3 = vrot.slane %v886_v0, 6 }
 0x33b   :  { %v922_v7 = vsel %vm403_vm0, %v873_v53, %v919_v3 }
 0x33d   :  { %v898_v1 = vpop.f32.mrf.mxu2  ;;  %v911_v2 = vpop.f32.mrf.mxu3 }
 0x33e   :  { %v899_v4 = vadd.f32 %v898_v1, %v697_v39  ;;  %v912_v5 = vadd.f32 %v911_v2, %v698_v42  ;;  %v874_v47 = vpop.f32.mrf.mxu0  ;;  %v887_v6 = vpop.f32.mrf.mxu1 }
 0x340   :  { %v920_v51 = vrot.slane %v899_v4, 4  ;;  %v921_v49 = vrot.slane %v912_v5, 2 }
 0x342   :  { %v924_v8 = vsel %vm923_vm9, %v920_v51, %v921_v49 }
 0x343   :  { %v926_v9 = vsel %vm925_vm10, %v922_v7, %v924_v8  ;;  %v3628_v8 = vld [vmem:[#allocation18 + $0x38] sm:$0xff] }
 0x344   :  { %928 = vst [vmem:[%s4781_s22] sm:$0xff] %v926_v9  ;;  %v3636_v9 = vld [vmem:[#allocation18 + $0x78] sm:$0xff]  ;;  %2125 = vmatpush.bf16.msra.mxu0 %v3628_v8  ;;  %v3423_v8 = vld [vmem:[%s4779_s20 + $0xe8] sm:$0xf] }
 0x345   :  { %v900_v11 = vpop.f32.mrf.mxu2  ;;  %v913_v12 = vpop.f32.mrf.mxu3  ;;  %2138 = vmatpush.bf16.msra.mxu1 %v3636_v9  ;;  %v3668_v9 = vld [vmem:[%s4779_s20 + $0xf4] sm:$0xf0] }
 0x346   :  { %v1743_v13 = vpop.f32.mrf.mxu0  ;;  %v1756_v14 = vpop.f32.mrf.mxu1  ;;  %v3635_v11 = vld [vmem:[#allocation18 + $0x70] sm:$0xff]  ;;  %v3626_v12 = vld [vmem:[#allocation18 + $0x28] sm:$0xff] }
 0x347   :  { %v1744_v15 = vadd.f32 %v1743_v13, %v1090_v10  ;;  %v3627_v10 = vld [vmem:[#allocation18 + $0x30] sm:$0xff]  ;;  %v3634_v13 = vld [vmem:[#allocation18 + $0x68] sm:$0xff] }
 0x348   :  { %2126 = vmatpush.bf16.msra.mxu0 %v3627_v10 }
 0x349   :  { %v1757_v16 = vadd.f32 %v1756_v14, %v1744_v15  ;;  %2139 = vmatpush.bf16.msra.mxu1 %v3635_v11  ;;  %v3625_v14 = vld [vmem:[#allocation18 + $0x20] sm:$0xff]  ;;  %v3424_v11 = vor.u32 %v3668_v9, %v3423_v8 }
 0x34a   :  { %v3633_v15 = vld [vmem:[#allocation18 + $0x60] sm:$0xff] }
 0x34c   :  { %2127 = vmatpush.bf16.msra.mxu0 %v3626_v12  ;;  %v3666_v12 = vld [vmem:[%s4779_s20 + $0xec] sm:$0xf] }
 0x34d   :  { %v1769_v17 = vpop.f32.mrf.mxu2  ;;  %v1782_v18 = vpop.f32.mrf.mxu3  ;;  %2140 = vmatpush.bf16.msra.mxu1 %v3634_v13  ;;  %v3425_v13 = vld [vmem:[%s4779_s20 + $0xf8] sm:$0xf0] }
 0x34e   :  { %v1770_v19 = vadd.f32 %v1769_v17, %v1757_v16  ;;  %v1745_v20 = vpop.f32.mrf.mxu0  ;;  %v1758_v21 = vpop.f32.mrf.mxu1  ;;  %v3624_v16 = vld [vmem:[#allocation18 + $0x18] sm:$0xff] }
 0x34f   :  { %v3632_v17 = vld [vmem:[#allocation18 + $0x58] sm:$0xff]  ;;  %v3622_v21 = vld [vmem:[#allocation18 + $0x8] sm:$0xff] }
 0x350   :  { %v1783_v22 = vadd.f32 %v1782_v18, %v1770_v19  ;;  %2128 = vmatpush.bf16.msra.mxu0 %v3625_v14  ;;  %v3623_v18 = vld [vmem:[#allocation18 + $0x10] sm:$0xff]  ;;  %v3428_v14 = vor.u32 %v3666_v12, %v3425_v13  ;;  %v3319_v13 = vld [vmem:[%s4779_s20 + $0x20] sm:$0xf] }
 0x351   :  { %2141 = vmatpush.bf16.msra.mxu1 %v3633_v15  ;;  %v3631_v19 = vld [vmem:[#allocation18 + $0x50] sm:$0xff]  ;;  %v3399_v15 = vld [vmem:[%s4779_s20 + $0xc0] sm:$0xf] }
 0x354   :  { %2129 = vmatpush.bf16.msra.mxu0 %v3624_v16  ;;  %v3663_v16 = vld [vmem:[%s4779_s20 + $0xcc] sm:$0xf0] }
 0x355   :  { %v1771_v23 = vpop.f32.mrf.mxu2  ;;  %v1784_v25 = vpop.f32.mrf.mxu3  ;;  %2142 = vmatpush.bf16.msra.mxu1 %v3632_v17  ;;  %v3661_v17 = vld [vmem:[%s4779_s20 + $0xc4] sm:$0xf] }
 0x356   :  { %v3621_v23 = vld [vmem:[#allocation18] sm:$0xff] }
 0x357   :  { %v1795_v26 = vpop.f32.mrf.mxu0  ;;  %v1808_v27 = vpop.f32.mrf.mxu1  ;;  %v3629_v25 = vld [vmem:[#allocation18 + $0x40] sm:$0xff] }
 0x358   :  { %v1796_v55 = vadd.f32 %v1795_v26, %v1783_v22  ;;  %2130 = vmatpush.bf16.msra.mxu0 %v3623_v18  ;;  %v3630_v22 = vld [vmem:[#allocation18 + $0x48] sm:$0xff]  ;;  %v3400_v18 = vor.u32 %v3663_v16, %v3399_v15 }
 0x359   :  { %2143 = vmatpush.bf16.msra.mxu1 %v3631_v19  ;;  %v3401_v19 = vld [vmem:[%s4779_s20 + $0xd0] sm:$0xf0]  ;;  %v3641_v15 = vld [vmem:[%s4779_s20 + $0x24] sm:$0xf] }
 0x35a   :  { %v1809_v58 = vadd.f32 %v1808_v27, %v1796_v55 }
 0x35c   :  { %2131 = vmatpush.bf16.msra.mxu0 %v3622_v21  ;;  %v3664_v21 = vld [vmem:[%s4779_s20 + $0xd4] sm:$0xf0] }
 0x35d   :  { %2144 = vmatpush.bf16.msra.mxu1 %v3630_v22  ;;  %v3404_v22 = vor.u32 %v3661_v17, %v3401_v19  ;;  %v3321_v17 = vld [vmem:[%s4779_s20 + $0x30] sm:$0xf0]  ;;  %v3644_v19 = vld [vmem:[%s4779_s20 + $0x34] sm:$0xf0] }
 0x35f   :  { %v1797_v30 = vpop.f32.mrf.mxu0  ;;  %v1810_v31 = vpop.f32.mrf.mxu1 }
 0x360   :  { %v1821_v28 = vpop.f32.mrf.mxu2  ;;  %v1834_v29 = vpop.f32.mrf.mxu3  ;;  %2132 = vmatpush.bf16.msra.mxu0 %v3621_v23 }
 0x361   :  { %v1822_v61 = vadd.f32 %v1821_v28, %v1809_v58  ;;  %2145 = vmatpush.bf16.msra.mxu1 %v3629_v25  ;;  %v3662_v25 = vld [vmem:[%s4779_s20 + $0xcc] sm:$0xf] }
 0x363   :  { %v4524_v39 = vadd.f32 %v1834_v29, %v1822_v61 }
 0x364   :  { %2415 = vmatpush.bf16.msrb.mxu0 %v3424_v11  ;;  %v3345_v11 = vld [vmem:[%s4779_s20 + $0x58] sm:$0xf0] }
 0x365   :  { %v1944_v3 = vsel %vm403_vm0, %v4524_v39, 0.0  ;;  %v1950_v51 = vmul.f32 %v4524_v39, %v4524_v39  ;;  %2428 = vmatpush.bf16.msrb.mxu1 %v3428_v14  ;;  %v3643_v14 = vld [vmem:[%s4779_s20 + $0x2c] sm:$0xf0] }
 0x366   :  { %v3320_v16 = vor.u32 %v3643_v14, %v3319_v13 }
 0x367   :  { %v1952_v52 = vsel %vm403_vm0, %v1950_v51, 0.0  ;;  %v3667_v51 = vld [vmem:[%s4779_s20 + $0xec] sm:$0xf0] }
 0x368   :  { %v1823_v32 = vpop.f32.mrf.mxu2  ;;  %v1836_v33 = vpop.f32.mrf.mxu3 }
 0x377   :  { %v1847_v34 = vpop.f32.mrf.mxu0  ;;  %v1860_v35 = vpop.f32.mrf.mxu1 }
 0x378   :  { %v1848_v48 = vadd.f32 %v1847_v34, %v1091_v44 }
 0x37a   :  { %v1861_v50 = vadd.f32 %v1860_v35, %v1848_v48 }
 0x37f   :  { %v1849_v38 = vpop.f32.mrf.mxu0  ;;  %v1862_v43 = vpop.f32.mrf.mxu1 }
 0x380   :  { %v1873_v36 = vpop.f32.mrf.mxu2  ;;  %v1886_v37 = vpop.f32.mrf.mxu3  ;;  %v1943_v43 = vld [vmem:[%s4774_s15] sm:$0x3] }
 0x381   :  { %v1874_v57 = vadd.f32 %v1873_v36, %v1861_v50  ;;  %v1984_v58 = vperm.slane %v1943_v43, 1 }
 0x383   :  { %v1887_v54 = vadd.f32 %v1886_v37, %v1874_v57  ;;  %v1942_v37 = vld [vmem:[%s4773_s14] sm:$0x3]  ;;  %v1983_v57 = vperm.slane %v1943_v43, 0 }
 0x388   :  { %v1875_v45 = vpop.f32.mrf.mxu2  ;;  %v1888_v46 = vpop.f32.mrf.mxu3 }
 0x389   :  { %v1976_v45 = vperm.slane %v1942_v37, 0  ;;  %v1977_v46 = vperm.slane %v1942_v37, 1  ;;  %v3658_v37 = vld [vmem:[%s4779_s20 + $0xac] sm:$0xf] }
 0x397   :  { %v1899_v56 = vpop.f32.mrf.mxu0  ;;  %v1912_v60 = vpop.f32.mrf.mxu1 }
 0x398   :  { %v1900_v41 = vadd.f32 %v1899_v56, %v1887_v54 }
 0x39a   :  { %v1913_v62 = vadd.f32 %v1912_v60, %v1900_v41 }
 0x39e   :  { %v1925_v63 = vpop.f32.mrf.mxu2  ;;  %v1938_v0 = vpop.f32.mrf.mxu3 }
 0x39f   :  { %v1926_v42 = vadd.f32 %v1925_v63, %v1913_v62  ;;  %v1901_v40 = vpop.f32.mrf.mxu0  ;;  %v1914_v1 = vpop.f32.mrf.mxu1 }
 0x3a1   :  { %v4526_v2 = vadd.f32 %v1938_v0, %v1926_v42 }
 0x3a3   :  { %v1945_v4 = vsel %vm403_vm0, %v4526_v2, 0.0  ;;  %v1951_v47 = vmul.f32 %v4526_v2, %v4526_v2 }
 0x3a4   :  { %v1946_v5 = vadd.f32 %v1945_v4, %v1944_v3 }
 0x3a5   :  { %v1953_v49 = vsel %vm403_vm0, %v1951_v47, 0.0 }
 0x3a6   :  { %v1927_v6 = vpop.f32.mrf.mxu2  ;;  %v1940_v53 = vpop.f32.mrf.mxu3  ;;  %1947 = vadd.xlane.f32.xlu2 %v1946_v5  ;;  %v1954_v7 = vadd.f32 %v1953_v49, %v1952_v52  ;;  %v3665_v49 = vld [vmem:[%s4779_s20 + $0xe4] sm:$0xf] }
 0x3a7   :  { %v3415_v53 = vld [vmem:[%s4779_s20 + $0xe0] sm:$0xf] }
 0x3a8   :  { %v3416_v52 = vor.u32 %v3667_v51, %v3415_v53  ;;  %v3645_v53 = vld [vmem:[%s4779_s20 + $0x44] sm:$0xf] }
 0x3aa   :  { %2389 = vmatpush.bf16.msra.mxu2 %v3416_v52  ;;  %v3343_v52 = vld [vmem:[%s4779_s20 + $0x48] sm:$0xf] }
 0x3ae   :  { %1955 = vadd.xlane.f32.xlu2 %v1954_v7  ;;  %v3417_v7 = vld [vmem:[%s4779_s20 + $0xf0] sm:$0xf0]  ;;  %2390 = vmatpush.bf16.msra.mxu2 %v3400_v18  ;;  %v3327_v18 = vld [vmem:[%s4779_s20 + $0x28] sm:$0xf] }
 0x3af   :  { %v3420_v10 = vor.u32 %v3665_v49, %v3417_v7  ;;  %v3337_v49 = vld [vmem:[%s4779_s20 + $0x50] sm:$0xf0]  ;;  %v3648_v7 = vld [vmem:[%s4779_s20 + $0x54] sm:$0xf0] }
 0x3b0   :  { %v3340_v8 = vor.u32 %v3645_v53, %v3337_v49  ;;  %v3344_v9 = vor.u32 %v3648_v7, %v3343_v52 }
 0x3b1   :  { %2402 = vmatpush.bf16.msra.mxu3 %v3420_v10  ;;  %v3646_v10 = vld [vmem:[%s4779_s20 + $0x4c] sm:$0xf] }
 0x3b2   :  { %v3348_v12 = vor.u32 %v3646_v10, %v3345_v11 }
 0x3b5   :  { %2403 = vmatpush.bf16.msra.mxu3 %v3404_v22  ;;  %v3642_v22 = vld [vmem:[%s4779_s20 + $0x2c] sm:$0xf] }
 0x419   :  { %v1948_v20 = vpop.xlane.xlu2 %1947 }
 0x41a   :  { %v1949_v26 = vmul.f32 %v1948_v20, %v4258_v24  ;;  %v3407_v20 = vld [vmem:[%s4779_s20 + $0xc8] sm:$0xf] }
 0x41b   :  { %v3408_v23 = vor.u32 %v3664_v21, %v3407_v20  ;;  %v3324_v20 = vor.u32 %v3641_v15, %v3321_v17  ;;  %v3328_v21 = vor.u32 %v3644_v19, %v3327_v18 }
 0x41c   :  { %v1958_v28 = vmul.f32 %v1949_v26, %v1949_v26  ;;  %v1961_v44 = vsub.f32 %v4526_v2, %v1949_v26 }
 0x41d   :  { %2416 = vmatpush.bf16.msrb.mxu0 %v3408_v23  ;;  %v3329_v23 = vld [vmem:[%s4779_s20 + $0x38] sm:$0xf0] }
 0x421   :  { %v1956_v27 = vpop.xlane.xlu2 %1955 }
 0x422   :  { %v1957_v29 = vmul.f32 %v1956_v27, %v4258_v24  ;;  %v1960_v24 = vsub.f32 %v4524_v39, %v1949_v26  ;;  %v3692_v39 = vld [vmem:[#allocation19] ss:$0 sm:$0xff]  ;;  %v3409_v26 = vld [vmem:[%s4779_s20 + $0xd8] sm:$0xf0] }
 0x423   :  { %v3412_v27 = vor.u32 %v3662_v25, %v3409_v26  ;;  %v3303_v25 = vld [vmem:[%s4779_s20] sm:$0xf]  ;;  %v3332_v26 = vor.u32 %v3642_v22, %v3329_v23 }
 0x424   :  { %v1959_v30 = vsub.f32 %v1957_v29, %v1958_v28  ;;  %v3383_v28 = vld [vmem:[%s4779_s20 + $0xa0] sm:$0xf]  ;;  %v3659_v29 = vld [vmem:[%s4779_s20 + $0xac] sm:$0xf0] }
 0x425   :  { %2429 = vmatpush.bf16.msrb.mxu1 %v3412_v27  ;;  %v3639_v27 = vld [vmem:[%s4779_s20 + $0xc] sm:$0xf0] }
 0x426   :  { %v1962_v31 = vadd.f32 1e-05, %v1959_v30  ;;  %v3657_v30 = vld [vmem:[%s4779_s20 + $0xa4] sm:$0xf] }
 0x428   :  { %3703 = vrsqrt.f32 %v1962_v31  ;;  %vm1969_vm12 = vweird.f32 %v1962_v31 }
 0x42e   :  { %v3704_v32 = vpop.eup %3703 }
 0x42f   :  { %v1964_v33 = vmul.f32 %v3704_v32, %v1962_v31  ;;  %vm1970_vm11 = vweird.f32 %v3704_v32  ;;  %v3384_v31 = vor.u32 %v3659_v29, %v3383_v28  ;;  %v3637_v28 = vld [vmem:[%s4779_s20 + $0x4] sm:$0xf]  ;;  %v3305_v29 = vld [vmem:[%s4779_s20 + $0x10] sm:$0xf0] }
 0x430   :  { %vm1971_vm13 = vmor %vm1969_vm12, %vm1970_vm11 }
 0x431   :  { %v1965_v34 = vmul.f32 %v3704_v32, %v1964_v33  ;;  %v3391_v33 = vld [vmem:[%s4779_s20 + $0xa8] sm:$0xf]  ;;  %2391 = vmatpush.bf16.msra.mxu2 %v3384_v31  ;;  %v3308_v31 = vor.u32 %v3637_v28, %v3305_v29 }
 0x433   :  { %v1966_v35 = vmul.f32 0.5, %v1965_v34  ;;  %v3660_v34 = vld [vmem:[%s4779_s20 + $0xb4] sm:$0xf0] }
 0x435   :  { %v1967_v36 = vsub.f32 1.5, %v1966_v35 }
 0x437   :  { %v1968_v38 = vmul.f32 %v3704_v32, %v1967_v36  ;;  %v3392_v36 = vor.u32 %v3660_v34, %v3391_v33  ;;  %v3640_v33 = vld [vmem:[%s4779_s20 + $0x14] sm:$0xf0]  ;;  %v3638_v34 = vld [vmem:[%s4779_s20 + $0xc] sm:$0xf] }
 0x439   :  { %v1972_v48 = vsel %vm1971_vm13, %v3704_v32, %v1968_v38  ;;  %v3385_v32 = vld [vmem:[%s4779_s20 + $0xb0] sm:$0xf0]  ;;  %v3393_v38 = vld [vmem:[%s4779_s20 + $0xb8] sm:$0xf0]  ;;  %2417 = vmatpush.bf16.msrb.mxu0 %v3392_v36 }
 0x43a   :  { %v1973_v50 = vmul.f32 %v1972_v48, %v1960_v24  ;;  %v1974_v55 = vmul.f32 %v1972_v48, %v1961_v44  ;;  %v3388_v35 = vor.u32 %v3657_v30, %v3385_v32  ;;  %v3396_v43 = vor.u32 %v3658_v37, %v3393_v38  ;;  %v3367_v24 = vld [vmem:[%s4779_s20 + $0x80] sm:$0xf]  ;;  %v3655_v44 = vld [vmem:[%s4779_s20 + $0x8c] sm:$0xf0]  ;;  %v3369_v48 = vld [vmem:[%s4779_s20 + $0x90] sm:$0xf0] }
 0x43b   :  { %v3304_v30 = vor.u32 %v3639_v27, %v3303_v25  ;;  %v3311_v32 = vld [vmem:[%s4779_s20 + $0x8] sm:$0xf]  ;;  %v3313_v37 = vld [vmem:[%s4779_s20 + $0x18] sm:$0xf0] }
 0x43c   :  { %v1980_v54 = vmul.f32 %v1976_v45, %v1973_v50  ;;  %v1981_v56 = vmul.f32 %v1977_v46, %v1974_v55  ;;  %2404 = vmatpush.bf16.msra.mxu3 %v3388_v35  ;;  %v3653_v45 = vld [vmem:[%s4779_s20 + $0x84] sm:$0xf]  ;;  %2430 = vmatpush.bf16.msrb.mxu1 %v3396_v43  ;;  %v3368_v46 = vor.u32 %v3655_v44, %v3367_v24  ;;  %v3375_v50 = vld [vmem:[%s4779_s20 + $0x88] sm:$0xf]  ;;  %v3656_v55 = vld [vmem:[%s4779_s20 + $0x94] sm:$0xf0] }
 0x43d   :  { %v3312_v36 = vor.u32 %v3640_v33, %v3311_v32  ;;  %v3316_v43 = vor.u32 %v3638_v34, %v3313_v37 }
 0x43e   :  { %v1987_v60 = vadd.f32 %v1983_v57, %v1980_v54  ;;  %v1988_v41 = vadd.f32 %v1984_v58, %v1981_v56  ;;  %v3372_v57 = vor.u32 %v3653_v45, %v3369_v48  ;;  %v3376_v58 = vor.u32 %v3656_v55, %v3375_v50  ;;  %v3654_v54 = vld [vmem:[%s4779_s20 + $0x8c] sm:$0xf]  ;;  %v3377_v56 = vld [vmem:[%s4779_s20 + $0x98] sm:$0xf0]  ;;  %2392 = vmatpush.bf16.msra.mxu2 %v3368_v46 }
 0x440   :  { %v1989_v61 = vmax.f32 %v1987_v60, 0.0  ;;  %v1990_v62 = vmax.f32 %v1988_v41, 0.0  ;;  %v3380_v60 = vor.u32 %v3654_v54, %v3377_v56  ;;  %2405 = vmatpush.bf16.msra.mxu3 %v3372_v57  ;;  %2418 = vmatpush.bf16.msrb.mxu0 %v3376_v58  ;;  %v3351_v41 = vld [vmem:[%s4779_s20 + $0x60] sm:$0xf] }
 0x442   :  { %v2023_v63 = vpack.c.bf16 %v1989_v61, %v1989_v61  ;;  %v2024_v0 = vpack.c.bf16 %v1990_v62, %v1990_v62  ;;  %v3651_v61 = vld [vmem:[%s4779_s20 + $0x6c] sm:$0xf0]  ;;  %v3649_v62 = vld [vmem:[%s4779_s20 + $0x64] sm:$0xf]  ;;  %2431 = vmatpush.bf16.msrb.mxu1 %v3380_v60 }
 0x444   :  { %2133 = vmatmul.bf16.vlgmr.msra.gmra.mxu0 %v2023_v63  ;;  %2146 = vmatmul.bf16.vlgmr.msra.gmra.mxu1 %v2024_v0  ;;  %v3352_v63 = vor.u32 %v3651_v61, %v3351_v41  ;;  %v3353_v0 = vld [vmem:[%s4779_s20 + $0x70] sm:$0xf0]  ;;  %v3693_v41 = vld [vmem:[#allocation21] ss:$0 sm:$0xff] }
 0x446   :  { %2393 = vmatpush.bf16.msra.mxu2 %v3352_v63 }
 0x4c1   :  { %v2134_v42 = vpop.f32.mrf.mxu0  ;;  %v2147_v40 = vpop.f32.mrf.mxu1 }
 0x4c2   :  { %v2135_v1 = vadd.f32 %v3692_v39, %v2134_v42  ;;  %v3359_v39 = vld [vmem:[%s4779_s20 + $0x68] sm:$0xf]  ;;  %v3652_v42 = vld [vmem:[%s4779_s20 + $0x74] sm:$0xf0] }
 0x4c4   :  { %v4548_v2 = vadd.f32 %v2147_v40, %v2135_v1  ;;  %v3356_v40 = vor.u32 %v3649_v62, %v3353_v0  ;;  %v3360_v1 = vor.u32 %v3652_v42, %v3359_v39  ;;  %v3694_v62 = vld [vmem:[#allocation22] ss:$0 sm:$0xff] }
 0x4c6   :  { %v2153_v3 = vsel %vm403_vm0, %v4548_v2, 0.0  ;;  %v2157_v4 = vmul.f32 %v4548_v2, %v4548_v2  ;;  %2406 = vmatpush.bf16.msra.mxu3 %v3356_v40  ;;  %2419 = vmatpush.bf16.msrb.mxu0 %v3360_v1  ;;  %v2219_v40 = vld [vmem:[%s4802_s24] sm:$0xf] }
 0x4c7   :  { %2154 = vadd.xlane.f32.xlu0 %v2153_v3  ;;  %v3650_v3 = vld [vmem:[%s4779_s20 + $0x6c] sm:$0xf]  ;;  %v2223_v1 = vperm.slane %v2219_v40, 2  ;;  %v2221_v53 = vperm.slane %v2219_v40, 0 }
 0x4c8   :  { %v2158_v5 = vsel %vm403_vm0, %v2157_v4, 0.0  ;;  %v3361_v4 = vld [vmem:[%s4779_s20 + $0x78] sm:$0xf0] }
 0x4c9   :  { %v2136_v47 = vpop.f32.mrf.mxu0  ;;  %v2149_v6 = vpop.f32.mrf.mxu1  ;;  %2159 = vadd.xlane.f32.xlu1 %v2158_v5  ;;  %v3364_v5 = vor.u32 %v3650_v3, %v3361_v4  ;;  %v2224_v3 = vperm.slane %v2219_v40, 3 }
 0x4ca   :  { %v3335_v47 = vld [vmem:[%s4779_s20 + $0x40] sm:$0xf]  ;;  %v3647_v6 = vld [vmem:[%s4779_s20 + $0x4c] sm:$0xf0]  ;;  %2407 = vmatpush.bf16.msra.mxu3 %v3340_v8  ;;  %2420 = vmatpush.bf16.msrb.mxu0 %v3344_v9 }
 0x4cb   :  { %2432 = vmatpush.bf16.msrb.mxu1 %v3364_v5  ;;  %v3336_v51 = vor.u32 %v3647_v6, %v3335_v47  ;;  %v2222_v6 = vperm.slane %v2219_v40, 1 }
 0x4cd   :  { %2394 = vmatpush.bf16.msra.mxu2 %v3336_v51 }
 0x4ce   :  { %2408 = vmatpush.bf16.msra.mxu3 %v3324_v20  ;;  %2421 = vmatpush.bf16.msrb.mxu0 %v3328_v21 }
 0x4cf   :  { %2433 = vmatpush.bf16.msrb.mxu1 %v3348_v12 }
 0x4d1   :  { %2395 = vmatpush.bf16.msra.mxu2 %v3320_v16 }
 0x4d2   :  { %2409 = vmatpush.bf16.msra.mxu3 %v3308_v31  ;;  %2422 = vmatpush.bf16.msrb.mxu0 %v3312_v36 }
 0x4d3   :  { %2434 = vmatpush.bf16.msrb.mxu1 %v3332_v26 }
 0x4d5   :  { %2396 = vmatpush.bf16.msra.mxu2 %v3304_v30 }
 0x4d7   :  { %2435 = vmatpush.bf16.msrb.mxu1 %v3316_v43 }
 0x53a   :  { %v2155_v35 = vpop.xlane.xlu0 %2154 }
 0x53b   :  { %v2156_v38 = vmul.f32 %v2155_v35, %v4472_v59 }
 0x53c   :  { %v2160_v24 = vpop.xlane.xlu1 %2159 }
 0x53d   :  { %v2162_v44 = vmul.f32 %v2156_v38, %v2156_v38  ;;  %v2161_v45 = vmul.f32 %v2160_v24, %v4472_v59  ;;  %v2164_v60 = vsub.f32 %v4548_v2, %v2156_v38 }
 0x53f   :  { %v2163_v46 = vsub.f32 %v2161_v45, %v2162_v44 }
 0x541   :  { %v2165_v48 = vadd.f32 1e-05, %v2163_v46 }
 0x543   :  { %3705 = vrsqrt.f32 %v2165_v48  ;;  %vm2172_vm15 = vweird.f32 %v2165_v48 }
 0x549   :  { %v3706_v50 = vpop.eup %3705 }
 0x54a   :  { %v2167_v55 = vmul.f32 %v3706_v50, %v2165_v48  ;;  %vm2173_vm14 = vweird.f32 %v3706_v50 }
 0x54b   :  { %vm2174_vm1 = vmor %vm2172_vm15, %vm2173_vm14 }
 0x54c   :  { %v2168_v57 = vmul.f32 %v3706_v50, %v2167_v55 }
 0x54e   :  { %v2169_v58 = vmul.f32 0.5, %v2168_v57 }
 0x550   :  { %v2170_v54 = vsub.f32 1.5, %v2169_v58 }
 0x552   :  { %v2171_v56 = vmul.f32 %v3706_v50, %v2170_v54 }
 0x554   :  { %v2175_v61 = vsel %vm2174_vm1, %v3706_v50, %v2171_v56 }
 0x555   :  { %v2176_v59 = vmul.f32 %v2175_v61, %v2164_v60 }
 0x557   :  { %v2180_v63 = vmul.f32 %v3693_v41, %v2176_v59 }
 0x559   :  { %v2184_v0 = vadd.f32 %v3694_v62, %v2180_v63 }
 0x55b   :  { %v2185_v39 = vmax.f32 %v2184_v0, 0.0 }
 0x55d   :  { %v2218_v42 = vpack.c.bf16 %v2185_v39, %v2185_v39 }
 0x55f   :  { %2397 = vmatmul.bf16.vlgmr.msra.gmra.mxu2 %v2218_v42  ;;  %2410 = vmatmul.bf16.vlgmr.msra.gmra.mxu3 %v2218_v42 }
 0x560   :  { %2423 = vmatmul.bf16.vlgmr.msrb.gmra.mxu0 %v2218_v42  ;;  %2436 = vmatmul.bf16.vlgmr.msrb.gmra.mxu1 %v2218_v42 }
 0x5dd   :  { %v2424_v2 = vpop.f32.mrf.mxu0  ;;  %v2437_v4 = vpop.f32.mrf.mxu1 }
 0x5de   :  { %v2425_v5 = vadd.f32 %v2424_v2, %v2223_v1  ;;  %v2438_v47 = vadd.f32 %v2437_v4, %v2224_v3 }
 0x5e0   :  { %v2446_v52 = vrot.slane %v2425_v5, 4  ;;  %v2447_v7 = vrot.slane %v2438_v47, 2 }
 0x5e2   :  { %v2398_v51 = vpop.f32.mrf.mxu2  ;;  %v2411_v49 = vpop.f32.mrf.mxu3  ;;  %v2449_v13 = vsel %vm923_vm9, %v2446_v52, %v2447_v7 }
 0x5e3   :  { %v2412_v8 = vadd.f32 %v2411_v49, %v2222_v6  ;;  %v2399_v9 = vadd.f32 %v2398_v51, %v2221_v53 }
 0x5e5   :  { %v2445_v10 = vrot.slane %v2412_v8, 6  ;;  %v2426_v11 = vpop.f32.mrf.mxu0  ;;  %v2439_v12 = vpop.f32.mrf.mxu1 }
 0x5e7   :  { %v2448_v14 = vsel %vm403_vm0, %v2399_v9, %v2445_v10 }
 0x5e8   :  { %v2450_v15 = vsel %vm925_vm10, %v2448_v14, %v2449_v13 }
 0x5e9   :  { %2452 = vst [vmem:[%s4803_s19] sm:$0xff] %v2450_v15 }
 0x5ea   :  { %v2400_v16 = vpop.f32.mrf.mxu2  ;;  %v2413_v17 = vpop.f32.mrf.mxu3 }
 0x5eb   :  { %2461 = vsyncpa [#allocation3], 1 }
 0x5ec   :  { %2462 = vsyncpa [#allocation5], 1 }
 0x5ed   :  { %2463 = vsyncpa [#allocation8], 1 }
 0x5ee   :  { %2464 = vsyncpa [#allocation11], 1 }
 0x5ef   :  { %2465 = vsyncpa [#allocation14], 1 }
 0x5f0   :  { %2466 = vsyncpa [#allocation17], 1 }
 0x5f1   :  { %2467 = vsyncpa [#allocation20], 1 }
 0x5f2   :  { %2468 = vsyncpa [#allocation23], 1 }

</bundles_post_ra>
